<compile_context>
chip_gen: v5e
topology: v5e:2x2
jax: 0.10.0
libtpu: 0.0.40
codegen_flags: <defaults>
</compile_context>

<pallas_src>
import functools

import jax
import jax.numpy as jnp
from jax.experimental import pallas as pl
from jax.experimental.pallas import tpu as pltpu


# ---------------------------------------------------------------------------
# The fused Pallas kernel
# ---------------------------------------------------------------------------

def _nb1d_kernel(x_ref, w_ref, aff_ref, out_ref, xp_ref, h2_ref, *, H, W, C, d):
    """One image per grid step.

    x_ref   : (1, H, W, C)   bf16  input activation block
    w_ref   : (4, 3C, C)     bf16  K-fused tap weights, rows [tap0; tap1; tap2] (Cin x Cout)
    aff_ref : (6, C)         f32   rows: [b1, bn1_scale, bn1_shift(+b2),
                                           b3, bn2_scale, bn2_shift(+b4)]
    out_ref : (1, H, W, C)   bf16
    xp_ref  : (H+2,  W, C)   bf16  scratch: stage-1 input, H-padded by 1
    h2_ref  : (H+2d, W, C)   bf16  scratch: stage-3 input, H-padded by d
    """
    f32, bf16 = jnp.float32, jnp.bfloat16
    HW = H * W

    def hconv(src_ref, dil, widx):
        # 3x1 conv: src_ref holds the stage input at rows [dil, dil+H) with zero halo
        # rows; the three taps are aligned slices along the (untiled) H axis.
        lhs = jnp.concatenate(
            [src_ref[t * dil:t * dil + H, :, :].reshape(HW, C) for t in range(3)],
            axis=1)                                            # (HW, 3C) bf16
        return jnp.dot(lhs, w_ref[widx], preferred_element_type=f32)

    def wconv(a_f32, dil, widx):
        # 1x3 conv: +-dil column shifts via sublane roll (XLU) + edge masking instead
        # of sublane-misaligned padded-buffer slices (no scratch, no relayout copies).
        col = jax.lax.broadcasted_iota(jnp.int32, (H, W, C), 1).reshape(HW, C)
        left = jnp.where(col >= dil, pltpu.roll(a_f32, dil, axis=0), 0.0)
        right = jnp.where(col < W - dil, pltpu.roll(a_f32, HW - dil, axis=0), 0.0)
        lhs = jnp.concatenate(
            [left.astype(bf16), a_f32.astype(bf16), right.astype(bf16)], axis=1)
        return jnp.dot(lhs, w_ref[widx], preferred_element_type=f32)

    # Zero only the halo rows (tiny); interiors are overwritten every step.
    zrow = jnp.zeros((1, W, C), bf16)
    zrow_d = jnp.zeros((d, W, C), bf16)
    xp_ref[0:1, :, :] = zrow
    xp_ref[H + 1:H + 2, :, :] = zrow
    h2_ref[0:d, :, :] = zrow_d
    h2_ref[H + d:H + 2 * d, :, :] = zrow_d

    # ---- conv3x1_1 (pad (1,0)) + bias + ReLU --------------------------------
    xp_ref[1:1 + H, :, :] = x_ref[0]
    o = jnp.maximum(hconv(xp_ref, 1, 0) + aff_ref[0:1, :], 0.0)

    # ---- conv1x3_1 (pad (0,1)) + folded (bias, BN1) + ReLU ------------------
    o = jnp.maximum(wconv(o, 1, 1) * aff_ref[1:2, :] + aff_ref[2:3, :], 0.0)

    # ---- conv3x1_2 (pad (d,0), dilation (d,1)) + bias + ReLU ----------------
    h2_ref[d:d + H, :, :] = o.reshape(H, W, C).astype(bf16)
    o = jnp.maximum(hconv(h2_ref, d, 2) + aff_ref[3:4, :], 0.0)

    # ---- conv1x3_2 (pad (0,d), dilation (1,d)) + folded (bias, BN2) ---------
    o = wconv(o, d, 3) * aff_ref[4:5, :] + aff_ref[5:6, :]

    # Dropout2d is the identity in eval mode.
    # Residual (re-read the VMEM input block here: short live range) + final ReLU.
    res = x_ref[0].astype(f32).reshape(HW, C)
    out_ref[0] = jnp.maximum(o + res, 0.0).reshape(H, W, C).astype(out_ref.dtype)


# ---------------------------------------------------------------------------
# Host-side weight / BN folding
# ---------------------------------------------------------------------------

def _fold_params(params):
    def taps_h(w):   # (C, C, 3, 1) -> (3C, C), rows = [tap0^T; tap1^T; tap2^T]
        return jnp.concatenate([jnp.transpose(w[:, :, t, 0]) for t in range(3)], axis=0)

    def taps_w(w):   # (C, C, 1, 3) -> (3C, C)
        return jnp.concatenate([jnp.transpose(w[:, :, 0, t]) for t in range(3)], axis=0)

    wpack = jnp.stack(
        [taps_h(params["c31_1"]["w"]), taps_w(params["c13_1"]["w"]),
         taps_h(params["c31_2"]["w"]), taps_w(params["c13_2"]["w"])],
        axis=0).astype(jnp.bfloat16)                              # (4, 3C, C)

    eps = 1e-3

    def bn_fold(bn, conv_bias):
        s = bn["gamma"] / jnp.sqrt(bn["var"] + eps)
        t = (conv_bias - bn["mean"]) * s + bn["beta"]
        return s, t

    s1, t1 = bn_fold(params["bn1"], params["c13_1"]["b"])
    s2, t2 = bn_fold(params["bn2"], params["c13_2"]["b"])
    aff = jnp.stack([params["c31_1"]["b"], s1, t1,
                     params["c31_2"]["b"], s2, t2], axis=0).astype(jnp.float32)
    return wpack, aff


# ---------------------------------------------------------------------------
# Wrappers
# ---------------------------------------------------------------------------

def non_bottleneck_1d_forward_nhwc(x_nhwc, params, *, dilated):
    """Fused eval-mode forward. x: (N, H, W, C) -> (N, H, W, C) bf16."""
    N, H, W, C = x_nhwc.shape
    d = int(dilated)
    if C % 128 != 0:
        raise ValueError("C must be a multiple of 128 (lane-dense channels)")
    if W % 8 != 0:
        raise ValueError("W must be a multiple of 8")

    wpack, aff = _fold_params(params)
    x = x_nhwc.astype(jnp.bfloat16)     # bf16 activation streaming (halves HBM I/O)

    kern = functools.partial(_nb1d_kernel, H=H, W=W, C=C, d=d)
    return pl.pallas_call(
        kern,
        out_shape=jax.ShapeDtypeStruct((N, H, W, C), jnp.bfloat16),
        grid=(N,),
        in_specs=[
            pl.BlockSpec((1, H, W, C), lambda n: (n, 0, 0, 0)),   # activation (streamed)
            pl.BlockSpec((4, 3 * C, C), lambda n: (0, 0, 0)),     # weights (fetched once)
            pl.BlockSpec((6, C), lambda n: (0, 0)),               # bias / BN affine
        ],
        out_specs=pl.BlockSpec((1, H, W, C), lambda n: (n, 0, 0, 0)),
        scratch_shapes=[
            pltpu.VMEM((H + 2, W, C), jnp.bfloat16),
            pltpu.VMEM((H + 2 * d, W, C), jnp.bfloat16),
        ],
        compiler_params=pltpu.CompilerParams(
            dimension_semantics=("parallel",),
            # Matters at real encoder resolutions (whole-image f32 temporaries);
            # harmless at the small test shape.
            vmem_limit_bytes=64 * 1024 * 1024,
        ),
    )(x, wpack, aff)


@functools.partial(jax.jit, static_argnames=("dilated", "dropprob"))
def non_bottleneck_1d_forward(x_nchw, params, *, dilated, dropprob=0.0):
    """Convenience wrapper matching the PyTorch NCHW layout.

    In a real network keep activations NHWC end-to-end: these two transposes are full
    HBM round trips of the activation and can cost as much as the fused kernel.
    """
    del dropprob  # eval-mode Dropout2d is the identity
    x = jnp.transpose(x_nchw, (0, 2, 3, 1))
    out = non_bottleneck_1d_forward_nhwc(x, params, dilated=dilated)
    return jnp.transpose(out, (0, 3, 1, 2)).astype(x_nchw.dtype)


# ---------------------------------------------------------------------------
# Deterministic parameter init (shapes match the nn.Module __init__)
# ---------------------------------------------------------------------------

def init_params(key, C):
    ks = jax.random.split(key, 16)

    def conv(i, kh, kw):
        fan = (C * kh * kw) ** -0.5
        return {"w": jax.random.normal(ks[i], (C, C, kh, kw), jnp.float32) * fan,
                "b": jax.random.normal(ks[i + 1], (C,), jnp.float32) * 0.05}

    def bn(i):
        return {"gamma": 1.0 + 0.1 * jax.random.normal(ks[i], (C,), jnp.float32),
                "beta": 0.1 * jax.random.normal(ks[i + 1], (C,), jnp.float32),
                "mean": 0.1 * jax.random.normal(ks[i + 2], (C,), jnp.float32),
                "var": 1.0 + 0.1 * jax.random.uniform(ks[i + 3], (C,), jnp.float32)}

    return {"c31_1": conv(0, 3, 1), "c13_1": conv(2, 1, 3), "bn1": bn(4),
            "c31_2": conv(8, 3, 1), "c13_2": conv(10, 1, 3), "bn2": bn(12)}


# ---------------------------------------------------------------------------
# Pure-JAX f32 reference (mirrors the PyTorch forward in eval mode)
# ---------------------------------------------------------------------------

def _ref_forward(x_nchw, params, d):
    x = jnp.transpose(x_nchw, (0, 2, 3, 1)).astype(jnp.float32)

    def conv_h(z, w, b, dil):
        zp = jnp.pad(z, ((0, 0), (dil, dil), (0, 0), (0, 0)))
        taps = jnp.transpose(w[:, :, :, 0], (2, 1, 0))
        H = z.shape[1]
        out = sum(jnp.einsum("nhwc,cd->nhwd", zp[:, t * dil:t * dil + H], taps[t])
                  for t in range(3))
        return out + b

    def conv_w(z, w, b, dil):
        zp = jnp.pad(z, ((0, 0), (0, 0), (dil, dil), (0, 0)))
        taps = jnp.transpose(w[:, :, 0, :], (2, 1, 0))
        Wd = z.shape[2]
        out = sum(jnp.einsum("nhwc,cd->nhwd", zp[:, :, t * dil:t * dil + Wd], taps[t])
                  for t in range(3))
        return out + b

    def bn(z, p):
        s = p["gamma"] / jnp.sqrt(p["var"] + 1e-3)
        return (z - p["mean"]) * s + p["beta"]

    o = jax.nn.relu(conv_h(x, params["c31_1"]["w"], params["c31_1"]["b"], 1))
    o = jax.nn.relu(bn(conv_w(o, params["c13_1"]["w"], params["c13_1"]["b"], 1),
                       params["bn1"]))
    o = jax.nn.relu(conv_h(o, params["c31_2"]["w"], params["c31_2"]["b"], d))
    o = bn(conv_w(o, params["c13_2"]["w"], params["c13_2"]["b"], d), params["bn2"])
    o = jax.nn.relu(o + x)
    return jnp.transpose(o, (0, 3, 1, 2))


# ---------------------------------------------------------------------------

if __name__ == "__main__":
    N, C, H, W = 2, 128, 16, 16      # lane-dense channels (C = 128), W multiple of 16
    dil, dropprob = 2, 0.0

    key = jax.random.PRNGKey(0)
    pkey, xkey = jax.random.split(key)
    params = init_params(pkey, C)
    x = jax.random.normal(xkey, (N, C, H, W), jnp.float32)

    out = non_bottleneck_1d_forward(x, params, dilated=dil, dropprob=dropprob)
    out = jax.block_until_ready(out)

    assert out.shape == (N, C, H, W), out.shape
    assert bool(jnp.all(jnp.isfinite(out)))
    ref = _ref_forward(x, params, dil)
    maxdiff = float(jnp.max(jnp.abs(out - ref)))
    assert maxdiff < 0.25, maxdiff   # bf16 matmuls / bf16 activation streaming tolerance
    print("KERNEL_OK")
</pallas_src>

<mosaic_0001>
module attributes {stable_mosaic.version = 11 : i64} {
  func.func @_nb1d_kernel(%arg0: i32, %arg1: memref<1x16x16x128xbf16, #tpu.memory_space<vmem>>, %arg2: memref<4x384x128xbf16, #tpu.memory_space<vmem>>, %arg3: memref<6x128xf32, #tpu.memory_space<vmem>>, %arg4: memref<1x16x16x128xbf16, #tpu.memory_space<vmem>>, %arg5: memref<18x16x128xbf16, #tpu.memory_space<vmem>>, %arg6: memref<20x16x128xbf16, #tpu.memory_space<vmem>>) attributes {dimension_semantics = [#tpu.dimension_semantics<parallel>], iteration_bounds = array<i64: 2>, scalar_prefetch = 0 : i64, scratch_operands = 2 : i64, tpu.core_type = #tpu.core_type<tc>, window_params = [{transform_indices = @transform_0, window_bounds = array<i64: 1, 16, 16, 128>}, {pipeline_mode = #tpu.pipeline_mode<synchronous>, transform_indices = @transform_1, window_bounds = array<i64: 4, 384, 128>}, {pipeline_mode = #tpu.pipeline_mode<synchronous>, transform_indices = @transform_2, window_bounds = array<i64: 6, 128>}, {transform_indices = @transform_3, window_bounds = array<i64: 1, 16, 16, 128>}]} {
    %cst = arith.constant 0.000000e+00 : bf16
    %0 = vector.broadcast %cst : bf16 to vector<1x16x128xbf16>
    %cst_0 = arith.constant 0.000000e+00 : bf16
    %1 = vector.broadcast %cst_0 : bf16 to vector<2x16x128xbf16>
    %c0 = arith.constant 0 : index
    %c0_1 = arith.constant 0 : index
    %c0_2 = arith.constant 0 : index
    %2 = vector.load %arg5[%c0, %c0_1, %c0_2] : memref<18x16x128xbf16, #tpu.memory_space<vmem>>, vector<1x16x128xbf16>
    tpu.vector_store %arg5[%c0, %c0_1, %c0_2], %0 {strides = array<i32>} : memref<18x16x128xbf16, #tpu.memory_space<vmem>>, vector<1x16x128xbf16>,
    %c17 = arith.constant 17 : index
    %c0_3 = arith.constant 0 : index
    %c0_4 = arith.constant 0 : index
    %3 = vector.load %arg5[%c17, %c0_3, %c0_4] : memref<18x16x128xbf16, #tpu.memory_space<vmem>>, vector<1x16x128xbf16>
    tpu.vector_store %arg5[%c17, %c0_3, %c0_4], %0 {strides = array<i32>} : memref<18x16x128xbf16, #tpu.memory_space<vmem>>, vector<1x16x128xbf16>,
    %c0_5 = arith.constant 0 : index
    %c0_6 = arith.constant 0 : index
    %c0_7 = arith.constant 0 : index
    %4 = vector.load %arg6[%c0_5, %c0_6, %c0_7] : memref<20x16x128xbf16, #tpu.memory_space<vmem>>, vector<2x16x128xbf16>
    tpu.vector_store %arg6[%c0_5, %c0_6, %c0_7], %1 {strides = array<i32>} : memref<20x16x128xbf16, #tpu.memory_space<vmem>>, vector<2x16x128xbf16>,
    %c18 = arith.constant 18 : index
    %c0_8 = arith.constant 0 : index
    %c0_9 = arith.constant 0 : index
    %5 = vector.load %arg6[%c18, %c0_8, %c0_9] : memref<20x16x128xbf16, #tpu.memory_space<vmem>>, vector<2x16x128xbf16>
    tpu.vector_store %arg6[%c18, %c0_8, %c0_9], %1 {strides = array<i32>} : memref<20x16x128xbf16, #tpu.memory_space<vmem>>, vector<2x16x128xbf16>,
    %c0_10 = arith.constant 0 : index
    %c0_11 = arith.constant 0 : index
    %c0_12 = arith.constant 0 : index
    %c0_13 = arith.constant 0 : index
    %6 = vector.load %arg1[%c0_10, %c0_11, %c0_12, %c0_13] : memref<1x16x16x128xbf16, #tpu.memory_space<vmem>>, vector<1x16x16x128xbf16>
    %7 = vector.shape_cast %6 : vector<1x16x16x128xbf16> to vector<16x16x128xbf16>
    %c1 = arith.constant 1 : index
    %c0_14 = arith.constant 0 : index
    %c0_15 = arith.constant 0 : index
    %8 = vector.load %arg5[%c1, %c0_14, %c0_15] : memref<18x16x128xbf16, #tpu.memory_space<vmem>>, vector<16x16x128xbf16>
    tpu.vector_store %arg5[%c1, %c0_14, %c0_15], %7 {strides = array<i32>} : memref<18x16x128xbf16, #tpu.memory_space<vmem>>, vector<16x16x128xbf16>,
    %c0_16 = arith.constant 0 : index
    %c0_17 = arith.constant 0 : index
    %c0_18 = arith.constant 0 : index
    %9 = vector.load %arg5[%c0_16, %c0_17, %c0_18] : memref<18x16x128xbf16, #tpu.memory_space<vmem>>, vector<16x16x128xbf16>
    %10 = vector.shape_cast %9 : vector<16x16x128xbf16> to vector<256x128xbf16>
    %c1_19 = arith.constant 1 : index
    %c0_20 = arith.constant 0 : index
    %c0_21 = arith.constant 0 : index
    %11 = vector.load %arg5[%c1_19, %c0_20, %c0_21] : memref<18x16x128xbf16, #tpu.memory_space<vmem>>, vector<16x16x128xbf16>
    %12 = vector.shape_cast %11 : vector<16x16x128xbf16> to vector<256x128xbf16>
    %c2 = arith.constant 2 : index
    %c0_22 = arith.constant 0 : index
    %c0_23 = arith.constant 0 : index
    %13 = vector.load %arg5[%c2, %c0_22, %c0_23] : memref<18x16x128xbf16, #tpu.memory_space<vmem>>, vector<16x16x128xbf16>
    %14 = vector.shape_cast %13 : vector<16x16x128xbf16> to vector<256x128xbf16>
    %15 = tpu.concatenate %10, %12, %14 in 1 : vector<256x128xbf16>, vector<256x128xbf16>, vector<256x128xbf16> -> vector<256x384xbf16>
    %c0_24 = arith.constant 0 : index
    %c0_25 = arith.constant 0 : index
    %c0_26 = arith.constant 0 : index
    %16 = vector.load %arg2[%c0_24, %c0_25, %c0_26] : memref<4x384x128xbf16, #tpu.memory_space<vmem>>, vector<1x384x128xbf16>
    %17 = vector.shape_cast %16 : vector<1x384x128xbf16> to vector<384x128xbf16>
    %cst_27 = arith.constant dense<0.000000e+00> : vector<256x128xf32>
    %18 = tpu.matmul %15, %17, %cst_27 {dimension_numbers = #tpu.dot_dimension_numbers<[1], [0], [0], [1], [0, 0, 1, 1], [], []>} : vector<256x384xbf16>, vector<384x128xbf16>, vector<256x128xf32> -> vector<256x128xf32>
    %c0_28 = arith.constant 0 : index
    %c0_29 = arith.constant 0 : index
    %19 = vector.load %arg3[%c0_28, %c0_29] : memref<6x128xf32, #tpu.memory_space<vmem>>, vector<1x128xf32>
    %20 = vector.broadcast %19 : vector<1x128xf32> to vector<256x128xf32>
    %21 = arith.addf %18, %20 : vector<256x128xf32>
    %cst_30 = arith.constant 0.000000e+00 : f32
    %22 = vector.broadcast %cst_30 : f32 to vector<256x128xf32>
    %23 = arith.maximumf %21, %22 : vector<256x128xf32>
    %24 = tpu.iota {dimensions = array<i32: 1>} : vector<16x16x128xi32>
    %25 = vector.shape_cast %24 : vector<16x16x128xi32> to vector<256x128xi32>
    %c1_i32 = arith.constant 1 : i32
    %26 = vector.broadcast %c1_i32 : i32 to vector<256x128xi32>
    %27 = arith.cmpi sge, %25, %26 : vector<256x128xi32>
    %c1_i32_31 = arith.constant 1 : i32
    %28 = tpu.dynamic_rotate %23 by %c1_i32_31 dim 0 : vector<256x128xf32>, i32 -> vector<256x128xf32>
    %cst_32 = arith.constant 0.000000e+00 : f32
    %29 = vector.broadcast %cst_32 : f32 to vector<256x128xf32>
    %30 = arith.select %27, %28, %29 : vector<256x128xi1>, vector<256x128xf32>
    %c15_i32 = arith.constant 15 : i32
    %31 = vector.broadcast %c15_i32 : i32 to vector<256x128xi32>
    %32 = arith.cmpi slt, %25, %31 : vector<256x128xi32>
    %c255_i32 = arith.constant 255 : i32
    %33 = tpu.dynamic_rotate %23 by %c255_i32 dim 0 : vector<256x128xf32>, i32 -> vector<256x128xf32>
    %cst_33 = arith.constant 0.000000e+00 : f32
    %34 = vector.broadcast %cst_33 : f32 to vector<256x128xf32>
    %35 = arith.select %32, %33, %34 : vector<256x128xi1>, vector<256x128xf32>
    %36 = arith.truncf %30 : vector<256x128xf32> to vector<256x128xbf16>
    %37 = arith.truncf %23 : vector<256x128xf32> to vector<256x128xbf16>
    %38 = arith.truncf %35 : vector<256x128xf32> to vector<256x128xbf16>
    %39 = tpu.concatenate %36, %37, %38 in 1 : vector<256x128xbf16>, vector<256x128xbf16>, vector<256x128xbf16> -> vector<256x384xbf16>
    %c1_34 = arith.constant 1 : index
    %c0_35 = arith.constant 0 : index
    %c0_36 = arith.constant 0 : index
    %40 = vector.load %arg2[%c1_34, %c0_35, %c0_36] : memref<4x384x128xbf16, #tpu.memory_space<vmem>>, vector<1x384x128xbf16>
    %41 = vector.shape_cast %40 : vector<1x384x128xbf16> to vector<384x128xbf16>
    %cst_37 = arith.constant dense<0.000000e+00> : vector<256x128xf32>
    %42 = tpu.matmul %39, %41, %cst_37 {dimension_numbers = #tpu.dot_dimension_numbers<[1], [0], [0], [1], [0, 0, 1, 1], [], []>} : vector<256x384xbf16>, vector<384x128xbf16>, vector<256x128xf32> -> vector<256x128xf32>
    %c1_38 = arith.constant 1 : index
    %c0_39 = arith.constant 0 : index
    %43 = vector.load %arg3[%c1_38, %c0_39] : memref<6x128xf32, #tpu.memory_space<vmem>>, vector<1x128xf32>
    %44 = vector.broadcast %43 : vector<1x128xf32> to vector<256x128xf32>
    %45 = arith.mulf %42, %44 : vector<256x128xf32>
    %c2_40 = arith.constant 2 : index
    %c0_41 = arith.constant 0 : index
    %46 = vector.load %arg3[%c2_40, %c0_41] : memref<6x128xf32, #tpu.memory_space<vmem>>, vector<1x128xf32>
    %47 = vector.broadcast %46 : vector<1x128xf32> to vector<256x128xf32>
    %48 = arith.addf %45, %47 : vector<256x128xf32>
    %cst_42 = arith.constant 0.000000e+00 : f32
    %49 = vector.broadcast %cst_42 : f32 to vector<256x128xf32>
    %50 = arith.maximumf %48, %49 : vector<256x128xf32>
    %51 = vector.shape_cast %50 : vector<256x128xf32> to vector<16x16x128xf32>
    %52 = arith.truncf %51 : vector<16x16x128xf32> to vector<16x16x128xbf16>
    %c2_43 = arith.constant 2 : index
    %c0_44 = arith.constant 0 : index
    %c0_45 = arith.constant 0 : index
    %53 = vector.load %arg6[%c2_43, %c0_44, %c0_45] : memref<20x16x128xbf16, #tpu.memory_space<vmem>>, vector<16x16x128xbf16>
    tpu.vector_store %arg6[%c2_43, %c0_44, %c0_45], %52 {strides = array<i32>} : memref<20x16x128xbf16, #tpu.memory_space<vmem>>, vector<16x16x128xbf16>,
    %c0_46 = arith.constant 0 : index
    %c0_47 = arith.constant 0 : index
    %c0_48 = arith.constant 0 : index
    %54 = vector.load %arg6[%c0_46, %c0_47, %c0_48] : memref<20x16x128xbf16, #tpu.memory_space<vmem>>, vector<16x16x128xbf16>
    %55 = vector.shape_cast %54 : vector<16x16x128xbf16> to vector<256x128xbf16>
    %c2_49 = arith.constant 2 : index
    %c0_50 = arith.constant 0 : index
    %c0_51 = arith.constant 0 : index
    %56 = vector.load %arg6[%c2_49, %c0_50, %c0_51] : memref<20x16x128xbf16, #tpu.memory_space<vmem>>, vector<16x16x128xbf16>
    %57 = vector.shape_cast %56 : vector<16x16x128xbf16> to vector<256x128xbf16>
    %c4 = arith.constant 4 : index
    %c0_52 = arith.constant 0 : index
    %c0_53 = arith.constant 0 : index
    %58 = vector.load %arg6[%c4, %c0_52, %c0_53] : memref<20x16x128xbf16, #tpu.memory_space<vmem>>, vector<16x16x128xbf16>
    %59 = vector.shape_cast %58 : vector<16x16x128xbf16> to vector<256x128xbf16>
    %60 = tpu.concatenate %55, %57, %59 in 1 : vector<256x128xbf16>, vector<256x128xbf16>, vector<256x128xbf16> -> vector<256x384xbf16>
    %c2_54 = arith.constant 2 : index
    %c0_55 = arith.constant 0 : index
    %c0_56 = arith.constant 0 : index
    %61 = vector.load %arg2[%c2_54, %c0_55, %c0_56] : memref<4x384x128xbf16, #tpu.memory_space<vmem>>, vector<1x384x128xbf16>
    %62 = vector.shape_cast %61 : vector<1x384x128xbf16> to vector<384x128xbf16>
    %cst_57 = arith.constant dense<0.000000e+00> : vector<256x128xf32>
    %63 = tpu.matmul %60, %62, %cst_57 {dimension_numbers = #tpu.dot_dimension_numbers<[1], [0], [0], [1], [0, 0, 1, 1], [], []>} : vector<256x384xbf16>, vector<384x128xbf16>, vector<256x128xf32> -> vector<256x128xf32>
    %c3 = arith.constant 3 : index
    %c0_58 = arith.constant 0 : index
    %64 = vector.load %arg3[%c3, %c0_58] : memref<6x128xf32, #tpu.memory_space<vmem>>, vector<1x128xf32>
    %65 = vector.broadcast %64 : vector<1x128xf32> to vector<256x128xf32>
    %66 = arith.addf %63, %65 : vector<256x128xf32>
    %cst_59 = arith.constant 0.000000e+00 : f32
    %67 = vector.broadcast %cst_59 : f32 to vector<256x128xf32>
    %68 = arith.maximumf %66, %67 : vector<256x128xf32>
    %69 = tpu.iota {dimensions = array<i32: 1>} : vector<16x16x128xi32>
    %70 = vector.shape_cast %69 : vector<16x16x128xi32> to vector<256x128xi32>
    %c2_i32 = arith.constant 2 : i32
    %71 = vector.broadcast %c2_i32 : i32 to vector<256x128xi32>
    %72 = arith.cmpi sge, %70, %71 : vector<256x128xi32>
    %c2_i32_60 = arith.constant 2 : i32
    %73 = tpu.dynamic_rotate %68 by %c2_i32_60 dim 0 : vector<256x128xf32>, i32 -> vector<256x128xf32>
    %cst_61 = arith.constant 0.000000e+00 : f32
    %74 = vector.broadcast %cst_61 : f32 to vector<256x128xf32>
    %75 = arith.select %72, %73, %74 : vector<256x128xi1>, vector<256x128xf32>
    %c14_i32 = arith.constant 14 : i32
    %76 = vector.broadcast %c14_i32 : i32 to vector<256x128xi32>
    %77 = arith.cmpi slt, %70, %76 : vector<256x128xi32>
    %c254_i32 = arith.constant 254 : i32
    %78 = tpu.dynamic_rotate %68 by %c254_i32 dim 0 : vector<256x128xf32>, i32 -> vector<256x128xf32>
    %cst_62 = arith.constant 0.000000e+00 : f32
    %79 = vector.broadcast %cst_62 : f32 to vector<256x128xf32>
    %80 = arith.select %77, %78, %79 : vector<256x128xi1>, vector<256x128xf32>
    %81 = arith.truncf %75 : vector<256x128xf32> to vector<256x128xbf16>
    %82 = arith.truncf %68 : vector<256x128xf32> to vector<256x128xbf16>
    %83 = arith.truncf %80 : vector<256x128xf32> to vector<256x128xbf16>
    %84 = tpu.concatenate %81, %82, %83 in 1 : vector<256x128xbf16>, vector<256x128xbf16>, vector<256x128xbf16> -> vector<256x384xbf16>
    %c3_63 = arith.constant 3 : index
    %c0_64 = arith.constant 0 : index
    %c0_65 = arith.constant 0 : index
    %85 = vector.load %arg2[%c3_63, %c0_64, %c0_65] : memref<4x384x128xbf16, #tpu.memory_space<vmem>>, vector<1x384x128xbf16>
    %86 = vector.shape_cast %85 : vector<1x384x128xbf16> to vector<384x128xbf16>
    %cst_66 = arith.constant dense<0.000000e+00> : vector<256x128xf32>
    %87 = tpu.matmul %84, %86, %cst_66 {dimension_numbers = #tpu.dot_dimension_numbers<[1], [0], [0], [1], [0, 0, 1, 1], [], []>} : vector<256x384xbf16>, vector<384x128xbf16>, vector<256x128xf32> -> vector<256x128xf32>
    %c4_67 = arith.constant 4 : index
    %c0_68 = arith.constant 0 : index
    %88 = vector.load %arg3[%c4_67, %c0_68] : memref<6x128xf32, #tpu.memory_space<vmem>>, vector<1x128xf32>
    %89 = vector.broadcast %88 : vector<1x128xf32> to vector<256x128xf32>
    %90 = arith.mulf %87, %89 : vector<256x128xf32>
    %c5 = arith.constant 5 : index
    %c0_69 = arith.constant 0 : index
    %91 = vector.load %arg3[%c5, %c0_69] : memref<6x128xf32, #tpu.memory_space<vmem>>, vector<1x128xf32>
    %92 = vector.broadcast %91 : vector<1x128xf32> to vector<256x128xf32>
    %93 = arith.addf %90, %92 : vector<256x128xf32>
    %c0_70 = arith.constant 0 : index
    %c0_71 = arith.constant 0 : index
    %c0_72 = arith.constant 0 : index
    %c0_73 = arith.constant 0 : index
    %94 = vector.load %arg1[%c0_70, %c0_71, %c0_72, %c0_73] : memref<1x16x16x128xbf16, #tpu.memory_space<vmem>>, vector<1x16x16x128xbf16>
    %95 = vector.shape_cast %94 : vector<1x16x16x128xbf16> to vector<16x16x128xbf16>
    %96 = arith.extf %95 : vector<16x16x128xbf16> to vector<16x16x128xf32>
    %97 = vector.shape_cast %96 : vector<16x16x128xf32> to vector<256x128xf32>
    %98 = arith.addf %93, %97 : vector<256x128xf32>
    %cst_74 = arith.constant 0.000000e+00 : f32
    %99 = vector.broadcast %cst_74 : f32 to vector<256x128xf32>
    %100 = arith.maximumf %98, %99 : vector<256x128xf32>
    %101 = vector.shape_cast %100 : vector<256x128xf32> to vector<16x16x128xf32>
    %102 = arith.truncf %101 : vector<16x16x128xf32> to vector<16x16x128xbf16>
    %c0_75 = arith.constant 0 : index
    %c0_76 = arith.constant 0 : index
    %c0_77 = arith.constant 0 : index
    %c0_78 = arith.constant 0 : index
    %103 = vector.load %arg4[%c0_75, %c0_76, %c0_77, %c0_78] : memref<1x16x16x128xbf16, #tpu.memory_space<vmem>>, vector<1x16x16x128xbf16>
    %104 = vector.shape_cast %103 : vector<1x16x16x128xbf16> to vector<16x16x128xbf16>
    %105 = vector.shape_cast %102 : vector<16x16x128xbf16> to vector<1x16x16x128xbf16>
    tpu.vector_store %arg4[%c0_75, %c0_76, %c0_77, %c0_78], %105 {strides = array<i32>} : memref<1x16x16x128xbf16, #tpu.memory_space<vmem>>, vector<1x16x16x128xbf16>,
    return
  }
  func.func @transform_0(%arg0: i32) -> (i32, i32, i32, i32) {
    %c0_i32 = arith.constant 0 : i32
    %c0_i32_0 = arith.constant 0 : i32
    %c0_i32_1 = arith.constant 0 : i32
    %c0_i32_2 = arith.constant 0 : i32
    return %arg0, %c0_i32, %c0_i32_0, %c0_i32_1 : i32, i32, i32, i32
  }
  func.func @transform_1(%arg0: i32) -> (i32, i32, i32) {
    %c0_i32 = arith.constant 0 : i32
    %c0_i32_0 = arith.constant 0 : i32
    %c0_i32_1 = arith.constant 0 : i32
    %c0_i32_2 = arith.constant 0 : i32
    return %c0_i32, %c0_i32_0, %c0_i32_1 : i32, i32, i32
  }
  func.func @transform_2(%arg0: i32) -> (i32, i32) {
    %c0_i32 = arith.constant 0 : i32
    %c0_i32_0 = arith.constant 0 : i32
    %c0_i32_1 = arith.constant 0 : i32
    return %c0_i32, %c0_i32_0 : i32, i32
  }
  func.func @transform_3(%arg0: i32) -> (i32, i32, i32, i32) {
    %c0_i32 = arith.constant 0 : i32
    %c0_i32_0 = arith.constant 0 : i32
    %c0_i32_1 = arith.constant 0 : i32
    %c0_i32_2 = arith.constant 0 : i32
    return %arg0, %c0_i32, %c0_i32_0, %c0_i32_1 : i32, i32, i32, i32
  }
}

</mosaic_0001>

<bundles_post_ra>
// kernel: non_bottleneck_1d_forward.1
= control target key start
LH: loop header
LB: loop body
LE: loop exit
PB: predicated region body
PF: predicated region fallthrough
CT: control target
= control target key end

     0   :  { %s6007_s12 = smov 0   ;;  %s8056_s0 = inlined_call_operand.vmem [shape: bf16[2,16,16,128], index: 0, kind: input, shape index: {}]   ;;  %s8057_s1 = inlined_call_operand.vmem [shape: bf16[4,384,128], index: 1, kind: input, shape index: {}]   ;;  %s8058_s2 = inlined_call_operand.vmem [shape: f32[6,128], index: 2, kind: input, shape index: {}]   ;;  %s8059_s3 = inlined_call_operand.vmem [shape: bf16[2,16,16,128], index: 3, kind: output, shape index: {}]  }
   0x1 LB: > { %s4575_s13 = sadd.s32 4294967295, %s5984_s12   ;;  %p4579_p0 = scmp.ge.s32.totalorder %s5984_s12, 1  ;;  %s5984_s12 = sphi %s6007_s12, %s13_s12  }
   0x2   : > { %p137_p1 = scmp.lt.s32.totalorder %s5984_s12, 3 }
   0x4   : > { %p138_p2 = pnand %p4579_p0, %p137_p1 }
   0x6   : > { %141 = sbr.rel (%p138_p2) target bundleno = 1480 (0x5c8), region = 32 }
   0xb   : > { %v5555_v0 = vld [vmem:[%s8057_s1 + $0x38] sm:$0xff]  ;;  %p161_p3 = scmp.lt.s32.totalorder %s4575_s13, 1  ;;  %v5986_v3 = vmov 0   ;;  %v5554_v4 = vld [vmem:[%s8057_s1 + $0x30] sm:$0xff]  ;;  %v5553_v7 = vld [vmem:[%s8057_s1 + $0x28] sm:$0xff] }
   0xc   : > { %v5563_v1 = vld [vmem:[%s8057_s1 + $0x78] sm:$0xff]  ;;  %172 = vst [vmem:[#allocation2] sm:$0xf] %v5986_v3  ;;  %830 = vmatpush.bf16.msra.mxu0 %v5555_v0  ;;  %v5562_v5 = vld [vmem:[%s8057_s1 + $0x70] sm:$0xff]  ;;  %v5561_v8 = vld [vmem:[%s8057_s1 + $0x68] sm:$0xff] }
   0xd   : > { %v5571_v2 = vld [vmem:[%s8057_s1 + $0xb8] sm:$0xff]  ;;  %919 = vmatpush.bf16.msra.mxu1 %v5563_v1  ;;  %173 = vst [vmem:[#allocation2 + $0x4] sm:$0xf] %v5986_v3  ;;  %s8203_s13 = smov (!%p161_p3, %s4575_s13), 1  ;;  %v5570_v6 = vld [vmem:[%s8057_s1 + $0xb0] sm:$0xff]  ;;  %v5569_v9 = vld [vmem:[%s8057_s1 + $0xa8] sm:$0xff] }
   0xe   : > { %1008 = vmatpush.bf16.msra.mxu2 %v5571_v2  ;;  %175 = vst [vmem:[#allocation2 + $0x88] sm:$0xf] %v5986_v3  ;;  %s5498_s26 = sshll.u32 %s8203_s13, 7  ;;  %v5552_v10 = vld [vmem:[%s8057_s1 + $0x20] sm:$0xff]  ;;  %v5551_v16 = vld [vmem:[%s8057_s1 + $0x18] sm:$0xff]  ;;  %v5550_v19 = vld [vmem:[%s8057_s1 + $0x10] sm:$0xff] }
   0xf   : > { %176 = vst [vmem:[#allocation2 + $0x8c] sm:$0xf] %v5986_v3  ;;  %s6047_s6 = scalar_lea.vmem %s8056_s0, %s5498_s26  ;;  %v5560_v11 = vld [vmem:[%s8057_s1 + $0x60] sm:$0xff]  ;;  %v5559_v17 = vld [vmem:[%s8057_s1 + $0x58] sm:$0xff]  ;;  %v5558_v20 = vld [vmem:[%s8057_s1 + $0x50] sm:$0xff]  ;;  %s7920_s19 = scalar_lea.vmem %s8059_s3, %s5498_s26 }
  0x10   : > { %177 = vst [vmem:[#allocation3] sm:$0xf] %v5986_v3  ;;  %831 = vmatpush.bf16.msra.mxu0 %v5554_v4  ;;  %v5568_v12 = vld [vmem:[%s8057_s1 + $0xa0] sm:$0xff]  ;;  %v188_v14 = vld [vmem:[%s6047_s6 + $0x8] sm:$0xff]   ;;  %v190_v15 = vld [vmem:[%s6047_s6 + $0x10] sm:$0xff]  }
  0x11   : > { %920 = vmatpush.bf16.msra.mxu1 %v5562_v5  ;;  %178 = vst [vmem:[#allocation3 + $0x4] sm:$0xf] %v5986_v3  ;;  %v186_v13 = vld [vmem:[%s6047_s6] sm:$0xff]   ;;  %v5567_v18 = vld [vmem:[%s8057_s1 + $0x98] sm:$0xff]  ;;  %v5566_v21 = vld [vmem:[%s8057_s1 + $0x90] sm:$0xff] }
  0x12   : > { %1009 = vmatpush.bf16.msra.mxu2 %v5570_v6  ;;  %179 = vst [vmem:[#allocation3 + $0x8] sm:$0xf] %v5986_v3  ;;  %v5549_v22 = vld [vmem:[%s8057_s1 + $0x8] sm:$0xff]  ;;  %v192_v25 = vld [vmem:[%s6047_s6 + $0x18] sm:$0xff]   ;;  %v5548_v26 = vld [vmem:[%s8057_s1] sm:$0xff] }
  0x13   : > { %180 = vst [vmem:[#allocation3 + $0xc] sm:$0xf] %v5986_v3  ;;  %v5557_v23 = vld [vmem:[%s8057_s1 + $0x48] sm:$0xff]  ;;  %v5556_v27 = vld [vmem:[%s8057_s1 + $0x40] sm:$0xff]  ;;  %v198_v40 = vld [vmem:[%s6047_s6 + $0x30] sm:$0xff]  }
  0x14   : > { %182 = vst [vmem:[#allocation3 + $0x90] sm:$0xf] %v5986_v3  ;;  %832 = vmatpush.bf16.msra.mxu0 %v5553_v7  ;;  %v5565_v24 = vld [vmem:[%s8057_s1 + $0x88] sm:$0xff]  ;;  %v5564_v28 = vld [vmem:[%s8057_s1 + $0x80] sm:$0xff]  ;;  %v200_v44 = vld [vmem:[%s6047_s6 + $0x38] sm:$0xff]  }
  0x15   : > { %921 = vmatpush.bf16.msra.mxu1 %v5561_v8  ;;  %183 = vst [vmem:[#allocation3 + $0x94] sm:$0xf] %v5986_v3  ;;  %v5500_v29 = vld [vmem:[#allocation2] sm:$0xff]  ;;  %v196_v36 = vld [vmem:[%s6047_s6 + $0x28] sm:$0xff]   ;;  %v206_v56 = vld [vmem:[%s6047_s6 + $0x50] sm:$0xff]  }
  0x16   : > { %1010 = vmatpush.bf16.msra.mxu2 %v5569_v9  ;;  %184 = vst [vmem:[#allocation3 + $0x98] sm:$0xf] %v5986_v3  ;;  %v194_v32 = vld [vmem:[%s6047_s6 + $0x20] sm:$0xff]   ;;  %v204_v52 = vld [vmem:[%s6047_s6 + $0x48] sm:$0xff]   ;;  %v5587_v60 = vld [vmem:[%s8057_s1 + $0x138] sm:$0xff] }
  0x17   : > { %185 = vst [vmem:[#allocation3 + $0x9c] sm:$0xf] %v5986_v3  ;;  %v202_v48 = vld [vmem:[%s6047_s6 + $0x40] sm:$0xff]   ;;  %v208_v61 = vld [vmem:[%s6047_s6 + $0x58] sm:$0xff]  }
  0x18   : > { %219 = vst [vmem:[#allocation2 + $0x8] sm:$0xff] %v186_v13   ;;  %833 = vmatpush.bf16.msra.mxu0 %v5552_v10  ;;  %v6115_v62 = vld [vmem:[%s8058_s2] ss:$0 sm:$0xff]  ;;  %v1129_v13 = vlaneseq }
  0x19   : > { %922 = vmatpush.bf16.msra.mxu1 %v5560_v11  ;;  %221 = vst [vmem:[#allocation2 + $0x10] sm:$0xff] %v188_v14   ;;  %v210_v11 = vld [vmem:[%s6047_s6 + $0x60] sm:$0xff]  }
  0x1a   : > { %1011 = vmatpush.bf16.msra.mxu2 %v5568_v12  ;;  %223 = vst [vmem:[#allocation2 + $0x18] sm:$0xff] %v190_v15  }
  0x1b   : > { %225 = vst [vmem:[#allocation2 + $0x20] sm:$0xff] %v192_v25  }
  0x1c   : > { %834 = vmatpush.bf16.msra.mxu0 %v5551_v16  ;;  %227 = vst [vmem:[#allocation2 + $0x28] sm:$0xff] %v194_v32  }
  0x1d   : > { %923 = vmatpush.bf16.msra.mxu1 %v5559_v17  ;;  %229 = vst [vmem:[#allocation2 + $0x30] sm:$0xff] %v196_v36  }
  0x1e   : > { %1012 = vmatpush.bf16.msra.mxu2 %v5567_v18  ;;  %231 = vst [vmem:[#allocation2 + $0x38] sm:$0xff] %v198_v40   ;;  %v6122_v18 = vshrl.u32 %v1129_v13, 7 }
  0x1f   : > { %v5516_v30 = vld [vmem:[#allocation2 + $0x8] sm:$0xff]  ;;  %233 = vst [vmem:[#allocation2 + $0x40] sm:$0xff] %v200_v44  }
  0x20   : > { %835 = vmatpush.bf16.msra.mxu0 %v5550_v19  ;;  %v5532_v31 = vld [vmem:[#allocation2 + $0x10] sm:$0xff]  ;;  %v5501_v33 = vld [vmem:[#allocation2 + $0x8] sm:$0xff]  ;;  %235 = vst [vmem:[#allocation2 + $0x48] sm:$0xff] %v202_v48   ;;  %vm1166_vm0 = vcmp.lt.s32.totalorder %v6122_v18, 1  ;;  %vm1265_vm1 = vcmp.lt.s32.totalorder %v6122_v18, 7  ;;  %vm1132_vm3 = vcmp.ge.s32.totalorder %v6122_v18, 1 }
  0x21   : > { %924 = vmatpush.bf16.msra.mxu1 %v5558_v20  ;;  %v5517_v34 = vld [vmem:[#allocation2 + $0x10] sm:$0xff]  ;;  %v5533_v35 = vld [vmem:[#allocation2 + $0x18] sm:$0xff]  ;;  %237 = vst [vmem:[#allocation2 + $0x50] sm:$0xff] %v204_v52   ;;  %v212_v44 = vld [vmem:[%s6047_s6 + $0x68] sm:$0xff]   ;;  %vm3252_vm4 = vcmp.lt.s32.totalorder %v6122_v18, 2  ;;  %vm3351_vm5 = vcmp.lt.s32.totalorder %v6122_v18, 6 }
  0x22   : > { %1013 = vmatpush.bf16.msra.mxu2 %v5566_v21  ;;  %v5502_v37 = vld [vmem:[#allocation2 + $0x10] sm:$0xff]  ;;  %v5518_v38 = vld [vmem:[#allocation2 + $0x18] sm:$0xff]  ;;  %v5534_v39 = vld [vmem:[#allocation2 + $0x20] sm:$0xff]  ;;  %239 = vst [vmem:[#allocation2 + $0x58] sm:$0xff] %v206_v56   ;;  %vm3218_vm7 = vcmp.ge.s32.totalorder %v6122_v18, 2 }
  0x23   : > { %v5503_v41 = vld [vmem:[#allocation2 + $0x18] sm:$0xff]  ;;  %v5519_v42 = vld [vmem:[#allocation2 + $0x20] sm:$0xff]  ;;  %v5535_v43 = vld [vmem:[#allocation2 + $0x28] sm:$0xff]  ;;  %241 = vst [vmem:[#allocation2 + $0x60] sm:$0xff] %v208_v61  }
  0x24   : > { %836 = vmatpush.bf16.msra.mxu0 %v5549_v22  ;;  %v5504_v45 = vld [vmem:[#allocation2 + $0x20] sm:$0xff]  ;;  %v5520_v46 = vld [vmem:[#allocation2 + $0x28] sm:$0xff]  ;;  %v5536_v47 = vld [vmem:[#allocation2 + $0x30] sm:$0xff]  ;;  %243 = vst [vmem:[#allocation2 + $0x68] sm:$0xff] %v210_v11  }
  0x25   : > { %925 = vmatpush.bf16.msra.mxu1 %v5557_v23  ;;  %v5505_v49 = vld [vmem:[#allocation2 + $0x28] sm:$0xff]  ;;  %v5521_v50 = vld [vmem:[#allocation2 + $0x30] sm:$0xff]  ;;  %v5537_v51 = vld [vmem:[#allocation2 + $0x38] sm:$0xff]  ;;  %245 = vst [vmem:[#allocation2 + $0x70] sm:$0xff] %v212_v44  }
  0x26   : > { %1014 = vmatpush.bf16.msra.mxu2 %v5565_v24  ;;  %v5506_v53 = vld [vmem:[#allocation2 + $0x30] sm:$0xff]  ;;  %v5522_v54 = vld [vmem:[#allocation2 + $0x38] sm:$0xff]  ;;  %v5538_v55 = vld [vmem:[#allocation2 + $0x40] sm:$0xff] }
  0x27   : > { %v5507_v57 = vld [vmem:[#allocation2 + $0x38] sm:$0xff]  ;;  %v5523_v58 = vld [vmem:[#allocation2 + $0x40] sm:$0xff]  ;;  %v5539_v59 = vld [vmem:[#allocation2 + $0x48] sm:$0xff] }
  0x28   : > { %837 = vmatpush.bf16.msra.mxu0 %v5548_v26  ;;  %v5508_v63 = vld [vmem:[#allocation2 + $0x40] sm:$0xff]  ;;  %v5524_v0 = vld [vmem:[#allocation2 + $0x48] sm:$0xff]  ;;  %v5540_v3 = vld [vmem:[#allocation2 + $0x50] sm:$0xff] }
  0x29   : > { %926 = vmatpush.bf16.msra.mxu1 %v5556_v27  ;;  %v5509_v16 = vld [vmem:[#allocation2 + $0x48] sm:$0xff]  ;;  %v5525_v17 = vld [vmem:[#allocation2 + $0x50] sm:$0xff]  ;;  %v5541_v22 = vld [vmem:[#allocation2 + $0x58] sm:$0xff] }
  0x2a   : > { %1015 = vmatpush.bf16.msra.mxu2 %v5564_v28 }
  0x2b   : > { %838 = vmatmul.bf16.vlgmr.msra.gmra.mxu0 %v5500_v29 }
  0x2c   : > { %927 = vmatmul.bf16.vlgmr.msra.gmra.mxu1 %v5516_v30  ;;  %1996 = vmatpush.bf16.msrb.mxu0 %v5587_v60  ;;  %v5586_v30 = vld [vmem:[%s8057_s1 + $0x130] sm:$0xff] }
  0x2d   : > { %1016 = vmatmul.bf16.vlgmr.msra.gmra.mxu2 %v5532_v31 }
  0x30   : > { %1997 = vmatpush.bf16.msrb.mxu0 %v5586_v30 }
  0x3b   : > { %843 = vmatmul.bf16.gmra.mxu0 %v5501_v33 }
  0x3c   : > { %932 = vmatmul.bf16.gmra.mxu1 %v5517_v34 }
  0x3d   : > { %1021 = vmatmul.bf16.gmra.mxu2 %v5533_v35 }
  0x4b   : > { %848 = vmatmul.bf16.gmra.mxu0 %v5502_v37 }
  0x4c   : > { %937 = vmatmul.bf16.gmra.mxu1 %v5518_v38 }
  0x4d   : > { %1026 = vmatmul.bf16.gmra.mxu2 %v5534_v39 }
  0x5b   : > { %853 = vmatmul.bf16.gmra.mxu0 %v5503_v41  ;;  %v6147_v41 = vadd.s32 8, %v6122_v18 }
  0x5c   : > { %942 = vmatmul.bf16.gmra.mxu1 %v5519_v42 }
  0x5d   : > { %1031 = vmatmul.bf16.gmra.mxu2 %v5535_v43  ;;  %vm1232_vm2 = vcmp.lt.s32.totalorder %v6147_v41, 15  ;;  %vm3318_vm6 = vcmp.lt.s32.totalorder %v6147_v41, 14 }
  0x6b   : > { %858 = vmatmul.bf16.gmra.mxu0 %v5504_v45 }
  0x6c   : > { %947 = vmatmul.bf16.gmra.mxu1 %v5520_v46 }
  0x6d   : > { %1036 = vmatmul.bf16.gmra.mxu2 %v5536_v47 }
  0x7b   : > { %863 = vmatmul.bf16.gmra.mxu0 %v5505_v49 }
  0x7c   : > { %952 = vmatmul.bf16.gmra.mxu1 %v5521_v50 }
  0x7d   : > { %1041 = vmatmul.bf16.gmra.mxu2 %v5537_v51 }
  0x8b   : > { %868 = vmatmul.bf16.gmra.mxu0 %v5506_v53  ;;  %v5510_v53 = vld [vmem:[#allocation2 + $0x50] sm:$0xff] }
  0x8c   : > { %957 = vmatmul.bf16.gmra.mxu1 %v5522_v54  ;;  %v5526_v54 = vld [vmem:[#allocation2 + $0x58] sm:$0xff] }
  0x8d   : > { %1046 = vmatmul.bf16.gmra.mxu2 %v5538_v55 }
  0x9b   : > { %873 = vmatmul.bf16.gmra.mxu0 %v5507_v57 }
  0x9c   : > { %962 = vmatmul.bf16.gmra.mxu1 %v5523_v58 }
  0x9d   : > { %1051 = vmatmul.bf16.gmra.mxu2 %v5539_v59  ;;  %v5542_v59 = vld [vmem:[#allocation2 + $0x60] sm:$0xff] }
  0xa8   : > { %v839_v1 = vpop.f32.mrf.mxu0 }
  0xa9   : > { %v928_v2 = vpop.f32.mrf.mxu1  ;;  %v840_v4 = vadd.f32 %v6115_v62, %v839_v1 }
  0xab   : > { %v929_v5 = vadd.f32 %v928_v2, %v840_v4  ;;  %878 = vmatmul.bf16.gmra.mxu0 %v5508_v63 }
  0xac   : > { %967 = vmatmul.bf16.gmra.mxu1 %v5524_v0 }
  0xad   : > { %1056 = vmatmul.bf16.gmra.mxu2 %v5540_v3 }
  0xb0   : > { %v1017_v6 = vpop.f32.mrf.mxu2  ;;  %v841_v8 = vpop.f32.mrf.mxu0 }
  0xb1   : > { %v1018_v7 = vadd.f32 %v1017_v6, %v929_v5  ;;  %v930_v9 = vpop.f32.mrf.mxu1  ;;  %v842_v10 = vadd.f32 %v6115_v62, %v841_v8 }
  0xb3   : > { %v931_v12 = vadd.f32 %v930_v9, %v842_v10  ;;  %v6120_v14 = vmax.f32 %v1018_v7, 0.0 }
  0xb5   : > { %v1362_v24 = vpack.c.bf16 %v6120_v14, %v6120_v14  ;;  %v8061_v27 = vrot.slane %v6120_v14, 7  ;;  %v8060_v36 = vrot.slane %v6120_v14, 1 }
  0xb7   : > { %v6132_v31 = vunpack.c.l.b16 %v1362_v24 }
  0xb8   : > { %v1019_v15 = vpop.f32.mrf.mxu2  ;;  %v844_v20 = vpop.f32.mrf.mxu0 }
  0xb9   : > { %v1020_v19 = vadd.f32 %v1019_v15, %v931_v12  ;;  %v933_v21 = vpop.f32.mrf.mxu1  ;;  %v845_v23 = vadd.f32 %v6115_v62, %v844_v20 }
  0xbb   : > { %v1098_v25 = vmax.f32 %v1020_v19, 0.0  ;;  %v934_v26 = vadd.f32 %v933_v21, %v845_v23  ;;  %883 = vmatmul.bf16.gmra.mxu0 %v5509_v16 }
  0xbc   : > { %972 = vmatmul.bf16.gmra.mxu1 %v5525_v17 }
  0xbd   : > { %v1135_v28 = vrot.slane %v1098_v25, 7  ;;  %v1363_v29 = vpack.c.bf16 %v1098_v25, %v1098_v25  ;;  %1061 = vmatmul.bf16.gmra.mxu2 %v5541_v22  ;;  %v1234_v32 = vrot.slane %v1098_v25, 1 }
  0xbf   : > { %v6134_v33 = vunpack.c.l.b16 %v1363_v29  ;;  %v6140_v34 = vsel %vm1166_vm0, %v8061_v27, %v1135_v28  ;;  %v1296_v45 = vsel %vm1265_vm1, %v8060_v36, %v1234_v32 }
  0xc0   : > { %v1022_v35 = vpop.f32.mrf.mxu2  ;;  %v846_v38 = vpop.f32.mrf.mxu0  ;;  %v1394_v49 = vpack.c.bf16 %v1296_v45, %v1296_v45 }
  0xc1   : > { %v1023_v37 = vadd.f32 %v1022_v35, %v934_v26  ;;  %v935_v39 = vpop.f32.mrf.mxu1  ;;  %v1586_v40 = vpack.c.b16 %v6134_v33, %v6132_v31  ;;  %v847_v42 = vadd.f32 %v6115_v62, %v846_v38  ;;  %v214_v26 = vld [vmem:[%s6047_s6 + $0x70] sm:$0xff]  }
  0xc2   : > { %v6164_v63 = vunpack.c.l.b16 %v1394_v49  ;;  %247 = vst [vmem:[#allocation2 + $0x78] sm:$0xff] %v214_v26  }
  0xc3   : > { %v1099_v43 = vmax.f32 %v1023_v37, 0.0  ;;  %v936_v46 = vadd.f32 %v935_v39, %v847_v42  ;;  %v5511_v42 = vld [vmem:[#allocation2 + $0x58] sm:$0xff] }
  0xc5   : > { %v1136_v47 = vrot.slane %v1099_v43, 7  ;;  %v1235_v48 = vrot.slane %v1099_v43, 1  ;;  %v1364_v0 = vpack.c.bf16 %v1099_v43, %v1099_v43  ;;  %v5527_v43 = vld [vmem:[#allocation2 + $0x60] sm:$0xff] }
  0xc7   : > { %v1295_v50 = vsel %vm1265_vm1, %v1234_v32, %v1235_v48  ;;  %v1196_v51 = vsel %vm1166_vm0, %v1135_v28, %v1136_v47  ;;  %v6172_v10 = vunpack.c.l.b16 %v1364_v0 }
  0xc8   : > { %v1024_v52 = vpop.f32.mrf.mxu2  ;;  %v1299_v55 = vsel %vm1232_vm2, %v1295_v50, 0.0  ;;  %v849_v57 = vpop.f32.mrf.mxu0  ;;  %v1201_v3 = vsel %vm1132_vm3, %v1196_v51, 0.0 }
  0xc9   : > { %v1025_v56 = vadd.f32 %v1024_v52, %v936_v46  ;;  %v938_v58 = vpop.f32.mrf.mxu1  ;;  %v1395_v60 = vpack.c.bf16 %v1299_v55, %v1299_v55  ;;  %v850_v61 = vadd.f32 %v6115_v62, %v849_v57  ;;  %v1332_v9 = vpack.c.bf16 %v1201_v3, %v1201_v3 }
  0xcb   : > { %v1100_v1 = vmax.f32 %v1025_v56, 0.0  ;;  %v6166_v2 = vunpack.c.l.b16 %v1395_v60  ;;  %v939_v4 = vadd.f32 %v938_v58, %v850_v61  ;;  %888 = vmatmul.bf16.gmra.mxu0 %v5510_v53  ;;  %v6183_v23 = vunpack.c.l.b16 %v1332_v9 }
  0xcc   : > { %977 = vmatmul.bf16.gmra.mxu1 %v5526_v54 }
  0xcd   : > { %v1137_v5 = vrot.slane %v1100_v1, 7  ;;  %v1236_v6 = vrot.slane %v1100_v1, 1  ;;  %1066 = vmatmul.bf16.gmra.mxu2 %v5542_v59  ;;  %v1365_v8 = vpack.c.bf16 %v1100_v1, %v1100_v1  ;;  %v5585_v59 = vld [vmem:[%s8057_s1 + $0x128] sm:$0xff] }
  0xce   : > { %1998 = vmatpush.bf16.msrb.mxu0 %v5585_v59 }
  0xcf   : > { %v6174_v11 = vunpack.c.l.b16 %v1365_v8  ;;  %v1294_v12 = vsel %vm1265_vm1, %v1235_v48, %v1236_v6  ;;  %v1195_v13 = vsel %vm1166_vm0, %v1136_v47, %v1137_v5  ;;  %v5543_v48 = vld [vmem:[#allocation2 + $0x68] sm:$0xff] }
  0xd0   : > { %v1027_v15 = vpop.f32.mrf.mxu2  ;;  %v1333_v16 = vpack.c.bf16 %v1195_v13, %v1195_v13  ;;  %v851_v19 = vpop.f32.mrf.mxu0  ;;  %v1396_v35 = vpack.c.bf16 %v1294_v12, %v1294_v12 }
  0xd1   : > { %v1028_v17 = vadd.f32 %v1027_v15, %v939_v4  ;;  %v940_v20 = vpop.f32.mrf.mxu1  ;;  %v852_v22 = vadd.f32 %v6115_v62, %v851_v19 }
  0xd2   : > { %v6185_v24 = vunpack.c.l.b16 %v1333_v16  ;;  %v6197_v51 = vunpack.c.l.b16 %v1396_v35 }
  0xd3   : > { %v1101_v25 = vmax.f32 %v1028_v17, 0.0  ;;  %v941_v28 = vadd.f32 %v940_v20, %v852_v22  ;;  %v216_v22 = vld [vmem:[%s6047_s6 + $0x78] sm:$0xff]  }
  0xd4   : > { %249 = vst [vmem:[#allocation2 + $0x80] sm:$0xff] %v216_v22  }
  0xd5   : > { %v1138_v30 = vrot.slane %v1101_v25, 7  ;;  %v1237_v32 = vrot.slane %v1101_v25, 1  ;;  %v1366_v52 = vpack.c.bf16 %v1101_v25, %v1101_v25 }
  0xd7   : > { %v1293_v37 = vsel %vm1265_vm1, %v1236_v6, %v1237_v32  ;;  %v1194_v38 = vsel %vm1166_vm0, %v1137_v5, %v1138_v30  ;;  %v6208_v1 = vunpack.c.l.b16 %v1366_v52 }
  0xd8   : > { %v1029_v39 = vpop.f32.mrf.mxu2  ;;  %v1301_v44 = vsel %vm1232_vm2, %v1293_v37, 0.0  ;;  %v854_v46 = vpop.f32.mrf.mxu0  ;;  %v1203_v55 = vsel %vm1132_vm3, %v1194_v38, 0.0 }
  0xd9   : > { %v1030_v45 = vadd.f32 %v1029_v39, %v941_v28  ;;  %v943_v47 = vpop.f32.mrf.mxu1  ;;  %v1397_v49 = vpack.c.bf16 %v1301_v44, %v1301_v44  ;;  %v855_v50 = vadd.f32 %v6115_v62, %v854_v46  ;;  %v1334_v0 = vpack.c.bf16 %v1203_v55, %v1203_v55 }
  0xdb   : > { %v1102_v53 = vmax.f32 %v1030_v45, 0.0  ;;  %v6199_v54 = vunpack.c.l.b16 %v1397_v49  ;;  %v944_v56 = vadd.f32 %v943_v47, %v855_v50  ;;  %893 = vmatmul.bf16.gmra.mxu0 %v5511_v42  ;;  %v6219_v17 = vunpack.c.l.b16 %v1334_v0  ;;  %v5512_v42 = vld [vmem:[#allocation2 + $0x60] sm:$0xff] }
  0xdc   : > { %982 = vmatmul.bf16.gmra.mxu1 %v5527_v43  ;;  %v5528_v43 = vld [vmem:[#allocation2 + $0x68] sm:$0xff] }
  0xdd   : > { %v1139_v57 = vrot.slane %v1102_v53, 7  ;;  %v1238_v58 = vrot.slane %v1102_v53, 1  ;;  %1071 = vmatmul.bf16.gmra.mxu2 %v5543_v48  ;;  %v1367_v61 = vpack.c.bf16 %v1102_v53, %v1102_v53  ;;  %v5544_v48 = vld [vmem:[#allocation2 + $0x70] sm:$0xff] }
  0xdf   : > { %v6210_v3 = vunpack.c.l.b16 %v1367_v61  ;;  %v1292_v4 = vsel %vm1265_vm1, %v1237_v32, %v1238_v58  ;;  %v1193_v5 = vsel %vm1166_vm0, %v1138_v30, %v1139_v57  ;;  %v5595_v32 = vld [vmem:[%s8057_s1 + $0x178] sm:$0xff] }
  0xe0   : > { %v1032_v6 = vpop.f32.mrf.mxu2  ;;  %v1335_v8 = vpack.c.bf16 %v1193_v5, %v1193_v5  ;;  %v856_v12 = vpop.f32.mrf.mxu0  ;;  %v1398_v35 = vpack.c.bf16 %v1292_v4, %v1292_v4  ;;  %2085 = vmatpush.bf16.msrb.mxu1 %v5595_v32 }
  0xe1   : > { %v1033_v9 = vadd.f32 %v1032_v6, %v944_v56  ;;  %v945_v13 = vpop.f32.mrf.mxu1  ;;  %v857_v16 = vadd.f32 %v6115_v62, %v856_v12 }
  0xe2   : > { %v6221_v19 = vunpack.c.l.b16 %v1335_v8  ;;  %v6236_v52 = vunpack.c.l.b16 %v1398_v35 }
  0xe3   : > { %v1103_v20 = vmax.f32 %v1033_v9, 0.0  ;;  %v946_v25 = vadd.f32 %v945_v13, %v857_v16  ;;  %v5594_v16 = vld [vmem:[%s8057_s1 + $0x170] sm:$0xff] }
  0xe4   : > { %2086 = vmatpush.bf16.msrb.mxu1 %v5594_v16 }
  0xe5   : > { %v1140_v28 = vrot.slane %v1103_v20, 7  ;;  %v1239_v30 = vrot.slane %v1103_v20, 1  ;;  %v1368_v53 = vpack.c.bf16 %v1103_v20, %v1103_v20 }
  0xe7   : > { %v1291_v37 = vsel %vm1265_vm1, %v1238_v58, %v1239_v30  ;;  %v1192_v38 = vsel %vm1166_vm0, %v1139_v57, %v1140_v28  ;;  %v6244_v6 = vunpack.c.l.b16 %v1368_v53  ;;  %v5529_v53 = vld [vmem:[#allocation2 + $0x70] sm:$0xff] }
  0xe8   : > { %v1034_v39 = vpop.f32.mrf.mxu2  ;;  %v1303_v44 = vsel %vm1232_vm2, %v1291_v37, 0.0  ;;  %v859_v46 = vpop.f32.mrf.mxu0  ;;  %v1205_v57 = vsel %vm1132_vm3, %v1192_v38, 0.0 }
  0xe9   : > { %v1035_v45 = vadd.f32 %v1034_v39, %v946_v25  ;;  %v948_v47 = vpop.f32.mrf.mxu1  ;;  %v1399_v49 = vpack.c.bf16 %v1303_v44, %v1303_v44  ;;  %v860_v50 = vadd.f32 %v6115_v62, %v859_v46  ;;  %v1336_v5 = vpack.c.bf16 %v1205_v57, %v1205_v57  ;;  %v5592_v57 = vld [vmem:[%s8057_s1 + $0x160] sm:$0xff] }
  0xeb   : > { %v1104_v55 = vmax.f32 %v1035_v45, 0.0  ;;  %v6238_v56 = vunpack.c.l.b16 %v1399_v49  ;;  %v949_v58 = vadd.f32 %v948_v47, %v860_v50  ;;  %898 = vmatmul.bf16.gmra.mxu0 %v5512_v42  ;;  %v6258_v38 = vunpack.c.l.b16 %v1336_v5  ;;  %v5593_v42 = vld [vmem:[%s8057_s1 + $0x168] sm:$0xff] }
  0xec   : > { %987 = vmatmul.bf16.gmra.mxu1 %v5528_v43  ;;  %v5513_v47 = vld [vmem:[#allocation2 + $0x68] sm:$0xff] }
  0xed   : > { %v1141_v59 = vrot.slane %v1104_v55, 7  ;;  %v1240_v61 = vrot.slane %v1104_v55, 1  ;;  %1076 = vmatmul.bf16.gmra.mxu2 %v5544_v48  ;;  %v1369_v4 = vpack.c.bf16 %v1104_v55, %v1104_v55  ;;  %2087 = vmatpush.bf16.msrb.mxu1 %v5593_v42  ;;  %v5584_v55 = vld [vmem:[%s8057_s1 + $0x120] sm:$0xff] }
  0xee   : > { %1999 = vmatpush.bf16.msrb.mxu0 %v5584_v55 }
  0xef   : > { %v6246_v8 = vunpack.c.l.b16 %v1369_v4  ;;  %v1290_v9 = vsel %vm1265_vm1, %v1239_v30, %v1240_v61  ;;  %v1191_v12 = vsel %vm1166_vm0, %v1140_v28, %v1141_v59 }
  0xf0   : > { %v1037_v13 = vpop.f32.mrf.mxu2  ;;  %v1337_v20 = vpack.c.bf16 %v1191_v12, %v1191_v12  ;;  %v861_v25 = vpop.f32.mrf.mxu0  ;;  %v1400_v46 = vpack.c.bf16 %v1290_v9, %v1290_v9 }
  0xf1   : > { %v1038_v22 = vadd.f32 %v1037_v13, %v949_v58  ;;  %v950_v32 = vpop.f32.mrf.mxu1  ;;  %v862_v37 = vadd.f32 %v6115_v62, %v861_v25  ;;  %2088 = vmatpush.bf16.msrb.mxu1 %v5592_v57 }
  0xf2   : > { %v6260_v30 = vunpack.c.l.b16 %v1337_v20  ;;  %v6280_v13 = vunpack.c.l.b16 %v1400_v46 }
  0xf3   : > { %v1105_v28 = vmax.f32 %v1038_v22, 0.0  ;;  %v951_v39 = vadd.f32 %v950_v32, %v862_v37  ;;  %v5583_v37 = vld [vmem:[%s8057_s1 + $0x118] sm:$0xff] }
  0xf4   : > { %2000 = vmatpush.bf16.msrb.mxu0 %v5583_v37  ;;  %v5581_v37 = vld [vmem:[%s8057_s1 + $0x108] sm:$0xff] }
  0xf5   : > { %v1142_v44 = vrot.slane %v1105_v28, 7  ;;  %v1241_v45 = vrot.slane %v1105_v28, 1  ;;  %v1370_v16 = vpack.c.bf16 %v1105_v28, %v1105_v28 }
  0xf7   : > { %v1289_v48 = vsel %vm1265_vm1, %v1240_v61, %v1241_v45  ;;  %v1190_v49 = vsel %vm1166_vm0, %v1141_v59, %v1142_v44  ;;  %v5545_v61 = vld [vmem:[#allocation2 + $0x78] sm:$0xff] }
  0xf8   : > { %v1039_v50 = vpop.f32.mrf.mxu2  ;;  %v1305_v58 = vsel %vm1232_vm2, %v1289_v48, 0.0  ;;  %v864_v5 = vpop.f32.mrf.mxu0  ;;  %v1207_v25 = vsel %vm1132_vm3, %v1190_v49, 0.0 }
  0xf9   : > { %v1040_v4 = vadd.f32 %v1039_v50, %v951_v39  ;;  %v953_v9 = vpop.f32.mrf.mxu1  ;;  %v1401_v12 = vpack.c.bf16 %v1305_v58, %v1305_v58  ;;  %v865_v59 = vadd.f32 %v6115_v62, %v864_v5  ;;  %v5591_v39 = vld [vmem:[%s8057_s1 + $0x158] sm:$0xff]  ;;  %v1338_v49 = vpack.c.bf16 %v1207_v25, %v1207_v25  ;;  %v5582_v58 = vld [vmem:[%s8057_s1 + $0x110] sm:$0xff] }
  0xfa   : > { %2089 = vmatpush.bf16.msrb.mxu1 %v5591_v39  ;;  %2001 = vmatpush.bf16.msrb.mxu0 %v5582_v58  ;;  %v5546_v39 = vld [vmem:[#allocation2 + $0x80] sm:$0xff] }
  0xfb   : > { %v1106_v20 = vmax.f32 %v1040_v4, 0.0  ;;  %v6282_v22 = vunpack.c.l.b16 %v1401_v12  ;;  %v954_v32 = vadd.f32 %v953_v9, %v865_v59  ;;  %903 = vmatmul.bf16.gmra.mxu0 %v5513_v47  ;;  %v6294_v47 = vunpack.c.l.b16 %v1370_v16  ;;  %v5590_v4 = vld [vmem:[%s8057_s1 + $0x150] sm:$0xff] }
  0xfc   : > { %992 = vmatmul.bf16.gmra.mxu1 %v5529_v53 }
  0xfd   : > { %v1143_v42 = vrot.slane %v1106_v20, 7  ;;  %v1242_v46 = vrot.slane %v1106_v20, 1  ;;  %1081 = vmatmul.bf16.gmra.mxu2 %v5545_v61  ;;  %v1371_v48 = vpack.c.bf16 %v1106_v20, %v1106_v20 }
  0xfe   : > { %2090 = vmatpush.bf16.msrb.mxu1 %v5590_v4  ;;  %2002 = vmatpush.bf16.msrb.mxu0 %v5581_v37 }
  0xff   : > { %v6296_v50 = vunpack.c.l.b16 %v1371_v48  ;;  %v1288_v53 = vsel %vm1265_vm1, %v1241_v45, %v1242_v46  ;;  %v1189_v55 = vsel %vm1166_vm0, %v1142_v44, %v1143_v42  ;;  %v6311_v44 = vunpack.c.l.b16 %v1338_v49  ;;  %v5514_v49 = vld [vmem:[#allocation2 + $0x70] sm:$0xff] }
 0x100   : > { %v1042_v57 = vpop.f32.mrf.mxu2  ;;  %v1339_v5 = vpack.c.bf16 %v1189_v55, %v1189_v55  ;;  %v866_v61 = vpop.f32.mrf.mxu0 }
 0x101   : > { %v1043_v9 = vadd.f32 %v1042_v57, %v954_v32  ;;  %v955_v12 = vpop.f32.mrf.mxu1  ;;  %v867_v45 = vadd.f32 %v6115_v62, %v866_v61  ;;  %v5589_v32 = vld [vmem:[%s8057_s1 + $0x148] sm:$0xff]  ;;  %v5588_v61 = vld [vmem:[%s8057_s1 + $0x140] sm:$0xff] }
 0x102   : > { %v6313_v16 = vunpack.c.l.b16 %v1339_v5  ;;  %2091 = vmatpush.bf16.msrb.mxu1 %v5589_v32  ;;  %v5530_v5 = vld [vmem:[#allocation2 + $0x78] sm:$0xff] }
 0x103   : > { %v1107_v20 = vmax.f32 %v1043_v9, 0.0  ;;  %v956_v25 = vadd.f32 %v955_v12, %v867_v45  ;;  %v5580_v9 = vld [vmem:[%s8057_s1 + $0x100] sm:$0xff]  ;;  %v1402_v45 = vpack.c.bf16 %v1288_v53, %v1288_v53 }
 0x104   : > { %2003 = vmatpush.bf16.msrb.mxu0 %v5580_v9 }
 0x105   : > { %v1144_v48 = vrot.slane %v1107_v20, 7  ;;  %v1243_v55 = vrot.slane %v1107_v20, 1  ;;  %v1372_v27 = vpack.c.bf16 %v1107_v20, %v1107_v20  ;;  %v6340_v53 = vunpack.c.l.b16 %v1402_v45 }
 0x106   : > { %2092 = vmatpush.bf16.msrb.mxu1 %v5588_v61 }
 0x107   : > { %v1287_v57 = vsel %vm1265_vm1, %v1242_v46, %v1243_v55  ;;  %v1188_v58 = vsel %vm1166_vm0, %v1143_v42, %v1144_v48 }
 0x108   : > { %v1044_v4 = vpop.f32.mrf.mxu2  ;;  %v1307_v12 = vsel %vm1232_vm2, %v1287_v57, 0.0  ;;  %v869_v32 = vpop.f32.mrf.mxu0  ;;  %v1209_v36 = vsel %vm1132_vm3, %v1188_v58, 0.0 }
 0x109   : > { %v1045_v37 = vadd.f32 %v1044_v4, %v956_v25  ;;  %v958_v46 = vpop.f32.mrf.mxu1  ;;  %v1403_v43 = vpack.c.bf16 %v1307_v12, %v1307_v12  ;;  %v870_v42 = vadd.f32 %v6115_v62, %v869_v32  ;;  %v1340_v61 = vpack.c.bf16 %v1209_v36, %v1209_v36  ;;  %v5515_v36 = vld [vmem:[#allocation2 + $0x78] sm:$0xff]  ;;  %v5547_v4 = vld [vmem:[#allocation2 + $0x88] sm:$0xff] }
 0x10a   : > { %v6348_v12 = vunpack.c.l.b16 %v1372_v27 }
 0x10b   : > { %v1108_v26 = vmax.f32 %v1045_v37, 0.0  ;;  %v6336_v29 = vunpack.c.l.b16 %v1403_v43  ;;  %v959_v59 = vadd.f32 %v958_v46, %v870_v42  ;;  %908 = vmatmul.bf16.gmra.mxu0 %v5514_v49 }
 0x10c   : > { %997 = vmatmul.bf16.gmra.mxu1 %v5530_v5 }
 0x10d   : > { %v1145_v25 = vrot.slane %v1108_v26, 7  ;;  %v1244_v57 = vrot.slane %v1108_v26, 1  ;;  %1086 = vmatmul.bf16.gmra.mxu2 %v5546_v39  ;;  %v1373_v9 = vpack.c.bf16 %v1108_v26, %v1108_v26  ;;  %v6355_v26 = vunpack.c.l.b16 %v1340_v61  ;;  %v5531_v61 = vld [vmem:[#allocation2 + $0x80] sm:$0xff] }
 0x10f   : > { %v1286_v43 = vsel %vm1265_vm1, %v1243_v55, %v1244_v57  ;;  %v1187_v58 = vsel %vm1166_vm0, %v1144_v48, %v1145_v25  ;;  %v6350_v49 = vunpack.c.l.b16 %v1373_v9 }
 0x110   : > { %v1047_v20 = vpop.f32.mrf.mxu2  ;;  %v1341_v5 = vpack.c.bf16 %v1187_v58, %v1187_v58  ;;  %v871_v37 = vpop.f32.mrf.mxu0  ;;  %v1404_v58 = vpack.c.bf16 %v1286_v43, %v1286_v43 }
 0x111   : > { %v1048_v45 = vadd.f32 %v1047_v20, %v959_v59  ;;  %v960_v39 = vpop.f32.mrf.mxu1  ;;  %v872_v32 = vadd.f32 %v6115_v62, %v871_v37 }
 0x112   : > { %v6357_v55 = vunpack.c.l.b16 %v1341_v5  ;;  %v6368_v43 = vunpack.c.l.b16 %v1404_v58 }
 0x113   : > { %v1109_v46 = vmax.f32 %v1048_v45, 0.0  ;;  %v961_v48 = vadd.f32 %v960_v39, %v872_v32 }
 0x115   : > { %v1146_v42 = vrot.slane %v1109_v46, 7  ;;  %v1245_v9 = vrot.slane %v1109_v46, 1  ;;  %v1374_v35 = vpack.c.bf16 %v1109_v46, %v1109_v46 }
 0x117   : > { %v1285_v59 = vsel %vm1265_vm1, %v1244_v57, %v1245_v9  ;;  %v1186_v20 = vsel %vm1166_vm0, %v1145_v25, %v1146_v42  ;;  %v6376_v58 = vunpack.c.l.b16 %v1374_v35 }
 0x118   : > { %v1049_v37 = vpop.f32.mrf.mxu2  ;;  %v1309_v5 = vsel %vm1232_vm2, %v1285_v59, 0.0  ;;  %v874_v39 = vpop.f32.mrf.mxu0  ;;  %v1211_v25 = vsel %vm1132_vm3, %v1186_v20, 0.0 }
 0x119   : > { %v1050_v45 = vadd.f32 %v1049_v37, %v961_v48  ;;  %v963_v32 = vpop.f32.mrf.mxu1  ;;  %v1405_v27 = vpack.c.bf16 %v1309_v5, %v1309_v5  ;;  %v875_v28 = vadd.f32 %v6115_v62, %v874_v39  ;;  %v1342_v39 = vpack.c.bf16 %v1211_v25, %v1211_v25 }
 0x11b   : > { %v1110_v57 = vmax.f32 %v1050_v45, 0.0  ;;  %v6370_v0 = vunpack.c.l.b16 %v1405_v27  ;;  %v964_v15 = vadd.f32 %v963_v32, %v875_v28  ;;  %913 = vmatmul.bf16.gmra.mxu0 %v5515_v36  ;;  %v6387_v35 = vunpack.c.l.b16 %v1342_v39 }
 0x11c   : > { %1002 = vmatmul.bf16.gmra.mxu1 %v5531_v61 }
 0x11d   : > { %v1147_v59 = vrot.slane %v1110_v57, 7  ;;  %v1246_v48 = vrot.slane %v1110_v57, 1  ;;  %1091 = vmatmul.bf16.gmra.mxu2 %v5547_v4  ;;  %v1375_v5 = vpack.c.bf16 %v1110_v57, %v1110_v57 }
 0x11f   : > { %v6378_v46 = vunpack.c.l.b16 %v1375_v5  ;;  %v1284_v27 = vsel %vm1265_vm1, %v1245_v9, %v1246_v48  ;;  %v1185_v28 = vsel %vm1166_vm0, %v1146_v42, %v1147_v59 }
 0x120   : > { %v1052_v36 = vpop.f32.mrf.mxu2  ;;  %v1343_v20 = vpack.c.bf16 %v1185_v28, %v1185_v28  ;;  %v876_v45 = vpop.f32.mrf.mxu0  ;;  %v1406_v28 = vpack.c.bf16 %v1284_v27, %v1284_v27 }
 0x121   : > { %v1053_v61 = vadd.f32 %v1052_v36, %v964_v15  ;;  %v965_v4 = vpop.f32.mrf.mxu1  ;;  %v877_v57 = vadd.f32 %v6115_v62, %v876_v45 }
 0x122   : > { %v6389_v25 = vunpack.c.l.b16 %v1343_v20  ;;  %v6400_v9 = vunpack.c.l.b16 %v1406_v28 }
 0x123   : > { %v1111_v5 = vmax.f32 %v1053_v61, 0.0  ;;  %v966_v37 = vadd.f32 %v965_v4, %v877_v57 }
 0x125   : > { %v1148_v42 = vrot.slane %v1111_v5, 7  ;;  %v1247_v60 = vrot.slane %v1111_v5, 1  ;;  %v1376_v21 = vpack.c.bf16 %v1111_v5, %v1111_v5 }
 0x127   : > { %v1283_v15 = vsel %vm1265_vm1, %v1246_v48, %v1247_v60  ;;  %v1184_v36 = vsel %vm1166_vm0, %v1147_v59, %v1148_v42 }
 0x128   : > { %v1054_v32 = vpop.f32.mrf.mxu2  ;;  %v1311_v39 = vsel %vm1232_vm2, %v1283_v15, 0.0  ;;  %v879_v45 = vpop.f32.mrf.mxu0  ;;  %v1213_v48 = vsel %vm1132_vm3, %v1184_v36, 0.0 }
 0x129   : > { %v1055_v20 = vadd.f32 %v1054_v32, %v966_v37  ;;  %v968_v61 = vpop.f32.mrf.mxu1  ;;  %v1407_v4 = vpack.c.bf16 %v1311_v39, %v1311_v39  ;;  %v880_v57 = vadd.f32 %v6115_v62, %v879_v45  ;;  %v8086_v37 = vpack.c.b16 %v6166_v2, %v6164_v63 }
 0x12a   : > { %v1344_v39 = vpack.c.bf16 %v1213_v48, %v1213_v48 }
 0x12b   : > { %v1112_v27 = vmax.f32 %v1055_v20, 0.0  ;;  %v6402_v7 = vunpack.c.l.b16 %v1407_v4  ;;  %v969_v59 = vadd.f32 %v968_v61, %v880_v57  ;;  %2004 = vmatmul.bf16.vlgmr.msrb.gmra.mxu0 %v1586_v40  ;;  %v6414_v20 = vunpack.c.l.b16 %v1376_v21 }
 0x12c   : > { %2093 = vmatmul.bf16.vlgmr.msrb.gmra.mxu1 %v8086_v37  ;;  %v6425_v21 = vunpack.c.l.b16 %v1344_v39 }
 0x12d   : > { %v1149_v32 = vrot.slane %v1112_v27, 7  ;;  %v1248_v15 = vrot.slane %v1112_v27, 1  ;;  %v1377_v28 = vpack.c.bf16 %v1112_v27, %v1112_v27 }
 0x12e   : > { %8087 = vst [vmem:[#allocation4_spill] sm:$0xff] %v6425_v21 }
 0x12f   : > { %v6416_v45 = vunpack.c.l.b16 %v1377_v28  ;;  %v1282_v36 = vsel %vm1265_vm1, %v1247_v60, %v1248_v15  ;;  %v1183_v31 = vsel %vm1166_vm0, %v1148_v42, %v1149_v32 }
 0x130   : > { %v1057_v33 = vpop.f32.mrf.mxu2  ;;  %v1345_v40 = vpack.c.bf16 %v1183_v31, %v1183_v31  ;;  %v881_v2 = vpop.f32.mrf.mxu0  ;;  %v1408_v31 = vpack.c.bf16 %v1282_v36, %v1282_v36 }
 0x131   : > { %v1058_v63 = vadd.f32 %v1057_v33, %v969_v59  ;;  %v970_v61 = vpop.f32.mrf.mxu1  ;;  %v882_v57 = vadd.f32 %v6115_v62, %v881_v2 }
 0x132   : > { %v6427_v27 = vunpack.c.l.b16 %v1345_v40  ;;  %v6438_v60 = vunpack.c.l.b16 %v1408_v31 }
 0x133   : > { %v1113_v48 = vmax.f32 %v1058_v63, 0.0  ;;  %v971_v37 = vadd.f32 %v970_v61, %v882_v57 }
 0x134   : > { %8088 = vst [vmem:[#allocation5_spill] sm:$0xff] %v6427_v27  ;;  %v8089_v27 = vpack.c.b16 %v6174_v11, %v6172_v10 }
 0x135   : > { %v1150_v42 = vrot.slane %v1113_v48, 7  ;;  %v1249_v28 = vrot.slane %v1113_v48, 1  ;;  %v1378_v5 = vpack.c.bf16 %v1113_v48, %v1113_v48 }
 0x137   : > { %v1281_v59 = vsel %vm1265_vm1, %v1248_v15, %v1249_v28  ;;  %v1182_v33 = vsel %vm1166_vm0, %v1149_v32, %v1150_v42 }
 0x138   : > { %v1059_v4 = vpop.f32.mrf.mxu2  ;;  %v1313_v39 = vsel %vm1232_vm2, %v1281_v59, 0.0  ;;  %v884_v2 = vpop.f32.mrf.mxu0  ;;  %v1215_v15 = vsel %vm1132_vm3, %v1182_v33, 0.0 }
 0x139   : > { %v1060_v40 = vadd.f32 %v1059_v4, %v971_v37  ;;  %v973_v63 = vpop.f32.mrf.mxu1  ;;  %v1409_v61 = vpack.c.bf16 %v1313_v39, %v1313_v39  ;;  %v885_v57 = vadd.f32 %v6115_v62, %v884_v2  ;;  %v8090_v4 = vpack.c.b16 %v6199_v54, %v6197_v51 }
 0x13a   : > { %v1346_v39 = vpack.c.bf16 %v1215_v15, %v1215_v15 }
 0x13b   : > { %v1114_v36 = vmax.f32 %v1060_v40, 0.0  ;;  %v6440_v21 = vunpack.c.l.b16 %v1409_v61  ;;  %v974_v32 = vadd.f32 %v973_v63, %v885_v57  ;;  %2009 = vmatmul.bf16.gmra.mxu0 %v8089_v27  ;;  %v6452_v40 = vunpack.c.l.b16 %v1378_v5 }
 0x13c   : > { %2098 = vmatmul.bf16.gmra.mxu1 %v8090_v4  ;;  %v6463_v5 = vunpack.c.l.b16 %v1346_v39 }
 0x13d   : > { %v1151_v37 = vrot.slane %v1114_v36, 7  ;;  %v1250_v59 = vrot.slane %v1114_v36, 1  ;;  %v1379_v31 = vpack.c.bf16 %v1114_v36, %v1114_v36 }
 0x13e   : > { %8091 = vst [vmem:[#allocation6_spill] sm:$0xff] %v6463_v5 }
 0x13f   : > { %v6454_v2 = vunpack.c.l.b16 %v1379_v31  ;;  %v1280_v33 = vsel %vm1265_vm1, %v1249_v28, %v1250_v59  ;;  %v1181_v10 = vsel %vm1166_vm0, %v1150_v42, %v1151_v37 }
 0x140   : > { %v1062_v11 = vpop.f32.mrf.mxu2  ;;  %v1347_v51 = vpack.c.bf16 %v1181_v10, %v1181_v10  ;;  %v886_v27 = vpop.f32.mrf.mxu0  ;;  %v1410_v10 = vpack.c.bf16 %v1280_v33, %v1280_v33 }
 0x141   : > { %v1063_v54 = vadd.f32 %v1062_v11, %v974_v32  ;;  %v975_v63 = vpop.f32.mrf.mxu1  ;;  %v887_v57 = vadd.f32 %v6115_v62, %v886_v27 }
 0x142   : > { %v6465_v36 = vunpack.c.l.b16 %v1347_v51  ;;  %v6476_v28 = vunpack.c.l.b16 %v1410_v10 }
 0x143   : > { %v1115_v15 = vmax.f32 %v1063_v54, 0.0  ;;  %v976_v4 = vadd.f32 %v975_v63, %v887_v57 }
 0x144   : > { %8092 = vst [vmem:[#allocation7_spill] sm:$0xff] %v6465_v36  ;;  %v8093_v36 = vpack.c.b16 %v6210_v3, %v6208_v1 }
 0x145   : > { %v1152_v42 = vrot.slane %v1115_v15, 7  ;;  %v1251_v31 = vrot.slane %v1115_v15, 1  ;;  %v1380_v48 = vpack.c.bf16 %v1115_v15, %v1115_v15 }
 0x147   : > { %v1279_v32 = vsel %vm1265_vm1, %v1250_v59, %v1251_v31  ;;  %v1180_v11 = vsel %vm1166_vm0, %v1151_v37, %v1152_v42 }
 0x148   : > { %v1064_v61 = vpop.f32.mrf.mxu2  ;;  %v1315_v39 = vsel %vm1232_vm2, %v1279_v32, 0.0  ;;  %v889_v27 = vpop.f32.mrf.mxu0  ;;  %v1217_v59 = vsel %vm1132_vm3, %v1180_v11, 0.0 }
 0x149   : > { %v1065_v51 = vadd.f32 %v1064_v61, %v976_v4  ;;  %v978_v54 = vpop.f32.mrf.mxu1  ;;  %v1411_v63 = vpack.c.bf16 %v1315_v39, %v1315_v39  ;;  %v890_v57 = vadd.f32 %v6115_v62, %v889_v27  ;;  %v8094_v61 = vpack.c.b16 %v6238_v56, %v6236_v52 }
 0x14a   : > { %v1348_v39 = vpack.c.bf16 %v1217_v59, %v1217_v59 }
 0x14b   : > { %v1116_v33 = vmax.f32 %v1065_v51, 0.0  ;;  %v6478_v5 = vunpack.c.l.b16 %v1411_v63  ;;  %v979_v37 = vadd.f32 %v978_v54, %v890_v57  ;;  %2014 = vmatmul.bf16.gmra.mxu0 %v8093_v36  ;;  %v6490_v51 = vunpack.c.l.b16 %v1380_v48 }
 0x14c   : > { %2103 = vmatmul.bf16.gmra.mxu1 %v8094_v61  ;;  %v6501_v48 = vunpack.c.l.b16 %v1348_v39 }
 0x14d   : > { %v1153_v4 = vrot.slane %v1116_v33, 7  ;;  %v1252_v32 = vrot.slane %v1116_v33, 1  ;;  %v1381_v10 = vpack.c.bf16 %v1116_v33, %v1116_v33 }
 0x14e   : > { %8095 = vst [vmem:[#allocation8_spill] sm:$0xff] %v6501_v48 }
 0x14f   : > { %v6492_v27 = vunpack.c.l.b16 %v1381_v10  ;;  %v1278_v11 = vsel %vm1265_vm1, %v1251_v31, %v1252_v32  ;;  %v1179_v1 = vsel %vm1166_vm0, %v1152_v42, %v1153_v4 }
 0x150   : > { %v1067_v3 = vpop.f32.mrf.mxu2  ;;  %v1349_v52 = vpack.c.bf16 %v1179_v1, %v1179_v1  ;;  %v891_v36 = vpop.f32.mrf.mxu0  ;;  %v1412_v1 = vpack.c.bf16 %v1278_v11, %v1278_v11 }
 0x151   : > { %v1068_v56 = vadd.f32 %v1067_v3, %v979_v37  ;;  %v980_v54 = vpop.f32.mrf.mxu1  ;;  %v892_v57 = vadd.f32 %v6115_v62, %v891_v36 }
 0x152   : > { %v6503_v33 = vunpack.c.l.b16 %v1349_v52  ;;  %v6514_v31 = vunpack.c.l.b16 %v1412_v1 }
 0x153   : > { %v1117_v59 = vmax.f32 %v1068_v56, 0.0  ;;  %v981_v61 = vadd.f32 %v980_v54, %v892_v57 }
 0x154   : > { %8096 = vst [vmem:[#allocation9_spill] sm:$0xff] %v6503_v33  ;;  %v8097_v33 = vpack.c.b16 %v6246_v8, %v6244_v6 }
 0x155   : > { %v1154_v42 = vrot.slane %v1117_v59, 7  ;;  %v1253_v10 = vrot.slane %v1117_v59, 1  ;;  %v1382_v15 = vpack.c.bf16 %v1117_v59, %v1117_v59 }
 0x157   : > { %v1277_v37 = vsel %vm1265_vm1, %v1252_v32, %v1253_v10  ;;  %v1178_v3 = vsel %vm1166_vm0, %v1153_v4, %v1154_v42 }
 0x158   : > { %v1069_v63 = vpop.f32.mrf.mxu2  ;;  %v1317_v39 = vsel %vm1232_vm2, %v1277_v37, 0.0  ;;  %v894_v36 = vpop.f32.mrf.mxu0  ;;  %v1219_v32 = vsel %vm1132_vm3, %v1178_v3, 0.0 }
 0x159   : > { %v1070_v52 = vadd.f32 %v1069_v63, %v981_v61  ;;  %v983_v56 = vpop.f32.mrf.mxu1  ;;  %v1413_v54 = vpack.c.bf16 %v1317_v39, %v1317_v39  ;;  %v895_v57 = vadd.f32 %v6115_v62, %v894_v36  ;;  %v8098_v63 = vpack.c.b16 %v6282_v22, %v6280_v13 }
 0x15a   : > { %v1350_v37 = vpack.c.bf16 %v1219_v32, %v1219_v32  ;;  %v6528_v39 = vunpack.c.l.b16 %v1382_v15  ;;  %v6541_v15 = vld [vmem:[%s8058_s2] ss:$0 sm:$0xff] }
 0x15b   : > { %v1118_v11 = vmax.f32 %v1070_v52, 0.0  ;;  %v6516_v48 = vunpack.c.l.b16 %v1413_v54  ;;  %v984_v4 = vadd.f32 %v983_v56, %v895_v57  ;;  %2019 = vmatmul.bf16.gmra.mxu0 %v8097_v33 }
 0x15c   : > { %2108 = vmatmul.bf16.gmra.mxu1 %v8098_v63  ;;  %v6544_v57 = vunpack.c.l.b16 %v1350_v37 }
 0x15d   : > { %v1155_v61 = vrot.slane %v1118_v11, 7  ;;  %v1254_v62 = vrot.slane %v1118_v11, 1  ;;  %v1383_v1 = vpack.c.bf16 %v1118_v11, %v1118_v11 }
 0x15e   : > { %8099 = vst [vmem:[#allocation10_spill] sm:$0xff] %v6544_v57 }
 0x15f   : > { %v6530_v52 = vunpack.c.l.b16 %v1383_v1  ;;  %v1276_v3 = vsel %vm1265_vm1, %v1253_v10, %v1254_v62  ;;  %v1177_v6 = vsel %vm1166_vm0, %v1154_v42, %v1155_v61 }
 0x160   : > { %v1072_v8 = vpop.f32.mrf.mxu2  ;;  %v1351_v13 = vpack.c.bf16 %v1177_v6, %v1177_v6  ;;  %v896_v33 = vpop.f32.mrf.mxu0  ;;  %v1414_v1 = vpack.c.bf16 %v1276_v3, %v1276_v3 }
 0x161   : > { %v1073_v22 = vadd.f32 %v1072_v8, %v984_v4  ;;  %v985_v36 = vpop.f32.mrf.mxu1  ;;  %v897_v54 = vadd.f32 %v6541_v15, %v896_v33 }
 0x162   : > { %v6546_v10 = vunpack.c.l.b16 %v1351_v13  ;;  %v6557_v32 = vunpack.c.l.b16 %v1414_v1 }
 0x163   : > { %v1119_v42 = vmax.f32 %v1073_v22, 0.0  ;;  %v986_v11 = vadd.f32 %v985_v36, %v897_v54 }
 0x164   : > { %8100 = vst [vmem:[#allocation11_spill] sm:$0xff] %v6546_v10  ;;  %v8101_v10 = vpack.c.b16 %v6296_v50, %v6294_v47 }
 0x165   : > { %v1156_v4 = vrot.slane %v1119_v42, 7  ;;  %v1255_v63 = vrot.slane %v1119_v42, 1  ;;  %v1384_v59 = vpack.c.bf16 %v1119_v42, %v1119_v42 }
 0x167   : > { %v1275_v6 = vsel %vm1265_vm1, %v1254_v62, %v1255_v63  ;;  %v1176_v8 = vsel %vm1166_vm0, %v1155_v61, %v1156_v4 }
 0x168   : > { %v1074_v56 = vpop.f32.mrf.mxu2  ;;  %v1319_v37 = vsel %vm1232_vm2, %v1275_v6, 0.0  ;;  %v899_v33 = vpop.f32.mrf.mxu0  ;;  %v1221_v62 = vsel %vm1132_vm3, %v1176_v8, 0.0 }
 0x169   : > { %v1075_v13 = vadd.f32 %v1074_v56, %v986_v11  ;;  %v988_v22 = vpop.f32.mrf.mxu1  ;;  %v1415_v36 = vpack.c.bf16 %v1319_v37, %v1319_v37  ;;  %v900_v54 = vadd.f32 %v6541_v15, %v899_v33  ;;  %v8102_v56 = vpack.c.b16 %v6336_v29, %v6340_v53 }
 0x16a   : > { %v1352_v37 = vpack.c.bf16 %v1221_v62, %v1221_v62 }
 0x16b   : > { %v1120_v3 = vmax.f32 %v1075_v13, 0.0  ;;  %v6559_v57 = vunpack.c.l.b16 %v1415_v36  ;;  %v989_v61 = vadd.f32 %v988_v22, %v900_v54  ;;  %2024 = vmatmul.bf16.gmra.mxu0 %v8101_v10  ;;  %v6571_v13 = vunpack.c.l.b16 %v1384_v59 }
 0x16c   : > { %2113 = vmatmul.bf16.gmra.mxu1 %v8102_v56  ;;  %v6582_v59 = vunpack.c.l.b16 %v1352_v37 }
 0x16d   : > { %v1157_v11 = vrot.slane %v1120_v3, 7  ;;  %v1256_v6 = vrot.slane %v1120_v3, 1  ;;  %v1385_v1 = vpack.c.bf16 %v1120_v3, %v1120_v3 }
 0x16e   : > { %8103 = vst [vmem:[#allocation12_spill] sm:$0xff] %v6582_v59 }
 0x16f   : > { %v6573_v33 = vunpack.c.l.b16 %v1385_v1  ;;  %v1274_v8 = vsel %vm1265_vm1, %v1255_v63, %v1256_v6  ;;  %v1175_v47 = vsel %vm1166_vm0, %v1156_v4, %v1157_v11 }
 0x170   : > { %v1077_v50 = vpop.f32.mrf.mxu2  ;;  %v1353_v29 = vpack.c.bf16 %v1175_v47, %v1175_v47  ;;  %v901_v10 = vpop.f32.mrf.mxu0  ;;  %v1416_v47 = vpack.c.bf16 %v1274_v8, %v1274_v8 }
 0x171   : > { %v1078_v53 = vadd.f32 %v1077_v50, %v989_v61  ;;  %v990_v22 = vpop.f32.mrf.mxu1  ;;  %v902_v54 = vadd.f32 %v6541_v15, %v901_v10  ;;  %v5579_v61 = vld [vmem:[%s8057_s1 + $0xf8] sm:$0xff] }
 0x172   : > { %v6584_v3 = vunpack.c.l.b16 %v1353_v29  ;;  %1907 = vmatpush.bf16.msra.mxu3 %v5579_v61  ;;  %v6598_v36 = vunpack.c.l.b16 %v1416_v47  ;;  %v8105_v61 = vpack.c.b16 %v6350_v49, %v6348_v12  ;;  %v8106_v47 = vpack.c.b16 %v6370_v0, %v6368_v43 }
 0x173   : > { %v1121_v62 = vmax.f32 %v1078_v53, 0.0  ;;  %v991_v56 = vadd.f32 %v990_v22, %v902_v54 }
 0x174   : > { %8104 = vst [vmem:[#allocation13_spill] sm:$0xff] %v6584_v3 }
 0x175   : > { %v1158_v4 = vrot.slane %v1121_v62, 7  ;;  %v1257_v1 = vrot.slane %v1121_v62, 1  ;;  %v1386_v42 = vpack.c.bf16 %v1121_v62, %v1121_v62 }
 0x177   : > { %v1273_v50 = vsel %vm1265_vm1, %v1256_v6, %v1257_v1  ;;  %v1174_v37 = vsel %vm1166_vm0, %v1157_v11, %v1158_v4  ;;  %v5578_v6 = vld [vmem:[%s8057_s1 + $0xf0] sm:$0xff] }
 0x178   : > { %v1079_v29 = vpop.f32.mrf.mxu2  ;;  %v1321_v53 = vsel %vm1232_vm2, %v1273_v50, 0.0  ;;  %v904_v22 = vpop.f32.mrf.mxu0  ;;  %v1223_v50 = vsel %vm1132_vm3, %v1174_v37, 0.0  ;;  %1908 = vmatpush.bf16.msra.mxu3 %v5578_v6  ;;  %v5577_v37 = vld [vmem:[%s8057_s1 + $0xe8] sm:$0xff] }
 0x179   : > { %v1080_v10 = vadd.f32 %v1079_v29, %v991_v56  ;;  %v993_v54 = vpop.f32.mrf.mxu1  ;;  %v1417_v63 = vpack.c.bf16 %v1321_v53, %v1321_v53  ;;  %v905_v8 = vadd.f32 %v6541_v15, %v904_v22  ;;  %v6618_v22 = vunpack.c.l.b16 %v1386_v42 }
 0x17b   : > { %v1122_v59 = vmax.f32 %v1080_v10, 0.0  ;;  %v6603_v11 = vunpack.c.l.b16 %v1417_v63  ;;  %v994_v56 = vadd.f32 %v993_v54, %v905_v8  ;;  %2029 = vmatmul.bf16.gmra.mxu0 %v8105_v61  ;;  %v1354_v10 = vpack.c.bf16 %v1223_v50, %v1223_v50 }
 0x17c   : > { %2118 = vmatmul.bf16.gmra.mxu1 %v8106_v47  ;;  %1909 = vmatpush.bf16.msra.mxu3 %v5577_v37 }
 0x17d   : > { %v1159_v62 = vrot.slane %v1122_v59, 7  ;;  %v1258_v29 = vrot.slane %v1122_v59, 1  ;;  %v1387_v63 = vpack.c.bf16 %v1122_v59, %v1122_v59  ;;  %v6629_v61 = vunpack.c.l.b16 %v1354_v10  ;;  %v5575_v10 = vld [vmem:[%s8057_s1 + $0xd8] sm:$0xff] }
 0x17f   : > { %v6620_v12 = vunpack.c.l.b16 %v1387_v63  ;;  %v1272_v0 = vsel %vm1265_vm1, %v1257_v1, %v1258_v29  ;;  %v1173_v49 = vsel %vm1166_vm0, %v1158_v4, %v1159_v62  ;;  %8107 = vst [vmem:[#allocation14_spill] sm:$0xff] %v6629_v61  ;;  %v5576_v4 = vld [vmem:[%s8057_s1 + $0xe0] sm:$0xff] }
 0x180   : > { %v1082_v43 = vpop.f32.mrf.mxu2  ;;  %v1355_v54 = vpack.c.bf16 %v1173_v49, %v1173_v49  ;;  %v906_v6 = vpop.f32.mrf.mxu0  ;;  %1910 = vmatpush.bf16.msra.mxu3 %v5576_v4 }
 0x181   : > { %v1083_v8 = vadd.f32 %v1082_v43, %v994_v56  ;;  %v995_v59 = vpop.f32.mrf.mxu1  ;;  %v907_v42 = vadd.f32 %v6541_v15, %v906_v6  ;;  %v1418_v43 = vpack.c.bf16 %v1272_v0, %v1272_v0 }
 0x182   : > { %v6631_v47 = vunpack.c.l.b16 %v1355_v54 }
 0x183   : > { %v1123_v63 = vmax.f32 %v1083_v8, 0.0  ;;  %v996_v1 = vadd.f32 %v995_v59, %v907_v42  ;;  %v6648_v53 = vunpack.c.l.b16 %v1418_v43 }
 0x184   : > { %8108 = vst [vmem:[#allocation15_spill] sm:$0xff] %v6631_v47  ;;  %1911 = vmatpush.bf16.msra.mxu3 %v5575_v10  ;;  %v8109_v10 = vpack.c.b16 %v6378_v46, %v6376_v58 }
 0x185   : > { %v1160_v49 = vrot.slane %v1123_v63, 7  ;;  %v1259_v37 = vrot.slane %v1123_v63, 1  ;;  %v1388_v61 = vpack.c.bf16 %v1123_v63, %v1123_v63 }
 0x187   : > { %v1271_v54 = vsel %vm1265_vm1, %v1258_v29, %v1259_v37  ;;  %v1172_v8 = vsel %vm1166_vm0, %v1159_v62, %v1160_v49  ;;  %v5574_v29 = vld [vmem:[%s8057_s1 + $0xd0] sm:$0xff] }
 0x188   : > { %v1084_v6 = vpop.f32.mrf.mxu2  ;;  %v1323_v59 = vsel %vm1232_vm2, %v1271_v54, 0.0  ;;  %v909_v56 = vpop.f32.mrf.mxu0  ;;  %v1225_v54 = vsel %vm1132_vm3, %v1172_v8, 0.0  ;;  %1912 = vmatpush.bf16.msra.mxu3 %v5574_v29 }
 0x189   : > { %v1085_v42 = vadd.f32 %v1084_v6, %v996_v1  ;;  %v998_v50 = vpop.f32.mrf.mxu1  ;;  %v1419_v4 = vpack.c.bf16 %v1323_v59, %v1323_v59  ;;  %v910_v0 = vadd.f32 %v6541_v15, %v909_v56  ;;  %v8110_v56 = vpack.c.b16 %v6402_v7, %v6400_v9  ;;  %v5573_v6 = vld [vmem:[%s8057_s1 + $0xc8] sm:$0xff] }
 0x18b   : > { %v1124_v47 = vmax.f32 %v1085_v42, 0.0  ;;  %v6653_v62 = vunpack.c.l.b16 %v1419_v4  ;;  %v999_v1 = vadd.f32 %v998_v50, %v910_v0  ;;  %2034 = vmatmul.bf16.gmra.mxu0 %v8109_v10  ;;  %v1356_v50 = vpack.c.bf16 %v1225_v54, %v1225_v54 }
 0x18c   : > { %2123 = vmatmul.bf16.gmra.mxu1 %v8110_v56  ;;  %v6668_v42 = vunpack.c.l.b16 %v1388_v61  ;;  %1913 = vmatpush.bf16.msra.mxu3 %v5573_v6  ;;  %v5651_v61 = vld [vmem:[%s8057_s1 + $0x1b8] sm:$0xff] }
 0x18d   : > { %v1161_v63 = vrot.slane %v1124_v47, 7  ;;  %v1260_v43 = vrot.slane %v1124_v47, 1  ;;  %v1389_v8 = vpack.c.bf16 %v1124_v47, %v1124_v47  ;;  %v5572_v47 = vld [vmem:[%s8057_s1 + $0xc0] sm:$0xff]  ;;  %2919 = vmatpush.bf16.msrb.mxu2 %v5651_v61 }
 0x18f   : > { %v6670_v58 = vunpack.c.l.b16 %v1389_v8  ;;  %v1270_v7 = vsel %vm1265_vm1, %v1259_v37, %v1260_v43  ;;  %v1171_v46 = vsel %vm1166_vm0, %v1160_v49, %v1161_v63  ;;  %v6685_v49 = vunpack.c.l.b16 %v1356_v50  ;;  %v5659_v37 = vld [vmem:[%s8057_s1 + $0x1f8] sm:$0xff] }
 0x190   : > { %v1087_v9 = vpop.f32.mrf.mxu2  ;;  %v1357_v4 = vpack.c.bf16 %v1171_v46, %v1171_v46  ;;  %v911_v29 = vpop.f32.mrf.mxu0  ;;  %1914 = vmatpush.bf16.msra.mxu3 %v5572_v47  ;;  %v1420_v59 = vpack.c.bf16 %v1270_v7, %v1270_v7 }
 0x191   : > { %v1088_v0 = vadd.f32 %v1087_v9, %v999_v1  ;;  %v1000_v10 = vpop.f32.mrf.mxu1  ;;  %v912_v54 = vadd.f32 %v6541_v15, %v911_v29  ;;  %8111 = vst [vmem:[#allocation16_spill] sm:$0xff] %v6685_v49 }
 0x192   : > { %v6687_v56 = vunpack.c.l.b16 %v1357_v4  ;;  %v6701_v47 = vunpack.c.l.b16 %v1420_v59  ;;  %v5667_v59 = vld [vmem:[%s8057_s1 + $0x238] sm:$0xff] }
 0x193   : > { %v1125_v1 = vmax.f32 %v1088_v0, 0.0  ;;  %v1001_v6 = vadd.f32 %v1000_v10, %v912_v54  ;;  %3097 = vmatpush.bf16.msra.mxu0 %v5667_v59 }
 0x194   : > { %8112 = vst [vmem:[#allocation17_spill] sm:$0xff] %v6687_v56  ;;  %3008 = vmatpush.bf16.msrb.mxu3 %v5659_v37  ;;  %v8114_v37 = vpack.c.b16 %v6440_v21, %v6438_v60 }
 0x195   : > { %v1162_v46 = vrot.slane %v1125_v1, 7  ;;  %v1261_v9 = vrot.slane %v1125_v1, 1  ;;  %v1390_v8 = vpack.c.bf16 %v1125_v1, %v1125_v1 }
 0x197   : > { %v1269_v50 = vsel %vm1265_vm1, %v1260_v43, %v1261_v9  ;;  %v1170_v4 = vsel %vm1166_vm0, %v1161_v63, %v1162_v46 }
 0x198   : > { %v1089_v0 = vpop.f32.mrf.mxu2  ;;  %v1325_v29 = vsel %vm1232_vm2, %v1269_v50, 0.0  ;;  %v914_v61 = vpop.f32.mrf.mxu0  ;;  %v1227_v63 = vsel %vm1132_vm3, %v1170_v4, 0.0  ;;  %v8113_v50 = vpack.c.b16 %v6416_v45, %v6414_v20  ;;  %v6718_v4 = vunpack.c.l.b16 %v1390_v8 }
 0x199   : > { %v1090_v10 = vadd.f32 %v1089_v0, %v1001_v6  ;;  %v1421_v54 = vpack.c.bf16 %v1325_v29, %v1325_v29  ;;  %v915_v7 = vadd.f32 %v6541_v15, %v914_v61  ;;  %v1003_v56 = vpop.f32.mrf.mxu1 }
 0x19b   : > { %v1126_v49 = vmax.f32 %v1090_v10, 0.0  ;;  %v6703_v3 = vunpack.c.l.b16 %v1421_v54  ;;  %v1004_v43 = vadd.f32 %v1003_v56, %v915_v7  ;;  %2039 = vmatmul.bf16.gmra.mxu0 %v8113_v50  ;;  %v1358_v56 = vpack.c.bf16 %v1227_v63, %v1227_v63 }
 0x19c   : > { %2128 = vmatmul.bf16.gmra.mxu1 %v8114_v37 }
 0x19d   : > { %v1163_v1 = vrot.slane %v1126_v49, 7  ;;  %v1262_v6 = vrot.slane %v1126_v49, 1  ;;  %v1391_v29 = vpack.c.bf16 %v1126_v49, %v1126_v49  ;;  %v6728_v49 = vunpack.c.l.b16 %v1358_v56 }
 0x19f   : > { %v6720_v20 = vunpack.c.l.b16 %v1391_v29  ;;  %v1268_v45 = vsel %vm1265_vm1, %v1261_v9, %v1262_v6  ;;  %v1169_v21 = vsel %vm1166_vm0, %v1162_v46, %v1163_v1 }
 0x1a0   : > { %v1092_v60 = vpop.f32.mrf.mxu2  ;;  %v1359_v10 = vpack.c.bf16 %v1169_v21, %v1169_v21  ;;  %v916_v54 = vpop.f32.mrf.mxu0  ;;  %v1422_v21 = vpack.c.bf16 %v1268_v45, %v1268_v45 }
 0x1a1   : > { %v1093_v61 = vadd.f32 %v1092_v60, %v1004_v43  ;;  %v917_v50 = vadd.f32 %v6541_v15, %v916_v54  ;;  %v1005_v46 = vpop.f32.mrf.mxu1 }
 0x1a2   : > { %v6730_v63 = vunpack.c.l.b16 %v1359_v10  ;;  %v6741_v9 = vunpack.c.l.b16 %v1422_v21 }
 0x1a3   : > { %v1127_v8 = vmax.f32 %v1093_v61, 0.0  ;;  %v1006_v29 = vadd.f32 %v1005_v46, %v917_v50 }
 0x1a5   : > { %v1164_v37 = vrot.slane %v1127_v8, 7  ;;  %v1263_v59 = vrot.slane %v1127_v8, 1  ;;  %v1392_v54 = vpack.c.bf16 %v1127_v8, %v1127_v8 }
 0x1a7   : > { %v1267_v43 = vsel %vm1265_vm1, %v1262_v6, %v1263_v59  ;;  %v1168_v56 = vsel %vm1166_vm0, %v1163_v1, %v1164_v37  ;;  %v8115_v6 = vpack.c.b16 %v6454_v2, %v6452_v40  ;;  %v8116_v1 = vpack.c.b16 %v6478_v5, %v6476_v28 }
 0x1a8   : > { %v1094_v60 = vpop.f32.mrf.mxu2  ;;  %v1327_v10 = vsel %vm1232_vm2, %v1267_v43, 0.0  ;;  %v1229_v50 = vsel %vm1132_vm3, %v1168_v56, 0.0  ;;  %v1331_v43 = vpack.c.bf16 %v6140_v34, %v6140_v34  ;;  %v6757_v21 = vunpack.c.l.b16 %v1392_v54 }
 0x1a9   : > { %v1095_v61 = vadd.f32 %v1094_v60, %v1006_v29  ;;  %v1423_v15 = vpack.c.bf16 %v1327_v10, %v1327_v10  ;;  %v1360_v56 = vpack.c.bf16 %v1229_v50, %v1229_v50  ;;  %v8117_v60 = vrot.slane %v6120_v14, 7 }
 0x1aa   : > { %v8118_v28 = vrot.slane %v6120_v14, 1 }
 0x1ab   : > { %v1128_v7 = vmax.f32 %v1095_v61, 0.0  ;;  %v6743_v0 = vunpack.c.l.b16 %v1423_v15  ;;  %2044 = vmatmul.bf16.gmra.mxu0 %v8115_v6 }
 0x1ac   : > { %2133 = vmatmul.bf16.gmra.mxu1 %v8116_v1  ;;  %v1459_v1 = vunpack.c.l.b16 %v1331_v43  ;;  %v5658_v43 = vld [vmem:[%s8057_s1 + $0x1f0] sm:$0xff] }
 0x1ad   : > { %v1165_v45 = vrot.slane %v1128_v7, 7  ;;  %v1264_v46 = vrot.slane %v1128_v7, 1  ;;  %v1696_v8 = vpack.c.b16 %v6743_v0, %v6741_v9  ;;  %v1393_v29 = vpack.c.bf16 %v1128_v7, %v1128_v7  ;;  %3009 = vmatpush.bf16.msrb.mxu3 %v5658_v43  ;;  %v5655_v0 = vld [vmem:[%s8057_s1 + $0x1d8] sm:$0xff] }
 0x1ae   : > { %v8136_v43 = vld [vmem:[#allocation5_spill] sm:$0xff] }
 0x1af   : > { %v1198_v40 = vsel %vm1166_vm0, %v1165_v45, %v8117_v60  ;;  %v6763_v2 = vunpack.c.l.b16 %v1393_v29  ;;  %v1266_v5 = vsel %vm1265_vm1, %v1263_v59, %v1264_v46  ;;  %v1297_v7 = vsel %vm1265_vm1, %v1264_v46, %v8118_v28  ;;  %v5650_v59 = vld [vmem:[%s8057_s1 + $0x1b0] sm:$0xff] }
 0x1b0   : > { %v1199_v34 = vsel %vm1132_vm3, %v1198_v40, 0.0  ;;  %v1329_v10 = vsel %vm1232_vm2, %v1297_v7, 0.0  ;;  %v1424_v61 = vpack.c.bf16 %v1266_v5, %v1266_v5  ;;  %v1167_v15 = vsel %vm1166_vm0, %v1164_v37, %v1165_v45  ;;  %2920 = vmatpush.bf16.msrb.mxu2 %v5650_v59 }
 0x1b1   : > { %v1330_v54 = vpack.c.bf16 %v1199_v34, %v1199_v34  ;;  %v1601_v14 = vpack.c.b16 %v6763_v2, %v6757_v21  ;;  %v1425_v50 = vpack.c.bf16 %v1329_v10, %v1329_v10  ;;  %v1361_v6 = vpack.c.bf16 %v1167_v15, %v1167_v15  ;;  %v5666_v34 = vld [vmem:[%s8057_s1 + $0x230] sm:$0xff]  ;;  %v6806_v10 = vpop.f32.mrf.mxu0  ;;  %v8139_v21 = vld [vmem:[#allocation7_spill] sm:$0xff]  ;;  %v8140_v2 = vld [vmem:[#allocation6_spill] sm:$0xff] }
 0x1b2   : > { %v6782_v46 = vunpack.c.l.b16 %v1424_v61  ;;  %v6786_v40 = vunpack.c.l.b16 %v1360_v56  ;;  %v8119_v7 = vpack.c.b16 %v6492_v27, %v6490_v51  ;;  %v8120_v56 = vpack.c.b16 %v6516_v48, %v6514_v31  ;;  %3098 = vmatpush.bf16.msra.mxu0 %v5666_v34  ;;  %v5649_v48 = vld [vmem:[%s8057_s1 + $0x1a8] sm:$0xff]  ;;  %v6822_v31 = vpop.f32.mrf.mxu1  ;;  %v5597_v34 = vld [vmem:[#allocation3 + $0x8] sm:$0xff] }
 0x1b3   : > { %v1458_v29 = vunpack.c.l.b16 %v1330_v54  ;;  %v6784_v60 = vunpack.c.l.b16 %v1425_v50  ;;  %v6788_v37 = vunpack.c.l.b16 %v1361_v6  ;;  %v8121_v61 = vpack.c.b16 %v6185_v24, %v6183_v23  ;;  %v5657_v24 = vld [vmem:[%s8057_s1 + $0x1e8] sm:$0xff] }
 0x1b4   : > { %v8122_v51 = vpack.c.b16 %v6530_v52, %v6528_v39  ;;  %v8123_v27 = vpack.c.b16 %v6559_v57, %v6557_v32  ;;  %2921 = vmatpush.bf16.msrb.mxu2 %v5649_v48  ;;  %v8124_v23 = vpack.c.b16 %v6221_v19, %v6219_v17  ;;  %3010 = vmatpush.bf16.msrb.mxu3 %v5657_v24  ;;  %v5665_v57 = vld [vmem:[%s8057_s1 + $0x228] sm:$0xff]  ;;  %v5654_v48 = vld [vmem:[%s8057_s1 + $0x1d0] sm:$0xff] }
 0x1b5   : > { %v1490_v45 = vpack.c.b16 %v1459_v1, %v1458_v29  ;;  %v1697_v5 = vpack.c.b16 %v6784_v60, %v6782_v46  ;;  %v1505_v28 = vpack.c.b16 %v6788_v37, %v6786_v40  ;;  %v8125_v39 = vpack.c.b16 %v6573_v33, %v6571_v13 }
 0x1b6   : > { %v8126_v52 = vpack.c.b16 %v6603_v11, %v6598_v36  ;;  %3099 = vmatpush.bf16.msra.mxu0 %v5665_v57  ;;  %v8127_v32 = vpack.c.b16 %v6260_v30, %v6258_v38  ;;  %v8128_v33 = vpack.c.b16 %v6620_v12, %v6618_v22  ;;  %v8129_v36 = vpack.c.b16 %v6653_v62, %v6648_v53  ;;  %v5648_v11 = vld [vmem:[%s8057_s1 + $0x1a0] sm:$0xff] }
 0x1b7   : > { %1915 = vmatmul.bf16.vlgmr.msra.gmra.mxu3 %v1490_v45  ;;  %v8130_v30 = vpack.c.b16 %v6313_v16, %v6311_v44  ;;  %v5656_v22 = vld [vmem:[%s8057_s1 + $0x1e0] sm:$0xff]  ;;  %v8131_v53 = vpack.c.b16 %v6670_v58, %v6668_v42  ;;  %v8132_v12 = vpack.c.b16 %v6703_v3, %v6701_v47  ;;  %v8133_v16 = vpack.c.b16 %v6357_v55, %v6355_v26  ;;  %v5647_v3 = vld [vmem:[%s8057_s1 + $0x198] sm:$0xff]  ;;  %v5646_v58 = vld [vmem:[%s8057_s1 + $0x190] sm:$0xff] }
 0x1b8   : > { %2922 = vmatpush.bf16.msrb.mxu2 %v5648_v11  ;;  %3011 = vmatpush.bf16.msrb.mxu3 %v5656_v22  ;;  %v5664_v62 = vld [vmem:[%s8057_s1 + $0x220] sm:$0xff]  ;;  %v8134_v47 = vpack.c.b16 %v6720_v20, %v6718_v4  ;;  %v5645_v26 = vld [vmem:[%s8057_s1 + $0x188] sm:$0xff]  ;;  %v8135_v4 = vpack.c.b16 %v6389_v25, %v6387_v35  ;;  %v5596_v20 = vld [vmem:[#allocation3] sm:$0xff] }
 0x1b9   : > { %v6811_v15 = vpop.f32.mrf.mxu0  ;;  %v5644_v45 = vld [vmem:[%s8057_s1 + $0x180] sm:$0xff]  ;;  %v5663_v35 = vld [vmem:[%s8057_s1 + $0x218] sm:$0xff]  ;;  %v8143_v11 = vld [vmem:[#allocation8_spill] sm:$0xff] }
 0x1ba   : > { %v6841_v17 = vpop.f32.mrf.mxu1  ;;  %3100 = vmatpush.bf16.msra.mxu0 %v5664_v62 }
 0x1bb   : > { %2049 = vmatmul.bf16.gmra.mxu0 %v8119_v7  ;;  %v8137_v7 = vld [vmem:[#allocation4_spill] sm:$0xff] }
 0x1bc   : > { %2138 = vmatmul.bf16.gmra.mxu1 %v8120_v56  ;;  %2923 = vmatpush.bf16.msrb.mxu2 %v5647_v3  ;;  %v8138_v56 = vpack.c.b16 %v8136_v43, %v8137_v7  ;;  %v8145_v7 = vld [vmem:[#allocation11_spill] sm:$0xff] }
 0x1bd   : > { %3012 = vmatpush.bf16.msrb.mxu3 %v5655_v0 }
 0x1be   : > { %3101 = vmatpush.bf16.msra.mxu0 %v5663_v35 }
 0x1c0   : > { %2924 = vmatpush.bf16.msrb.mxu2 %v5646_v58 }
 0x1c1   : > { %v6824_v54 = vpop.f32.mrf.mxu0  ;;  %3013 = vmatpush.bf16.msrb.mxu3 %v5654_v48  ;;  %v5653_v48 = vld [vmem:[%s8057_s1 + $0x1c8] sm:$0xff] }
 0x1c2   : > { %v6848_v59 = vpop.f32.mrf.mxu1 }
 0x1c4   : > { %2925 = vmatpush.bf16.msrb.mxu2 %v5645_v26 }
 0x1c5   : > { %3014 = vmatpush.bf16.msrb.mxu3 %v5653_v48 }
 0x1c7   : > { %1920 = vmatmul.bf16.gmra.mxu3 %v8121_v61 }
 0x1c8   : > { %2926 = vmatpush.bf16.msrb.mxu2 %v5644_v45 }
 0x1c9   : > { %v6843_v19 = vpop.f32.mrf.mxu0 }
 0x1ca   : > { %v6861_v50 = vpop.f32.mrf.mxu1 }
 0x1cb   : > { %2054 = vmatmul.bf16.gmra.mxu0 %v8122_v51  ;;  %2927 = vmatmul.bf16.vlgmr.msrb.gmra.mxu2 %v5596_v20 }
 0x1cc   : > { %2143 = vmatmul.bf16.gmra.mxu1 %v8123_v27  ;;  %v6949_v27 = vld [vmem:[%s8058_s2 + $0x1] ss:$0 sm:$0xff] }
 0x1d1   : > { %v6850_v13 = vpop.f32.mrf.mxu0 }
 0x1d2   : > { %v6880_v6 = vpop.f32.mrf.mxu1 }
 0x1d7   : > { %1925 = vmatmul.bf16.gmra.mxu3 %v8124_v23 }
 0x1d9   : > { %v6863_v38 = vpop.f32.mrf.mxu0 }
 0x1da   : > { %v6887_v1 = vpop.f32.mrf.mxu1 }
 0x1db   : > { %2059 = vmatmul.bf16.gmra.mxu0 %v8125_v39  ;;  %2932 = vmatmul.bf16.gmra.mxu2 %v5597_v34  ;;  %v6958_v39 = vld [vmem:[%s8058_s2 + $0x2] ss:$0 sm:$0xff] }
 0x1dc   : > { %2148 = vmatmul.bf16.gmra.mxu1 %v8126_v52 }
 0x1e1   : > { %v6882_v44 = vpop.f32.mrf.mxu0 }
 0x1e2   : > { %v6906_v55 = vpop.f32.mrf.mxu1 }
 0x1e7   : > { %1930 = vmatmul.bf16.gmra.mxu3 %v8127_v32 }
 0x1e9   : > { %v6889_v42 = vpop.f32.mrf.mxu0 }
 0x1ea   : > { %v6919_v9 = vpop.f32.mrf.mxu1 }
 0x1eb   : > { %2064 = vmatmul.bf16.gmra.mxu0 %v8128_v33 }
 0x1ec   : > { %2153 = vmatmul.bf16.gmra.mxu1 %v8129_v36  ;;  %v8142_v36 = vld [vmem:[#allocation9_spill] sm:$0xff] }
 0x1f1   : > { %v6908_v29 = vpop.f32.mrf.mxu0 }
 0x1f7   : > { %1935 = vmatmul.bf16.gmra.mxu3 %v8130_v30  ;;  %v8144_v30 = vpack.c.b16 %v8142_v36, %v8143_v11  ;;  %v8148_v36 = vld [vmem:[#allocation13_spill] sm:$0xff]  ;;  %v8149_v11 = vld [vmem:[#allocation12_spill] sm:$0xff] }
 0x1fb   : > { %2069 = vmatmul.bf16.gmra.mxu0 %v8131_v53 }
 0x1fc   : > { %2158 = vmatmul.bf16.gmra.mxu1 %v8132_v12 }
 0x207   : > { %1940 = vmatmul.bf16.gmra.mxu3 %v8133_v16  ;;  %v6974_v16 = vpop.f32.mrf.mxu1 }
 0x20b   : > { %2074 = vmatmul.bf16.gmra.mxu0 %v8134_v47  ;;  %v5661_v47 = vld [vmem:[%s8057_s1 + $0x208] sm:$0xff] }
 0x20c   : > { %2163 = vmatmul.bf16.gmra.mxu1 %v1696_v8  ;;  %v6921_v8 = vpop.f32.mrf.mxu0 }
 0x20f   : > { %v6988_v35 = vpop.f32.mrf.mxu1 }
 0x214   : > { %v6932_v25 = vpop.f32.mrf.mxu0 }
 0x217   : > { %1945 = vmatmul.bf16.gmra.mxu3 %v8135_v4 }
 0x21b   : > { %2079 = vmatmul.bf16.gmra.mxu0 %v1601_v14  ;;  %v8141_v14 = vpack.c.b16 %v8139_v21, %v8140_v2 }
 0x21c   : > { %2168 = vmatmul.bf16.gmra.mxu1 %v1697_v5  ;;  %v6937_v61 = vpop.f32.mrf.mxu0 }
 0x224   : > { %v6942_v46 = vpop.f32.mrf.mxu0 }
 0x227   : > { %1950 = vmatmul.bf16.gmra.mxu3 %v8138_v56  ;;  %v8146_v56 = vld [vmem:[#allocation10_spill] sm:$0xff] }
 0x228   : > { %v8147_v34 = vpack.c.b16 %v8145_v7, %v8146_v56  ;;  %v8151_v7 = vld [vmem:[#allocation15_spill] sm:$0xff]  ;;  %v8152_v56 = vld [vmem:[#allocation14_spill] sm:$0xff] }
 0x22c   : > { %v6964_v52 = vpop.f32.mrf.mxu0 }
 0x237   : > { %1955 = vmatmul.bf16.gmra.mxu3 %v8141_v14 }
 0x23a   : > { %v1916_v60 = vpop.f32.mrf.mxu3 }
 0x23b   : > { %v2006_v5 = vadd.f32 %v6806_v10, %v1916_v60 }
 0x23d   : > { %v2095_v51 = vadd.f32 %v6822_v31, %v2006_v5  ;;  %v5662_v31 = vld [vmem:[%s8057_s1 + $0x210] sm:$0xff] }
 0x23e   : > { %3102 = vmatpush.bf16.msra.mxu0 %v5662_v31 }
 0x23f   : > { %v2176_v24 = vmul.f32 %v6949_v27, %v2095_v51 }
 0x241   : > { %v2210_v32 = vadd.f32 %v6958_v39, %v2176_v24 }
 0x242   : > { %v1918_v23 = vpop.f32.mrf.mxu3  ;;  %3103 = vmatpush.bf16.msra.mxu0 %v5661_v47 }
 0x243   : > { %v2008_v10 = vadd.f32 %v6811_v15, %v1918_v23  ;;  %v2242_v53 = vmax.f32 %v2210_v32, 0.0  ;;  %v7003_v23 = vpop.f32.mrf.mxu1 }
 0x245   : > { %v2097_v57 = vadd.f32 %v6841_v17, %v2008_v10  ;;  %v6976_v17 = vpop.f32.mrf.mxu0 }
 0x247   : > { %v2177_v33 = vmul.f32 %v6949_v27, %v2097_v57  ;;  %1960 = vmatmul.bf16.gmra.mxu3 %v8144_v30  ;;  %v8150_v30 = vpack.c.b16 %v8148_v36, %v8149_v11 }
 0x249   : > { %v2211_v22 = vadd.f32 %v6958_v39, %v2177_v33 }
 0x24a   : > { %v1921_v15 = vpop.f32.mrf.mxu3 }
 0x24b   : > { %v2243_v12 = vmax.f32 %v2211_v22, 0.0  ;;  %v2011_v62 = vadd.f32 %v6824_v54, %v1921_v15  ;;  %v5660_v54 = vld [vmem:[%s8057_s1 + $0x200] sm:$0xff] }
 0x24c   : > { %3104 = vmatpush.bf16.msra.mxu0 %v5660_v54 }
 0x24d   : > { %v5695_v3 = vpack.c.bf16 %v2243_v12, %v2242_v53  ;;  %v2100_v58 = vadd.f32 %v6848_v59, %v2011_v62  ;;  %v6995_v21 = vpop.f32.mrf.mxu0  ;;  %v2121_v53 = vpop.f32.mrf.mxu1 }
 0x24f   : > { %5696 = vst [vmem:[#allocation3 + $0x10] sm:$0xff] %v5695_v3   ;;  %v2178_v45 = vmul.f32 %v6949_v27, %v2100_v58 }
 0x251   : > { %v2212_v59 = vadd.f32 %v6958_v39, %v2178_v45 }
 0x252   : > { %v1923_v26 = vpop.f32.mrf.mxu3 }
 0x253   : > { %v2013_v4 = vadd.f32 %v6843_v19, %v1923_v26  ;;  %v2244_v14 = vmax.f32 %v2212_v59, 0.0 }
 0x255   : > { %v2102_v0 = vadd.f32 %v6861_v50, %v2013_v4  ;;  %v7005_v24 = vpop.f32.mrf.mxu0  ;;  %v7022_v4 = vpop.f32.mrf.mxu1 }
 0x256   : > { %v5598_v20 = vld [vmem:[#allocation3 + $0x10] sm:$0xff] }
 0x257   : > { %v2179_v43 = vmul.f32 %v6949_v27, %v2102_v0  ;;  %1965 = vmatmul.bf16.gmra.mxu3 %v8147_v34  ;;  %2937 = vmatmul.bf16.gmra.mxu2 %v5598_v20 }
 0x259   : > { %v2213_v19 = vadd.f32 %v6958_v39, %v2179_v43 }
 0x25a   : > { %v1926_v2 = vpop.f32.mrf.mxu3 }
 0x25b   : > { %v2245_v50 = vmax.f32 %v2213_v19, 0.0  ;;  %v2016_v60 = vadd.f32 %v6850_v13, %v1926_v2 }
 0x25d   : > { %v5700_v5 = vpack.c.bf16 %v2245_v50, %v2244_v14  ;;  %v2105_v51 = vadd.f32 %v6880_v6, %v2016_v60  ;;  %v7017_v3 = vpop.f32.mrf.mxu0  ;;  %v2126_v50 = vpop.f32.mrf.mxu1 }
 0x25f   : > { %5916 = vst [vmem:[#allocation3 + $0x18] sm:$0xff] %v5700_v5   ;;  %v2180_v31 = vmul.f32 %v6949_v27, %v2105_v51  ;;  %v5652_v5 = vld [vmem:[%s8057_s1 + $0x1c0] sm:$0xff] }
 0x260   : > { %3015 = vmatpush.bf16.msrb.mxu3 %v5652_v5 }
 0x261   : > { %v2214_v33 = vadd.f32 %v6958_v39, %v2180_v31 }
 0x262   : > { %v1928_v10 = vpop.f32.mrf.mxu3 }
 0x263   : > { %v2018_v57 = vadd.f32 %v6863_v38, %v1928_v10  ;;  %v2246_v12 = vmax.f32 %v2214_v33, 0.0  ;;  %v8154_v33 = vld [vmem:[#allocation17_spill] sm:$0xff] }
 0x265   : > { %v2107_v13 = vadd.f32 %v6887_v1, %v2018_v57  ;;  %v7025_v0 = vpop.f32.mrf.mxu0  ;;  %v2129_v11 = vpop.f32.mrf.mxu1 }
 0x266   : > { %v5599_v32 = vld [vmem:[#allocation3 + $0x18] sm:$0xff] }
 0x267   : > { %v2181_v6 = vmul.f32 %v6949_v27, %v2107_v13  ;;  %1970 = vmatmul.bf16.gmra.mxu3 %v8150_v30  ;;  %2942 = vmatmul.bf16.gmra.mxu2 %v5599_v32 }
 0x269   : > { %v2215_v22 = vadd.f32 %v6958_v39, %v2181_v6  ;;  %v8155_v6 = vld [vmem:[#allocation16_spill] sm:$0xff] }
 0x26a   : > { %v1931_v15 = vpop.f32.mrf.mxu3  ;;  %v8156_v36 = vpack.c.b16 %v8154_v33, %v8155_v6  ;;  %v5612_v6 = vld [vmem:[#allocation3 + $0x10] sm:$0xff] }
 0x26b   : > { %v2247_v62 = vmax.f32 %v2215_v22, 0.0  ;;  %v2021_v38 = vadd.f32 %v6882_v44, %v1931_v15 }
 0x26d   : > { %v5705_v1 = vpack.c.bf16 %v2247_v62, %v2246_v12  ;;  %v2110_v58 = vadd.f32 %v6906_v55, %v2021_v38  ;;  %v8153_v55 = vpack.c.b16 %v8151_v7, %v8152_v56  ;;  %v7038_v51 = vpop.f32.mrf.mxu0 }
 0x26f   : > { %5917 = vst [vmem:[#allocation3 + $0x20] sm:$0xff] %v5705_v1   ;;  %v2182_v26 = vmul.f32 %v6949_v27, %v2110_v58  ;;  %v2131_v58 = vpop.f32.mrf.mxu1 }
 0x271   : > { %v2216_v44 = vadd.f32 %v6958_v39, %v2182_v26 }
 0x272   : > { %v1933_v47 = vpop.f32.mrf.mxu3 }
 0x273   : > { %v2023_v45 = vadd.f32 %v6889_v42, %v1933_v47  ;;  %v2248_v19 = vmax.f32 %v2216_v44, 0.0 }
 0x275   : > { %v2112_v54 = vadd.f32 %v6919_v9, %v2023_v45  ;;  %v7049_v22 = vpop.f32.mrf.mxu0 }
 0x276   : > { %v5600_v20 = vld [vmem:[#allocation3 + $0x20] sm:$0xff] }
 0x277   : > { %v5628_v59 = vld [vmem:[#allocation3 + $0x20] sm:$0xff]  ;;  %v2183_v43 = vmul.f32 %v6949_v27, %v2112_v54  ;;  %1975 = vmatmul.bf16.gmra.mxu3 %v8153_v55  ;;  %2947 = vmatmul.bf16.gmra.mxu2 %v5600_v20 }
 0x278   : > { %3105 = vmatmul.bf16.vlgmr.msra.gmra.mxu0 %v5628_v59 }
 0x279   : > { %v2217_v42 = vadd.f32 %v6958_v39, %v2183_v43 }
 0x27a   : > { %v1936_v34 = vpop.f32.mrf.mxu3 }
 0x27b   : > { %v2249_v2 = vmax.f32 %v2217_v42, 0.0  ;;  %v2026_v9 = vadd.f32 %v6908_v29, %v1936_v34 }
 0x27d   : > { %v5710_v14 = vpack.c.bf16 %v2249_v2, %v2248_v19  ;;  %v2115_v60 = vadd.f32 %v6974_v16, %v2026_v9  ;;  %v7055_v45 = vpop.f32.mrf.mxu0 }
 0x27f   : > { %5918 = vst [vmem:[#allocation3 + $0x28] sm:$0xff] %v5710_v14   ;;  %v2184_v10 = vmul.f32 %v6949_v27, %v2115_v60 }
 0x281   : > { %v2218_v32 = vadd.f32 %v6958_v39, %v2184_v10 }
 0x282   : > { %v1938_v48 = vpop.f32.mrf.mxu3 }
 0x283   : > { %v2028_v31 = vadd.f32 %v6921_v8, %v1938_v48  ;;  %v2250_v15 = vmax.f32 %v2218_v32, 0.0 }
 0x285   : > { %v2117_v57 = vadd.f32 %v6988_v35, %v2028_v31  ;;  %v7064_v34 = vpop.f32.mrf.mxu0 }
 0x286   : > { %v5601_v29 = vld [vmem:[#allocation3 + $0x28] sm:$0xff] }
 0x287   : > { %v5629_v13 = vld [vmem:[#allocation3 + $0x28] sm:$0xff]  ;;  %v2185_v16 = vmul.f32 %v6949_v27, %v2117_v57  ;;  %1980 = vmatmul.bf16.gmra.mxu3 %v8156_v36  ;;  %2952 = vmatmul.bf16.gmra.mxu2 %v5601_v29 }
 0x288   : > { %3110 = vmatmul.bf16.gmra.mxu0 %v5629_v13 }
 0x289   : > { %v2219_v30 = vadd.f32 %v6958_v39, %v2185_v16 }
 0x28a   : > { %v1941_v8 = vpop.f32.mrf.mxu3 }
 0x28b   : > { %v2251_v35 = vmax.f32 %v2219_v30, 0.0  ;;  %v2031_v12 = vadd.f32 %v6932_v25, %v1941_v8  ;;  %v8157_v25 = vpack.c.b16 %v6730_v63, %v6728_v49 }
 0x28d   : > { %v5715_v62 = vpack.c.bf16 %v2251_v35, %v2250_v15  ;;  %v2120_v38 = vadd.f32 %v7003_v23, %v2031_v12  ;;  %v7074_v10 = vpop.f32.mrf.mxu0 }
 0x28f   : > { %5919 = vst [vmem:[#allocation3 + $0x30] sm:$0xff] %v5715_v62   ;;  %v2186_v47 = vmul.f32 %v6949_v27, %v2120_v38 }
 0x291   : > { %v2220_v44 = vadd.f32 %v6958_v39, %v2186_v47 }
 0x292   : > { %v1943_v1 = vpop.f32.mrf.mxu3 }
 0x293   : > { %v2033_v26 = vadd.f32 %v6937_v61, %v1943_v1  ;;  %v2252_v56 = vmax.f32 %v2220_v44, 0.0 }
 0x295   : > { %v2122_v54 = vadd.f32 %v2121_v53, %v2033_v26  ;;  %v2134_v53 = vpop.f32.mrf.mxu1  ;;  %v7078_v16 = vpop.f32.mrf.mxu0 }
 0x296   : > { %v5602_v20 = vld [vmem:[#allocation3 + $0x30] sm:$0xff] }
 0x297   : > { %v5630_v59 = vld [vmem:[#allocation3 + $0x30] sm:$0xff]  ;;  %v2187_v43 = vmul.f32 %v6949_v27, %v2122_v54  ;;  %1985 = vmatmul.bf16.gmra.mxu3 %v8157_v25  ;;  %2957 = vmatmul.bf16.gmra.mxu2 %v5602_v20  ;;  %v5613_v25 = vld [vmem:[#allocation3 + $0x18] sm:$0xff] }
 0x298   : > { %3115 = vmatmul.bf16.gmra.mxu0 %v5630_v59 }
 0x299   : > { %v2221_v23 = vadd.f32 %v6958_v39, %v2187_v43 }
 0x29a   : > { %v1946_v7 = vpop.f32.mrf.mxu3 }
 0x29b   : > { %v2253_v61 = vmax.f32 %v2221_v23, 0.0  ;;  %v2036_v55 = vadd.f32 %v6942_v46, %v1946_v7 }
 0x29d   : > { %v5720_v42 = vpack.c.bf16 %v2253_v61, %v2252_v56  ;;  %v2125_v19 = vadd.f32 %v7022_v4, %v2036_v55  ;;  %v2136_v5 = vpop.f32.mrf.mxu1  ;;  %v7088_v1 = vpop.f32.mrf.mxu0 }
 0x29f   : > { %5920 = vst [vmem:[#allocation3 + $0x38] sm:$0xff] %v5720_v42   ;;  %v2188_v49 = vmul.f32 %v6949_v27, %v2125_v19 }
 0x2a1   : > { %v2222_v48 = vadd.f32 %v6958_v39, %v2188_v49 }
 0x2a2   : > { %v1948_v2 = vpop.f32.mrf.mxu3 }
 0x2a3   : > { %v2038_v63 = vadd.f32 %v6964_v52, %v1948_v2  ;;  %v2254_v52 = vmax.f32 %v2222_v48, 0.0 }
 0x2a5   : > { %v2127_v9 = vadd.f32 %v2126_v50, %v2038_v63  ;;  %v2139_v32 = vpop.f32.mrf.mxu1  ;;  %v7094_v23 = vpop.f32.mrf.mxu0 }
 0x2a6   : > { %v5603_v14 = vld [vmem:[#allocation3 + $0x38] sm:$0xff] }
 0x2a7   : > { %v5631_v60 = vld [vmem:[#allocation3 + $0x38] sm:$0xff]  ;;  %v2189_v46 = vmul.f32 %v6949_v27, %v2127_v9  ;;  %1990 = vmatmul.bf16.gmra.mxu3 %v1505_v28  ;;  %2962 = vmatmul.bf16.gmra.mxu2 %v5603_v14 }
 0x2a8   : > { %3120 = vmatmul.bf16.gmra.mxu0 %v5631_v60 }
 0x2a9   : > { %v2223_v4 = vadd.f32 %v6958_v39, %v2189_v46 }
 0x2aa   : > { %v1951_v31 = vpop.f32.mrf.mxu3 }
 0x2ab   : > { %v2255_v50 = vmax.f32 %v2223_v4, 0.0  ;;  %v2041_v57 = vadd.f32 %v6976_v17, %v1951_v31  ;;  %v5614_v4 = vld [vmem:[#allocation3 + $0x20] sm:$0xff] }
 0x2ad   : > { %v5725_v29 = vpack.c.bf16 %v2255_v50, %v2254_v52  ;;  %v2130_v13 = vadd.f32 %v2129_v11, %v2041_v57  ;;  %v2141_v35 = vpop.f32.mrf.mxu1  ;;  %v7102_v14 = vpop.f32.mrf.mxu0 }
 0x2af   : > { %5921 = vst [vmem:[#allocation3 + $0x40] sm:$0xff] %v5725_v29   ;;  %v2190_v40 = vmul.f32 %v6949_v27, %v2130_v13 }
 0x2b1   : > { %v2224_v8 = vadd.f32 %v6958_v39, %v2190_v40 }
 0x2b2   : > { %v1953_v33 = vpop.f32.mrf.mxu3 }
 0x2b3   : > { %v2043_v37 = vadd.f32 %v6995_v21, %v1953_v33  ;;  %v2256_v12 = vmax.f32 %v2224_v8, 0.0  ;;  %v7086_v21 = vpop.f32.mrf.mxu2 }
 0x2b5   : > { %v2132_v28 = vadd.f32 %v2131_v58, %v2043_v37  ;;  %v2144_v59 = vpop.f32.mrf.mxu1 }
 0x2b6   : > { %v5604_v36 = vld [vmem:[#allocation3 + $0x40] sm:$0xff] }
 0x2b7   : > { %v5632_v30 = vld [vmem:[#allocation3 + $0x40] sm:$0xff]  ;;  %v2191_v15 = vmul.f32 %v6949_v27, %v2132_v28  ;;  %3016 = vmatmul.bf16.vlgmr.msrb.gmra.mxu3 %v5612_v6  ;;  %2967 = vmatmul.bf16.gmra.mxu2 %v5604_v36 }
 0x2b8   : > { %3125 = vmatmul.bf16.gmra.mxu0 %v5632_v30 }
 0x2b9   : > { %v2225_v17 = vadd.f32 %v6958_v39, %v2191_v15 }
 0x2ba   : > { %v1956_v11 = vpop.f32.mrf.mxu3 }
 0x2bb   : > { %v2257_v62 = vmax.f32 %v2225_v17, 0.0  ;;  %v2046_v38 = vadd.f32 %v7005_v24, %v1956_v11  ;;  %v7092_v43 = vpop.f32.mrf.mxu2 }
 0x2bd   : > { %v5730_v58 = vpack.c.bf16 %v2257_v62, %v2256_v12  ;;  %v2135_v47 = vadd.f32 %v2134_v53, %v2046_v38  ;;  %v2146_v49 = vpop.f32.mrf.mxu1  ;;  %v5615_v12 = vld [vmem:[#allocation3 + $0x28] sm:$0xff] }
 0x2bf   : > { %5922 = vst [vmem:[#allocation3 + $0x48] sm:$0xff] %v5730_v58   ;;  %v2192_v54 = vmul.f32 %v6949_v27, %v2135_v47 }
 0x2c1   : > { %v2226_v56 = vadd.f32 %v6958_v39, %v2192_v54 }
 0x2c2   : > { %v1958_v26 = vpop.f32.mrf.mxu3 }
 0x2c3   : > { %v2048_v20 = vadd.f32 %v7017_v3, %v1958_v26  ;;  %v2258_v3 = vmax.f32 %v2226_v56, 0.0  ;;  %v7100_v9 = vpop.f32.mrf.mxu2 }
 0x2c5   : > { %v2137_v44 = vadd.f32 %v2136_v5, %v2048_v20  ;;  %v2149_v57 = vpop.f32.mrf.mxu1 }
 0x2c6   : > { %v5605_v24 = vld [vmem:[#allocation3 + $0x48] sm:$0xff] }
 0x2c7   : > { %v5633_v7 = vld [vmem:[#allocation3 + $0x48] sm:$0xff]  ;;  %v2193_v61 = vmul.f32 %v6949_v27, %v2137_v44  ;;  %3021 = vmatmul.bf16.gmra.mxu3 %v5613_v25  ;;  %2972 = vmatmul.bf16.gmra.mxu2 %v5605_v24 }
 0x2c8   : > { %3130 = vmatmul.bf16.gmra.mxu0 %v5633_v7 }
 0x2c9   : > { %v2227_v55 = vadd.f32 %v6958_v39, %v2193_v61 }
 0x2ca   : > { %v1961_v53 = vpop.f32.mrf.mxu3 }
 0x2cb   : > { %v2259_v42 = vmax.f32 %v2227_v55, 0.0  ;;  %v2051_v19 = vadd.f32 %v7025_v0, %v1961_v53  ;;  %v7109_v13 = vpop.f32.mrf.mxu2 }
 0x2cd   : > { %v5735_v2 = vpack.c.bf16 %v2259_v42, %v2258_v3  ;;  %v2140_v63 = vadd.f32 %v2139_v32, %v2051_v19  ;;  %v7111_v32 = vpop.f32.mrf.mxu0  ;;  %v2151_v17 = vpop.f32.mrf.mxu1  ;;  %v5616_v3 = vld [vmem:[#allocation3 + $0x30] sm:$0xff] }
 0x2cf   : > { %5923 = vst [vmem:[#allocation3 + $0x50] sm:$0xff] %v5735_v2   ;;  %v2194_v5 = vmul.f32 %v6949_v27, %v2140_v63 }
 0x2d1   : > { %v2228_v50 = vadd.f32 %v6958_v39, %v2194_v5 }
 0x2d2   : > { %v1963_v60 = vpop.f32.mrf.mxu3 }
 0x2d3   : > { %v2053_v48 = vadd.f32 %v7038_v51, %v1963_v60  ;;  %v2260_v51 = vmax.f32 %v2228_v50, 0.0 }
 0x2d5   : > { %v2142_v46 = vadd.f32 %v2141_v35, %v2053_v48  ;;  %v7118_v11 = vpop.f32.mrf.mxu0  ;;  %v2154_v25 = vpop.f32.mrf.mxu1 }
 0x2d6   : > { %v5606_v31 = vld [vmem:[#allocation3 + $0x50] sm:$0xff] }
 0x2d7   : > { %v5634_v52 = vld [vmem:[#allocation3 + $0x50] sm:$0xff]  ;;  %v2195_v0 = vmul.f32 %v6949_v27, %v2142_v46  ;;  %3026 = vmatmul.bf16.gmra.mxu3 %v5614_v4  ;;  %2977 = vmatmul.bf16.gmra.mxu2 %v5606_v31 }
 0x2d8   : > { %3135 = vmatmul.bf16.gmra.mxu0 %v5634_v52 }
 0x2d9   : > { %v2229_v29 = vadd.f32 %v6958_v39, %v2195_v0 }
 0x2da   : > { %v1966_v33 = vpop.f32.mrf.mxu3  ;;  %v7115_v8 = vpop.f32.mrf.mxu2 }
 0x2db   : > { %v2261_v40 = vmax.f32 %v2229_v29, 0.0  ;;  %v2056_v37 = vadd.f32 %v7049_v22, %v1966_v33 }
 0x2dd   : > { %v5740_v28 = vpack.c.bf16 %v2261_v40, %v2260_v51  ;;  %v2145_v6 = vadd.f32 %v2144_v59, %v2056_v37  ;;  %v7126_v24 = vpop.f32.mrf.mxu0  ;;  %v2156_v63 = vpop.f32.mrf.mxu1  ;;  %v5617_v37 = vld [vmem:[#allocation3 + $0x38] sm:$0xff] }
 0x2df   : > { %5924 = vst [vmem:[#allocation3 + $0x58] sm:$0xff] %v5740_v28   ;;  %v2196_v30 = vmul.f32 %v6949_v27, %v2145_v6 }
 0x2e1   : > { %v2230_v58 = vadd.f32 %v6958_v39, %v2196_v30 }
 0x2e2   : > { %v1968_v36 = vpop.f32.mrf.mxu3  ;;  %v7124_v44 = vpop.f32.mrf.mxu2 }
 0x2e3   : > { %v2058_v15 = vadd.f32 %v7055_v45, %v1968_v36  ;;  %v2262_v54 = vmax.f32 %v2230_v58, 0.0 }
 0x2e5   : > { %v2147_v35 = vadd.f32 %v2146_v49, %v2058_v15  ;;  %v7134_v60 = vpop.f32.mrf.mxu0 }
 0x2e6   : > { %v5607_v62 = vld [vmem:[#allocation3 + $0x58] sm:$0xff] }
 0x2e7   : > { %v5635_v38 = vld [vmem:[#allocation3 + $0x58] sm:$0xff]  ;;  %v2197_v22 = vmul.f32 %v6949_v27, %v2147_v35  ;;  %3031 = vmatmul.bf16.gmra.mxu3 %v5615_v12  ;;  %2982 = vmatmul.bf16.gmra.mxu2 %v5607_v62 }
 0x2e8   : > { %3140 = vmatmul.bf16.gmra.mxu0 %v5635_v38 }
 0x2e9   : > { %v2231_v47 = vadd.f32 %v6958_v39, %v2197_v22 }
 0x2ea   : > { %v1971_v26 = vpop.f32.mrf.mxu3 }
 0x2eb   : > { %v2263_v20 = vmax.f32 %v2231_v47, 0.0  ;;  %v2061_v45 = vadd.f32 %v7064_v34, %v1971_v26  ;;  %v7131_v34 = vpop.f32.mrf.mxu2  ;;  %v5683_v47 = vld [vmem:[%s8057_s1 + $0x2b8] sm:$0xff] }
 0x2ec   : > { %4082 = vmatpush.bf16.msra.mxu2 %v5683_v47  ;;  %v5676_v47 = vld [vmem:[%s8057_s1 + $0x280] sm:$0xff] }
 0x2ed   : > { %v5745_v59 = vpack.c.bf16 %v2263_v20, %v2262_v54  ;;  %v2150_v7 = vadd.f32 %v2149_v57, %v2061_v45  ;;  %v2159_v57 = vpop.f32.mrf.mxu1  ;;  %v5682_v45 = vld [vmem:[%s8057_s1 + $0x2b0] sm:$0xff] }
 0x2ef   : > { %5925 = vst [vmem:[#allocation3 + $0x60] sm:$0xff] %v5745_v59   ;;  %v2198_v61 = vmul.f32 %v6949_v27, %v2150_v7  ;;  %v5618_v7 = vld [vmem:[#allocation3 + $0x40] sm:$0xff] }
 0x2f0   : > { %4083 = vmatpush.bf16.msra.mxu2 %v5682_v45 }
 0x2f1   : > { %v2232_v2 = vadd.f32 %v6958_v39, %v2198_v61 }
 0x2f2   : > { %v1973_v56 = vpop.f32.mrf.mxu3 }
 0x2f3   : > { %v2063_v55 = vadd.f32 %v7074_v10, %v1973_v56  ;;  %v2264_v10 = vmax.f32 %v2232_v2, 0.0  ;;  %v7140_v0 = vpop.f32.mrf.mxu2 }
 0x2f5   : > { %v2152_v53 = vadd.f32 %v2151_v17, %v2063_v55  ;;  %v7138_v50 = vpop.f32.mrf.mxu0  ;;  %v2161_v38 = vpop.f32.mrf.mxu1 }
 0x2f6   : > { %v5608_v42 = vld [vmem:[#allocation3 + $0x60] sm:$0xff] }
 0x2f7   : > { %v5636_v19 = vld [vmem:[#allocation3 + $0x60] sm:$0xff]  ;;  %v2199_v49 = vmul.f32 %v6949_v27, %v2152_v53  ;;  %3036 = vmatmul.bf16.gmra.mxu3 %v5616_v3  ;;  %2987 = vmatmul.bf16.gmra.mxu2 %v5608_v42 }
 0x2f8   : > { %3145 = vmatmul.bf16.gmra.mxu0 %v5636_v19 }
 0x2f9   : > { %v2233_v5 = vadd.f32 %v6958_v39, %v2199_v49 }
 0x2fa   : > { %v1976_v48 = vpop.f32.mrf.mxu3 }
 0x2fb   : > { %v2265_v46 = vmax.f32 %v2233_v5, 0.0  ;;  %v2066_v4 = vadd.f32 %v7078_v16, %v1976_v48  ;;  %v7149_v12 = vpop.f32.mrf.mxu2  ;;  %v5680_v5 = vld [vmem:[%s8057_s1 + $0x2a0] sm:$0xff] }
 0x2fd   : > { %v5750_v31 = vpack.c.bf16 %v2265_v46, %v2264_v10  ;;  %v2155_v52 = vadd.f32 %v2154_v25, %v2066_v4  ;;  %v7147_v15 = vpop.f32.mrf.mxu0  ;;  %v2164_v56 = vpop.f32.mrf.mxu1 }
 0x2ff   : > { %5926 = vst [vmem:[#allocation3 + $0x68] sm:$0xff] %v5750_v31   ;;  %v2200_v33 = vmul.f32 %v6949_v27, %v2155_v52  ;;  %v5679_v31 = vld [vmem:[%s8057_s1 + $0x298] sm:$0xff] }
 0x301   : > { %v2234_v36 = vadd.f32 %v6958_v39, %v2200_v33  ;;  %v5691_v33 = vld [vmem:[%s8057_s1 + $0x2f8] sm:$0xff] }
 0x302   : > { %v1978_v29 = vpop.f32.mrf.mxu3  ;;  %4171 = vmatpush.bf16.msra.mxu3 %v5691_v33 }
 0x303   : > { %v2068_v51 = vadd.f32 %v7088_v1, %v1978_v29  ;;  %v2266_v35 = vmax.f32 %v2234_v36, 0.0 }
 0x305   : > { %v2157_v40 = vadd.f32 %v2156_v63, %v2068_v51  ;;  %v7160_v59 = vpop.f32.mrf.mxu0  ;;  %v2166_v52 = vpop.f32.mrf.mxu1  ;;  %v5678_v51 = vld [vmem:[%s8057_s1 + $0x290] sm:$0xff] }
 0x306   : > { %v5609_v28 = vld [vmem:[#allocation3 + $0x68] sm:$0xff] }
 0x307   : > { %v5637_v6 = vld [vmem:[#allocation3 + $0x68] sm:$0xff]  ;;  %v2201_v16 = vmul.f32 %v6949_v27, %v2157_v40  ;;  %3041 = vmatmul.bf16.gmra.mxu3 %v5617_v37  ;;  %2992 = vmatmul.bf16.gmra.mxu2 %v5609_v28 }
 0x308   : > { %3150 = vmatmul.bf16.gmra.mxu0 %v5637_v6  ;;  %v5619_v37 = vld [vmem:[#allocation3 + $0x48] sm:$0xff] }
 0x309   : > { %v2235_v30 = vadd.f32 %v6958_v39, %v2201_v16 }
 0x30a   : > { %v1981_v17 = vpop.f32.mrf.mxu3 }
 0x30b   : > { %v2267_v1 = vmax.f32 %v2235_v30, 0.0  ;;  %v2071_v62 = vadd.f32 %v7094_v23, %v1981_v17  ;;  %v7162_v23 = vpop.f32.mrf.mxu2 }
 0x30d   : > { %v5755_v58 = vpack.c.bf16 %v2267_v1, %v2266_v35  ;;  %v2160_v22 = vadd.f32 %v2159_v57, %v2071_v62  ;;  %v7174_v10 = vpop.f32.mrf.mxu0  ;;  %v2169_v1 = vpop.f32.mrf.mxu1 }
 0x30f   : > { %5927 = vst [vmem:[#allocation3 + $0x70] sm:$0xff] %v5755_v58   ;;  %v2202_v54 = vmul.f32 %v6949_v27, %v2160_v22 }
 0x311   : > { %v2236_v53 = vadd.f32 %v6958_v39, %v2202_v54  ;;  %v5675_v54 = vld [vmem:[%s8057_s1 + $0x278] sm:$0xff] }
 0x312   : > { %v1983_v26 = vpop.f32.mrf.mxu3  ;;  %3993 = vmatpush.bf16.msra.mxu1 %v5675_v54 }
 0x313   : > { %v2073_v20 = vadd.f32 %v7102_v14, %v1983_v26  ;;  %v5681_v14 = vld [vmem:[%s8057_s1 + $0x2a8] sm:$0xff]  ;;  %v2268_v2 = vmax.f32 %v2236_v53, 0.0  ;;  %v7176_v46 = vpop.f32.mrf.mxu2 }
 0x314   : > { %4084 = vmatpush.bf16.msra.mxu2 %v5681_v14 }
 0x315   : > { %v2162_v25 = vadd.f32 %v2161_v38, %v2073_v20  ;;  %v7194_v30 = vpop.f32.mrf.mxu0 }
 0x316   : > { %v5610_v61 = vld [vmem:[#allocation3 + $0x70] sm:$0xff] }
 0x317   : > { %v5638_v55 = vld [vmem:[#allocation3 + $0x70] sm:$0xff]  ;;  %v2203_v3 = vmul.f32 %v6949_v27, %v2162_v25  ;;  %3046 = vmatmul.bf16.gmra.mxu3 %v5618_v7  ;;  %2997 = vmatmul.bf16.gmra.mxu2 %v5610_v61  ;;  %v2171_v61 = vpop.f32.mrf.mxu1 }
 0x318   : > { %3155 = vmatmul.bf16.gmra.mxu0 %v5638_v55  ;;  %4085 = vmatpush.bf16.msra.mxu2 %v5680_v5  ;;  %v7215_v55 = vld [vmem:[%s8058_s2 + $0x3] ss:$0 sm:$0xff] }
 0x319   : > { %v2237_v42 = vadd.f32 %v6958_v39, %v2203_v3  ;;  %v5620_v3 = vld [vmem:[#allocation3 + $0x50] sm:$0xff] }
 0x31a   : > { %v1986_v19 = vpop.f32.mrf.mxu3 }
 0x31b   : > { %v2269_v49 = vmax.f32 %v2237_v42, 0.0  ;;  %v2076_v63 = vadd.f32 %v7111_v32, %v1986_v19  ;;  %v7196_v17 = vpop.f32.mrf.mxu2  ;;  %v2929_v42 = vadd.f32 %v7215_v55, %v7086_v21 }
 0x31c   : > { %4086 = vmatpush.bf16.msra.mxu2 %v5679_v31 }
 0x31d   : > { %v5760_v48 = vpack.c.bf16 %v2269_v49, %v2268_v2  ;;  %v2165_v4 = vadd.f32 %v2164_v56, %v2076_v63  ;;  %v7206_v45 = vpop.f32.mrf.mxu0 }
 0x31f   : > { %5928 = vst [vmem:[#allocation3 + $0x78] sm:$0xff] %v5760_v48   ;;  %v2204_v32 = vmul.f32 %v6949_v27, %v2165_v4 }
 0x320   : > { %4087 = vmatpush.bf16.msra.mxu2 %v5678_v51  ;;  %v5621_v51 = vld [vmem:[#allocation3 + $0x58] sm:$0xff] }
 0x321   : > { %v2238_v36 = vadd.f32 %v6958_v39, %v2204_v32 }
 0x322   : > { %v1988_v57 = vpop.f32.mrf.mxu3 }
 0x323   : > { %v2078_v29 = vadd.f32 %v7118_v11, %v1988_v57  ;;  %v5677_v11 = vld [vmem:[%s8057_s1 + $0x288] sm:$0xff]  ;;  %v2270_v38 = vmax.f32 %v2238_v36, 0.0  ;;  %v7208_v7 = vpop.f32.mrf.mxu2  ;;  %v2931_v57 = vadd.f32 %v7215_v55, %v7092_v43 }
 0x324   : > { %4088 = vmatpush.bf16.msra.mxu2 %v5677_v11  ;;  %v5674_v11 = vld [vmem:[%s8057_s1 + $0x270] sm:$0xff] }
 0x325   : > { %v2167_v40 = vadd.f32 %v2166_v52, %v2078_v29  ;;  %v7222_v4 = vpop.f32.mrf.mxu0  ;;  %3994 = vmatpush.bf16.msra.mxu1 %v5674_v11 }
 0x326   : > { %v5611_v28 = vld [vmem:[#allocation3 + $0x78] sm:$0xff] }
 0x327   : > { %v5639_v6 = vld [vmem:[#allocation3 + $0x78] sm:$0xff]  ;;  %v2205_v16 = vmul.f32 %v6949_v27, %v2167_v40  ;;  %3051 = vmatmul.bf16.gmra.mxu3 %v5619_v37  ;;  %3002 = vmatmul.bf16.gmra.mxu2 %v5611_v28 }
 0x328   : > { %3160 = vmatmul.bf16.gmra.mxu0 %v5639_v6  ;;  %4089 = vmatpush.bf16.msra.mxu2 %v5676_v47 }
 0x329   : > { %v2239_v35 = vadd.f32 %v6958_v39, %v2205_v16 }
 0x32a   : > { %v1991_v62 = vpop.f32.mrf.mxu3 }
 0x32b   : > { %v2271_v58 = vmax.f32 %v2239_v35, 0.0  ;;  %v2081_v22 = vadd.f32 %v7126_v24, %v1991_v62  ;;  %v7224_v31 = vpop.f32.mrf.mxu2 }
 0x32d   : > { %v5765_v26 = vpack.c.bf16 %v2271_v58, %v2270_v38  ;;  %v2170_v20 = vadd.f32 %v2169_v1, %v2081_v22  ;;  %v7235_v40 = vpop.f32.mrf.mxu0 }
 0x32f   : > { %5929 = vst [vmem:[#allocation3 + $0x80] sm:$0xff] %v5765_v26   ;;  %v2206_v24 = vmul.f32 %v6949_v27, %v2170_v20 }
 0x331   : > { %v2240_v19 = vadd.f32 %v6958_v39, %v2206_v24  ;;  %v2936_v24 = vadd.f32 %v7215_v55, %v7109_v13 }
 0x332   : > { %v1993_v25 = vpop.f32.mrf.mxu3 }
 0x333   : > { %v2083_v56 = vadd.f32 %v7134_v60, %v1993_v25  ;;  %v2272_v63 = vmax.f32 %v2240_v19, 0.0  ;;  %v7239_v28 = vpop.f32.mrf.mxu2 }
 0x335   : > { %v2172_v53 = vadd.f32 %v2171_v61, %v2083_v56  ;;  %v7257_v20 = vpop.f32.mrf.mxu0 }
 0x336   : > { %v5640_v14 = vld [vmem:[#allocation3 + $0x80] sm:$0xff] }
 0x337   : > { %v2207_v2 = vmul.f32 %v6949_v27, %v2172_v53  ;;  %3056 = vmatmul.bf16.gmra.mxu3 %v5620_v3  ;;  %v5690_v27 = vld [vmem:[%s8057_s1 + $0x2f0] sm:$0xff] }
 0x338   : > { %3165 = vmatmul.bf16.gmra.mxu0 %v5640_v14  ;;  %4172 = vmatpush.bf16.msra.mxu3 %v5690_v27 }
 0x339   : > { %v2241_v60 = vadd.f32 %v6958_v39, %v2207_v2 }
 0x33a   : > { %v3017_v49 = vpop.f32.mrf.mxu3 }
 0x33b   : > { %v2273_v5 = vmax.f32 %v2241_v60, 0.0  ;;  %v3018_v48 = vadd.f32 %v3017_v49, %v2929_v42  ;;  %v7265_v56 = vpop.f32.mrf.mxu2  ;;  %v5622_v49 = vld [vmem:[#allocation3 + $0x60] sm:$0xff] }
 0x33d   : > { %v5770_v52 = vpack.c.bf16 %v2273_v5, %v2272_v63  ;;  %v3107_v21 = vadd.f32 %v7138_v50, %v3018_v48  ;;  %v2934_v50 = vadd.f32 %v7215_v55, %v7100_v9 }
 0x33f   : > { %5930 = vst [vmem:[#allocation3 + $0x88] sm:$0xff] %v5770_v52   ;;  %v7232_v32 = vmax.f32 %v3107_v21, 0.0 }
 0x341   : > { %v3448_v43 = vpack.c.bf16 %v7232_v32, %v7232_v32  ;;  %v8077_v36 = vrot.slane %v7232_v32, 6  ;;  %v8076_v26 = vrot.slane %v7232_v32, 2 }
 0x342   : > { %v3019_v39 = vpop.f32.mrf.mxu3 }
 0x343   : > { %v3020_v29 = vadd.f32 %v3019_v39, %v2931_v57  ;;  %v3640_v9 = vunpack.c.l.b16 %v3448_v43  ;;  %v2939_v57 = vadd.f32 %v7215_v55, %v7115_v8  ;;  %v7288_v43 = vpop.f32.mrf.mxu2 }
 0x345   : > { %v3109_v33 = vadd.f32 %v7147_v15, %v3020_v29 }
 0x346   : > { %v5641_v37 = vld [vmem:[#allocation3 + $0x88] sm:$0xff] }
 0x347   : > { %v3187_v6 = vmax.f32 %v3109_v33, 0.0  ;;  %3061 = vmatmul.bf16.gmra.mxu3 %v5621_v51  ;;  %v7286_v33 = vpop.f32.mrf.mxu0 }
 0x348   : > { %3170 = vmatmul.bf16.gmra.mxu0 %v5641_v37 }
 0x349   : > { %v3221_v15 = vrot.slane %v3187_v6, 6  ;;  %v3449_v16 = vpack.c.bf16 %v3187_v6, %v3187_v6  ;;  %v3320_v58 = vrot.slane %v3187_v6, 2 }
 0x34a   : > { %v3022_v35 = vpop.f32.mrf.mxu3 }
 0x34b   : > { %v7252_v1 = vsel %vm3252_vm4, %v8077_v36, %v3221_v15  ;;  %v3641_v62 = vunpack.c.l.b16 %v3449_v16  ;;  %v3023_v38 = vadd.f32 %v3022_v35, %v2934_v50  ;;  %v3382_v25 = vsel %vm3351_vm5, %v8076_v26, %v3320_v58 }
 0x34c   : > { %v3480_v3 = vpack.c.bf16 %v3382_v25, %v3382_v25 }
 0x34d   : > { %v3672_v22 = vpack.c.b16 %v3641_v62, %v3640_v9  ;;  %v3112_v47 = vadd.f32 %v7160_v59, %v3023_v38 }
 0x34e   : > { %v7278_v52 = vunpack.c.l.b16 %v3480_v3 }
 0x34f   : > { %v3188_v54 = vmax.f32 %v3112_v47, 0.0  ;;  %4090 = vmatmul.bf16.vlgmr.msra.gmra.mxu2 %v3672_v22  ;;  %v2941_v47 = vadd.f32 %v7215_v55, %v7124_v44 }
 0x351   : > { %v3222_v61 = vrot.slane %v3188_v54, 6  ;;  %v3321_v59 = vrot.slane %v3188_v54, 2  ;;  %v3450_v63 = vpack.c.bf16 %v3188_v54, %v3188_v54 }
 0x352   : > { %v3024_v53 = vpop.f32.mrf.mxu3 }
 0x353   : > { %v3381_v14 = vsel %vm3351_vm5, %v3320_v58, %v3321_v59  ;;  %v3025_v42 = vadd.f32 %v3024_v53, %v2936_v24  ;;  %v3282_v19 = vsel %vm3252_vm4, %v3221_v15, %v3222_v61  ;;  %v3642_v37 = vunpack.c.l.b16 %v3450_v63  ;;  %v5689_v24 = vld [vmem:[%s8057_s1 + $0x2e8] sm:$0xff] }
 0x354   : > { %v3385_v2 = vsel %vm3318_vm6, %v3381_v14, 0.0  ;;  %v3287_v21 = vsel %vm3218_vm7, %v3282_v19, 0.0  ;;  %4173 = vmatpush.bf16.msra.mxu3 %v5689_v24  ;;  %v7310_v14 = vpop.f32.mrf.mxu0 }
 0x355   : > { %v3481_v13 = vpack.c.bf16 %v3385_v2, %v3385_v2  ;;  %v3114_v60 = vadd.f32 %v7174_v10, %v3025_v42  ;;  %v3418_v50 = vpack.c.bf16 %v3287_v21, %v3287_v21  ;;  %v7314_v42 = vpop.f32.mrf.mxu2  ;;  %v5623_v2 = vld [vmem:[#allocation3 + $0x68] sm:$0xff] }
 0x357   : > { %v7276_v5 = vunpack.c.l.b16 %v3481_v13  ;;  %v3189_v48 = vmax.f32 %v3114_v60, 0.0  ;;  %3066 = vmatmul.bf16.gmra.mxu3 %v5622_v49  ;;  %v7295_v62 = vunpack.c.l.b16 %v3418_v50 }
 0x359   : > { %v3223_v27 = vrot.slane %v3189_v48, 6  ;;  %v3322_v39 = vrot.slane %v3189_v48, 2  ;;  %v3451_v29 = vpack.c.bf16 %v3189_v48, %v3189_v48  ;;  %v3768_v10 = vpack.c.b16 %v7276_v5, %v7278_v52 }
 0x35a   : > { %v3027_v51 = vpop.f32.mrf.mxu3 }
 0x35b   : > { %v3028_v6 = vadd.f32 %v3027_v51, %v2939_v57  ;;  %v3643_v15 = vunpack.c.l.b16 %v3451_v29  ;;  %v3380_v16 = vsel %vm3351_vm5, %v3321_v59, %v3322_v39  ;;  %v3281_v8 = vsel %vm3252_vm4, %v3222_v61, %v3223_v27 }
 0x35c   : > { %v3419_v11 = vpack.c.bf16 %v3281_v8, %v3281_v8  ;;  %v3482_v53 = vpack.c.bf16 %v3380_v16, %v3380_v16  ;;  %v2944_v57 = vadd.f32 %v7215_v55, %v7131_v34 }
 0x35d   : > { %v3117_v35 = vadd.f32 %v7194_v30, %v3028_v6  ;;  %v3673_v9 = vpack.c.b16 %v3643_v15, %v3642_v37 }
 0x35e   : > { %v7297_v38 = vunpack.c.l.b16 %v3419_v11  ;;  %v7317_v63 = vunpack.c.l.b16 %v3482_v53 }
 0x35f   : > { %v3190_v58 = vmax.f32 %v3117_v35, 0.0  ;;  %4095 = vmatmul.bf16.gmra.mxu2 %v3673_v9 }
 0x361   : > { %v3224_v54 = vrot.slane %v3190_v58, 6  ;;  %v3323_v25 = vrot.slane %v3190_v58, 2  ;;  %v3452_v60 = vpack.c.bf16 %v3190_v58, %v3190_v58  ;;  %v7335_v58 = vpop.f32.mrf.mxu0 }
 0x362   : > { %v3029_v30 = vpop.f32.mrf.mxu3 }
 0x363   : > { %v3030_v61 = vadd.f32 %v3029_v30, %v2941_v47  ;;  %v3379_v59 = vsel %vm3351_vm5, %v3322_v39, %v3323_v25  ;;  %v3280_v3 = vsel %vm3252_vm4, %v3223_v27, %v3224_v54  ;;  %v3644_v50 = vunpack.c.l.b16 %v3452_v60  ;;  %v7341_v30 = vpop.f32.mrf.mxu2 }
 0x364   : > { %v3387_v44 = vsel %vm3318_vm6, %v3379_v59, 0.0  ;;  %v3289_v21 = vsel %vm3218_vm7, %v3280_v3, 0.0 }
 0x365   : > { %v3119_v19 = vadd.f32 %v7206_v45, %v3030_v61  ;;  %v3483_v13 = vpack.c.bf16 %v3387_v44, %v3387_v44  ;;  %v5673_v45 = vld [vmem:[%s8057_s1 + $0x268] sm:$0xff]  ;;  %v3420_v6 = vpack.c.bf16 %v3289_v21, %v3289_v21 }
 0x366   : > { %3995 = vmatpush.bf16.msra.mxu1 %v5673_v45 }
 0x367   : > { %v3191_v49 = vmax.f32 %v3119_v19, 0.0  ;;  %3071 = vmatmul.bf16.gmra.mxu3 %v5623_v2  ;;  %v7319_v48 = vunpack.c.l.b16 %v3483_v13  ;;  %v7337_v47 = vunpack.c.l.b16 %v3420_v6 }
 0x369   : > { %v3225_v27 = vrot.slane %v3191_v49, 6  ;;  %v3324_v39 = vrot.slane %v3191_v49, 2  ;;  %v3453_v29 = vpack.c.bf16 %v3191_v49, %v3191_v49  ;;  %v3769_v51 = vpack.c.b16 %v7319_v48, %v7317_v63  ;;  %v5624_v49 = vld [vmem:[#allocation3 + $0x70] sm:$0xff]  ;;  %v5670_v63 = vld [vmem:[%s8057_s1 + $0x250] sm:$0xff] }
 0x36a   : > { %v3032_v37 = vpop.f32.mrf.mxu3 }
 0x36b   : > { %v3033_v15 = vadd.f32 %v3032_v37, %v2944_v57  ;;  %v3645_v16 = vunpack.c.l.b16 %v3453_v29  ;;  %v3378_v8 = vsel %vm3351_vm5, %v3323_v25, %v3324_v39  ;;  %v3279_v34 = vsel %vm3252_vm4, %v3224_v54, %v3225_v27 }
 0x36c   : > { %v3421_v11 = vpack.c.bf16 %v3279_v34, %v3279_v34  ;;  %v2946_v54 = vadd.f32 %v7215_v55, %v7140_v0  ;;  %v3484_v19 = vpack.c.bf16 %v3378_v8, %v3378_v8  ;;  %v5642_v0 = vld [vmem:[#allocation3 + $0x90] sm:$0xff] }
 0x36d   : > { %v3122_v35 = vadd.f32 %v7222_v4, %v3033_v15  ;;  %v3674_v9 = vpack.c.b16 %v3645_v16, %v3644_v50  ;;  %v7362_v50 = vpop.f32.mrf.mxu0  ;;  %3175 = vmatmul.bf16.gmra.mxu0 %v5642_v0 }
 0x36e   : > { %v7339_v24 = vunpack.c.l.b16 %v3421_v11  ;;  %v7354_v45 = vunpack.c.l.b16 %v3484_v19 }
 0x36f   : > { %v3192_v61 = vmax.f32 %v3122_v35, 0.0  ;;  %4100 = vmatmul.bf16.gmra.mxu2 %v3674_v9 }
 0x371   : > { %v3226_v59 = vrot.slane %v3192_v61, 6  ;;  %v3325_v53 = vrot.slane %v3192_v61, 2  ;;  %v3454_v57 = vpack.c.bf16 %v3192_v61, %v3192_v61 }
 0x372   : > { %v3034_v4 = vpop.f32.mrf.mxu3 }
 0x373   : > { %v3035_v3 = vadd.f32 %v3034_v4, %v2946_v54  ;;  %v3377_v44 = vsel %vm3351_vm5, %v3324_v39, %v3325_v53  ;;  %v3278_v2 = vsel %vm3252_vm4, %v3225_v27, %v3226_v59  ;;  %v2949_v27 = vadd.f32 %v7215_v55, %v7149_v12 }
 0x374   : > { %v3389_v13 = vsel %vm3318_vm6, %v3377_v44, 0.0  ;;  %v3291_v39 = vsel %vm3218_vm7, %v3278_v2, 0.0  ;;  %v3646_v11 = vunpack.c.l.b16 %v3454_v57 }
 0x375   : > { %v3124_v60 = vadd.f32 %v7235_v40, %v3035_v3  ;;  %v3485_v21 = vpack.c.bf16 %v3389_v13, %v3389_v13  ;;  %v7364_v40 = vpop.f32.mrf.mxu2  ;;  %v3422_v35 = vpack.c.bf16 %v3291_v39, %v3291_v39 }
 0x377   : > { %v3193_v29 = vmax.f32 %v3124_v60, 0.0  ;;  %3076 = vmatmul.bf16.gmra.mxu3 %v5624_v49  ;;  %v7356_v37 = vunpack.c.l.b16 %v3485_v21  ;;  %v7373_v19 = vunpack.c.l.b16 %v3422_v35  ;;  %v2951_v49 = vadd.f32 %v7215_v55, %v7162_v23 }
 0x379   : > { %v3227_v6 = vrot.slane %v3193_v29, 6  ;;  %v3326_v15 = vrot.slane %v3193_v29, 2  ;;  %v3455_v16 = vpack.c.bf16 %v3193_v29, %v3193_v29 }
 0x37a   : > { %v3037_v34 = vpop.f32.mrf.mxu3 }
 0x37b   : > { %v3038_v9 = vadd.f32 %v3037_v34, %v2949_v27  ;;  %v3647_v61 = vunpack.c.l.b16 %v3455_v16  ;;  %v3376_v54 = vsel %vm3351_vm5, %v3325_v53, %v3326_v15  ;;  %v3277_v12 = vsel %vm3252_vm4, %v3226_v59, %v3227_v6  ;;  %v5688_v59 = vld [vmem:[%s8057_s1 + $0x2e0] sm:$0xff] }
 0x37c   : > { %v3423_v4 = vpack.c.bf16 %v3277_v12, %v3277_v12  ;;  %4174 = vmatpush.bf16.msra.mxu3 %v5688_v59  ;;  %v3486_v27 = vpack.c.bf16 %v3376_v54, %v3376_v54 }
 0x37d   : > { %v3127_v3 = vadd.f32 %v7257_v20, %v3038_v9  ;;  %v3675_v44 = vpack.c.b16 %v3647_v61, %v3646_v11  ;;  %v7384_v20 = vpop.f32.mrf.mxu0  ;;  %v7386_v0 = vpop.f32.mrf.mxu2  ;;  %v5625_v11 = vld [vmem:[#allocation3 + $0x78] sm:$0xff] }
 0x37e   : > { %v7375_v2 = vunpack.c.l.b16 %v3423_v4  ;;  %v5643_v61 = vld [vmem:[#allocation3 + $0x98] sm:$0xff]  ;;  %v5687_v4 = vld [vmem:[%s8057_s1 + $0x2d8] sm:$0xff] }
 0x37f   : > { %v3194_v13 = vmax.f32 %v3127_v3, 0.0  ;;  %4105 = vmatmul.bf16.gmra.mxu2 %v3675_v44  ;;  %3180 = vmatmul.bf16.gmra.mxu0 %v5643_v61 }
 0x380   : > { %4175 = vmatpush.bf16.msra.mxu3 %v5687_v4 }
 0x381   : > { %v3228_v53 = vrot.slane %v3194_v13, 6  ;;  %v3327_v21 = vrot.slane %v3194_v13, 2  ;;  %v3456_v9 = vpack.c.bf16 %v3194_v13, %v3194_v13 }
 0x382   : > { %v3039_v57 = vpop.f32.mrf.mxu3 }
 0x383   : > { %v3040_v29 = vadd.f32 %v3039_v57, %v2951_v49  ;;  %v3375_v39 = vsel %vm3351_vm5, %v3326_v15, %v3327_v21  ;;  %v3276_v23 = vsel %vm3252_vm4, %v3227_v6, %v3228_v53  ;;  %v7398_v15 = vunpack.c.l.b16 %v3486_v27  ;;  %v5672_v49 = vld [vmem:[%s8057_s1 + $0x260] sm:$0xff] }
 0x384   : > { %v3391_v16 = vsel %vm3318_vm6, %v3375_v39, 0.0  ;;  %v3293_v6 = vsel %vm3218_vm7, %v3276_v23, 0.0  ;;  %3996 = vmatpush.bf16.msra.mxu1 %v5672_v49 }
 0x385   : > { %v3129_v34 = vadd.f32 %v7286_v33, %v3040_v29  ;;  %v3487_v35 = vpack.c.bf16 %v3391_v16, %v3391_v16  ;;  %v2954_v33 = vadd.f32 %v7215_v55, %v7176_v46  ;;  %v3648_v29 = vunpack.c.l.b16 %v3456_v9  ;;  %v5686_v46 = vld [vmem:[%s8057_s1 + $0x2d0] sm:$0xff]  ;;  %v7420_v61 = vpop.f32.mrf.mxu2 }
 0x386   : > { %v3424_v39 = vpack.c.bf16 %v3293_v6, %v3293_v6  ;;  %4176 = vmatpush.bf16.msra.mxu3 %v5686_v46 }
 0x387   : > { %v3195_v12 = vmax.f32 %v3129_v34, 0.0  ;;  %3081 = vmatmul.bf16.gmra.mxu3 %v5625_v11  ;;  %v7400_v54 = vunpack.c.l.b16 %v3487_v35  ;;  %v7418_v11 = vpop.f32.mrf.mxu0 }
 0x388   : > { %v7423_v4 = vunpack.c.l.b16 %v3424_v39  ;;  %v5684_v39 = vld [vmem:[%s8057_s1 + $0x2c0] sm:$0xff] }
 0x389   : > { %v3229_v3 = vrot.slane %v3195_v12, 6  ;;  %v3328_v44 = vrot.slane %v3195_v12, 2  ;;  %v3457_v13 = vpack.c.bf16 %v3195_v12, %v3195_v12 }
 0x38a   : > { %v3042_v57 = vpop.f32.mrf.mxu3 }
 0x38b   : > { %v3043_v27 = vadd.f32 %v3042_v57, %v2954_v33  ;;  %v3649_v23 = vunpack.c.l.b16 %v3457_v13  ;;  %v3374_v16 = vsel %vm3351_vm5, %v3327_v21, %v3328_v44  ;;  %v3275_v34 = vsel %vm3252_vm4, %v3228_v53, %v3229_v3  ;;  %v5685_v21 = vld [vmem:[%s8057_s1 + $0x2c8] sm:$0xff] }
 0x38c   : > { %v3425_v35 = vpack.c.bf16 %v3275_v34, %v3275_v34  ;;  %v2956_v13 = vadd.f32 %v7215_v55, %v7196_v17  ;;  %4177 = vmatpush.bf16.msra.mxu3 %v5685_v21 }
 0x38d   : > { %v3132_v9 = vadd.f32 %v7310_v14, %v3043_v27  ;;  %v3676_v12 = vpack.c.b16 %v3649_v23, %v3648_v29  ;;  %v3488_v23 = vpack.c.bf16 %v3374_v16, %v3374_v16 }
 0x38e   : > { %v7425_v6 = vunpack.c.l.b16 %v3425_v35  ;;  %v5626_v35 = vld [vmem:[#allocation3 + $0x80] sm:$0xff] }
 0x38f   : > { %v3196_v33 = vmax.f32 %v3132_v9, 0.0  ;;  %4110 = vmatmul.bf16.gmra.mxu2 %v3676_v12  ;;  %v7444_v12 = vpop.f32.mrf.mxu0 }
 0x390   : > { %4178 = vmatpush.bf16.msra.mxu3 %v5684_v39 }
 0x391   : > { %v3230_v49 = vrot.slane %v3196_v33, 6  ;;  %v3329_v14 = vrot.slane %v3196_v33, 2  ;;  %v3458_v21 = vpack.c.bf16 %v3196_v33, %v3196_v33 }
 0x392   : > { %v3044_v57 = vpop.f32.mrf.mxu3 }
 0x393   : > { %v3045_v29 = vadd.f32 %v3044_v57, %v2956_v13  ;;  %v3373_v27 = vsel %vm3351_vm5, %v3328_v44, %v3329_v14  ;;  %v3274_v46 = vsel %vm3252_vm4, %v3229_v3, %v3230_v49  ;;  %v7446_v13 = vpop.f32.mrf.mxu2  ;;  %v7448_v44 = vunpack.c.l.b16 %v3488_v23 }
 0x394   : > { %v3393_v34 = vsel %vm3318_vm6, %v3373_v27, 0.0  ;;  %v3295_v3 = vsel %vm3218_vm7, %v3274_v46, 0.0  ;;  %v3650_v53 = vunpack.c.l.b16 %v3458_v21 }
 0x395   : > { %v3134_v17 = vadd.f32 %v7335_v58, %v3045_v29  ;;  %v3489_v9 = vpack.c.bf16 %v3393_v34, %v3393_v34  ;;  %v2959_v58 = vadd.f32 %v7215_v55, %v7208_v7 }
 0x397   : > { %v3197_v57 = vmax.f32 %v3134_v17, 0.0  ;;  %3086 = vmatmul.bf16.gmra.mxu3 %v5626_v35  ;;  %v7450_v16 = vunpack.c.l.b16 %v3489_v9  ;;  %v3426_v17 = vpack.c.bf16 %v3295_v3, %v3295_v3  ;;  %v7467_v21 = vpop.f32.mrf.mxu0 }
 0x399   : > { %v3231_v29 = vrot.slane %v3197_v57, 6  ;;  %v3330_v39 = vrot.slane %v3197_v57, 2  ;;  %v3459_v27 = vpack.c.bf16 %v3197_v57, %v3197_v57  ;;  %v7463_v22 = vunpack.c.l.b16 %v3426_v17 }
 0x39a   : > { %v3047_v34 = vpop.f32.mrf.mxu3 }
 0x39b   : > { %v3048_v35 = vadd.f32 %v3047_v34, %v2959_v58  ;;  %v3651_v23 = vunpack.c.l.b16 %v3459_v27  ;;  %v3372_v9 = vsel %vm3351_vm5, %v3329_v14, %v3330_v39  ;;  %v3273_v46 = vsel %vm3252_vm4, %v3230_v49, %v3231_v29  ;;  %v7473_v58 = vpop.f32.mrf.mxu2 }
 0x39c   : > { %v3427_v60 = vpack.c.bf16 %v3273_v46, %v3273_v46  ;;  %v2961_v14 = vadd.f32 %v7215_v55, %v7224_v31  ;;  %v3490_v34 = vpack.c.bf16 %v3372_v9, %v3372_v9 }
 0x39d   : > { %v3137_v7 = vadd.f32 %v7362_v50, %v3048_v35  ;;  %v3677_v25 = vpack.c.b16 %v3651_v23, %v3650_v53  ;;  %v5627_v23 = vld [vmem:[#allocation3 + $0x88] sm:$0xff] }
 0x39e   : > { %v7465_v57 = vunpack.c.l.b16 %v3427_v60  ;;  %v7482_v3 = vunpack.c.l.b16 %v3490_v34 }
 0x39f   : > { %v3198_v26 = vmax.f32 %v3137_v7, 0.0  ;;  %4115 = vmatmul.bf16.gmra.mxu2 %v3677_v25 }
 0x3a1   : > { %v3232_v49 = vrot.slane %v3198_v26, 6  ;;  %v3331_v27 = vrot.slane %v3198_v26, 2  ;;  %v3460_v46 = vpack.c.bf16 %v3198_v26, %v3198_v26 }
 0x3a2   : > { %v3049_v50 = vpop.f32.mrf.mxu3 }
 0x3a3   : > { %v3050_v53 = vadd.f32 %v3049_v50, %v2961_v14  ;;  %v3371_v60 = vsel %vm3351_vm5, %v3330_v39, %v3331_v27  ;;  %v3272_v25 = vsel %vm3252_vm4, %v3231_v29, %v3232_v49  ;;  %v2964_v29 = vadd.f32 %v7215_v55, %v7239_v28 }
 0x3a4   : > { %v3395_v17 = vsel %vm3318_vm6, %v3371_v60, 0.0  ;;  %v3297_v39 = vsel %vm3218_vm7, %v3272_v25, 0.0 }
 0x3a5   : > { %v3139_v35 = vadd.f32 %v7384_v20, %v3050_v53  ;;  %v3491_v31 = vpack.c.bf16 %v3395_v17, %v3395_v17  ;;  %v5671_v20 = vld [vmem:[%s8057_s1 + $0x258] sm:$0xff]  ;;  %v7495_v53 = vpop.f32.mrf.mxu0  ;;  %v3652_v17 = vunpack.c.l.b16 %v3460_v46 }
 0x3a6   : > { %3997 = vmatpush.bf16.msra.mxu1 %v5671_v20 }
 0x3a7   : > { %v3199_v7 = vmax.f32 %v3139_v35, 0.0  ;;  %3091 = vmatmul.bf16.gmra.mxu3 %v5627_v23  ;;  %v7484_v14 = vunpack.c.l.b16 %v3491_v31  ;;  %v3428_v35 = vpack.c.bf16 %v3297_v39, %v3297_v39  ;;  %v7497_v23 = vpop.f32.mrf.mxu2 }
 0x3a9   : > { %v3233_v9 = vrot.slane %v3199_v7, 6  ;;  %v3332_v50 = vrot.slane %v3199_v7, 2  ;;  %v3461_v60 = vpack.c.bf16 %v3199_v7, %v3199_v7  ;;  %v7504_v59 = vunpack.c.l.b16 %v3428_v35 }
 0x3aa   : > { %v3052_v34 = vpop.f32.mrf.mxu3  ;;  %3998 = vmatpush.bf16.msra.mxu1 %v5670_v63 }
 0x3ab   : > { %v3053_v25 = vadd.f32 %v3052_v34, %v2964_v29  ;;  %v3653_v31 = vunpack.c.l.b16 %v3461_v60  ;;  %v3370_v28 = vsel %vm3351_vm5, %v3331_v27, %v3332_v50  ;;  %v3271_v7 = vsel %vm3252_vm4, %v3232_v49, %v3233_v9 }
 0x3ac   : > { %v3429_v36 = vpack.c.bf16 %v3271_v7, %v3271_v7  ;;  %v2966_v29 = vadd.f32 %v7215_v55, %v7265_v56  ;;  %v3492_v34 = vpack.c.bf16 %v3370_v28, %v3370_v28  ;;  %v2969_v7 = vadd.f32 %v7215_v55, %v7288_v43 }
 0x3ad   : > { %v3142_v33 = vadd.f32 %v7418_v11, %v3053_v25  ;;  %v3678_v26 = vpack.c.b16 %v3653_v31, %v3652_v17  ;;  %v7516_v17 = vpop.f32.mrf.mxu0 }
 0x3ae   : > { %v7506_v8 = vunpack.c.l.b16 %v3429_v36 }
 0x3af   : > { %v3200_v46 = vmax.f32 %v3142_v33, 0.0  ;;  %4120 = vmatmul.bf16.gmra.mxu2 %v3678_v26  ;;  %v7520_v26 = vpop.f32.mrf.mxu2 }
 0x3b1   : > { %v3234_v27 = vrot.slane %v3200_v46, 6  ;;  %v3333_v60 = vrot.slane %v3200_v46, 2  ;;  %v3462_v25 = vpack.c.bf16 %v3200_v46, %v3200_v46 }
 0x3b2   : > { %v3054_v20 = vpop.f32.mrf.mxu3 }
 0x3b3   : > { %v3055_v49 = vadd.f32 %v3054_v20, %v2966_v29  ;;  %v3369_v11 = vsel %vm3351_vm5, %v3332_v50, %v3333_v60  ;;  %v3270_v36 = vsel %vm3252_vm4, %v3233_v9, %v3234_v27  ;;  %v7526_v50 = vunpack.c.l.b16 %v3492_v34 }
 0x3b4   : > { %v3397_v33 = vsel %vm3318_vm6, %v3369_v11, 0.0  ;;  %v3299_v9 = vsel %vm3218_vm7, %v3270_v36, 0.0  ;;  %v3654_v11 = vunpack.c.l.b16 %v3462_v25 }
 0x3b5   : > { %v3144_v56 = vadd.f32 %v7444_v12, %v3055_v49  ;;  %v3493_v35 = vpack.c.bf16 %v3397_v33, %v3397_v33  ;;  %v3430_v5 = vpack.c.bf16 %v3299_v9, %v3299_v9 }
 0x3b7   : > { %v3201_v31 = vmax.f32 %v3144_v56, 0.0  ;;  %4179 = vmatmul.bf16.vlgmr.msra.gmra.mxu3 %v3768_v10  ;;  %v7528_v28 = vunpack.c.l.b16 %v3493_v35  ;;  %v3153_v35 = vpop.f32.mrf.mxu0  ;;  %v7545_v46 = vpop.f32.mrf.mxu2 }
 0x3b9   : > { %v3235_v29 = vrot.slane %v3201_v31, 6  ;;  %v3334_v20 = vrot.slane %v3201_v31, 2  ;;  %v3463_v12 = vpack.c.bf16 %v3201_v31, %v3201_v31  ;;  %v7541_v31 = vunpack.c.l.b16 %v3430_v5 }
 0x3ba   : > { %v3057_v49 = vpop.f32.mrf.mxu3 }
 0x3bb   : > { %v3058_v52 = vadd.f32 %v3057_v49, %v2969_v7  ;;  %v3655_v10 = vunpack.c.l.b16 %v3463_v12  ;;  %v3368_v34 = vsel %vm3351_vm5, %v3333_v60, %v3334_v20  ;;  %v3269_v36 = vsel %vm3252_vm4, %v3234_v27, %v3235_v29  ;;  %8158 = vst [vmem:[#allocation5_spill] sm:$0xff] %v7541_v31 }
 0x3bc   : > { %v3431_v33 = vpack.c.bf16 %v3269_v36, %v3269_v36  ;;  %v2971_v60 = vadd.f32 %v7215_v55, %v7314_v42 }
 0x3bd   : > { %v3147_v43 = vadd.f32 %v7467_v21, %v3058_v52  ;;  %v3679_v56 = vpack.c.b16 %v3655_v10, %v3654_v11  ;;  %v3494_v11 = vpack.c.bf16 %v3368_v34, %v3368_v34 }
 0x3be   : > { %v7543_v39 = vunpack.c.l.b16 %v3431_v33 }
 0x3bf   : > { %v3202_v25 = vmax.f32 %v3147_v43, 0.0  ;;  %4125 = vmatmul.bf16.gmra.mxu2 %v3679_v56  ;;  %v7561_v42 = vunpack.c.l.b16 %v3494_v11  ;;  %v3156_v34 = vpop.f32.mrf.mxu0 }
 0x3c1   : > { %v3236_v27 = vrot.slane %v3202_v25, 6  ;;  %v3335_v7 = vrot.slane %v3202_v25, 2  ;;  %v3464_v33 = vpack.c.bf16 %v3202_v25, %v3202_v25 }
 0x3c2   : > { %v3059_v12 = vpop.f32.mrf.mxu3 }
 0x3c3   : > { %v3060_v21 = vadd.f32 %v3059_v12, %v2971_v60  ;;  %v3367_v49 = vsel %vm3351_vm5, %v3334_v20, %v3335_v7  ;;  %v3268_v5 = vsel %vm3252_vm4, %v3235_v29, %v3236_v27  ;;  %v2974_v29 = vadd.f32 %v7215_v55, %v7341_v30  ;;  %v7569_v60 = vpop.f32.mrf.mxu2 }
 0x3c4   : > { %v3399_v52 = vsel %vm3318_vm6, %v3367_v49, 0.0  ;;  %v3301_v20 = vsel %vm3218_vm7, %v3268_v5, 0.0 }
 0x3c5   : > { %v3149_v10 = vadd.f32 %v7495_v53, %v3060_v21  ;;  %v3495_v36 = vpack.c.bf16 %v3399_v52, %v3399_v52  ;;  %v3656_v21 = vunpack.c.l.b16 %v3464_v33  ;;  %v3432_v49 = vpack.c.bf16 %v3301_v20, %v3301_v20 }
 0x3c6   : > { %v2976_v20 = vadd.f32 %v7215_v55, %v7364_v40 }
 0x3c7   : > { %v3203_v43 = vmax.f32 %v3149_v10, 0.0  ;;  %4184 = vmatmul.bf16.gmra.mxu3 %v3769_v51  ;;  %v7563_v56 = vunpack.c.l.b16 %v3495_v36  ;;  %v7581_v9 = vunpack.c.l.b16 %v3432_v49 }
 0x3c9   : > { %v3237_v53 = vrot.slane %v3203_v43, 6  ;;  %v3336_v25 = vrot.slane %v3203_v43, 2  ;;  %v3465_v12 = vpack.c.bf16 %v3203_v43, %v3203_v43 }
 0x3ca   : > { %v3062_v51 = vpop.f32.mrf.mxu3 }
 0x3cb   : > { %v3063_v11 = vadd.f32 %v3062_v51, %v2974_v29  ;;  %v3657_v5 = vunpack.c.l.b16 %v3465_v12  ;;  %v3366_v30 = vsel %vm3351_vm5, %v3335_v7, %v3336_v25  ;;  %v3267_v52 = vsel %vm3252_vm4, %v3236_v27, %v3237_v53  ;;  %v3158_v12 = vpop.f32.mrf.mxu0  ;;  %v7589_v63 = vpop.f32.mrf.mxu2 }
 0x3cc   : > { %v3433_v10 = vpack.c.bf16 %v3267_v52, %v3267_v52 }
 0x3cd   : > { %v3152_v36 = vadd.f32 %v7516_v17, %v3063_v11  ;;  %v3680_v43 = vpack.c.b16 %v3657_v5, %v3656_v21  ;;  %v3496_v21 = vpack.c.bf16 %v3366_v30, %v3366_v30 }
 0x3ce   : > { %v7583_v31 = vunpack.c.l.b16 %v3433_v10 }
 0x3cf   : > { %v3204_v48 = vmax.f32 %v3152_v36, 0.0  ;;  %4130 = vmatmul.bf16.gmra.mxu2 %v3680_v43  ;;  %v8159_v36 = vpack.c.b16 %v7356_v37, %v7354_v45  ;;  %v7600_v43 = vunpack.c.l.b16 %v3496_v21 }
 0x3d1   : > { %v3238_v7 = vrot.slane %v3204_v48, 6  ;;  %v3337_v29 = vrot.slane %v3204_v48, 2  ;;  %v3466_v40 = vpack.c.bf16 %v3204_v48, %v3204_v48 }
 0x3d2   : > { %v3064_v27 = vpop.f32.mrf.mxu3 }
 0x3d3   : > { %v3065_v17 = vadd.f32 %v3064_v27, %v2976_v20  ;;  %v3365_v51 = vsel %vm3351_vm5, %v3336_v25, %v3337_v29  ;;  %v3266_v49 = vsel %vm3252_vm4, %v3237_v53, %v3238_v7  ;;  %v2979_v53 = vadd.f32 %v7215_v55, %v7386_v0  ;;  %v7614_v0 = vpop.f32.mrf.mxu2 }
 0x3d4   : > { %v3401_v11 = vsel %vm3318_vm6, %v3365_v51, 0.0  ;;  %v3303_v25 = vsel %vm3218_vm7, %v3266_v49, 0.0  ;;  %v3658_v51 = vunpack.c.l.b16 %v3466_v40 }
 0x3d5   : > { %v3154_v5 = vadd.f32 %v3153_v35, %v3065_v17  ;;  %v3497_v52 = vpack.c.bf16 %v3401_v11, %v3401_v11  ;;  %v3434_v45 = vpack.c.bf16 %v3303_v25, %v3303_v25 }
 0x3d7   : > { %v3205_v10 = vmax.f32 %v3154_v5, 0.0  ;;  %4189 = vmatmul.bf16.gmra.mxu3 %v8159_v36  ;;  %v7602_v20 = vunpack.c.l.b16 %v3497_v52  ;;  %v3161_v5 = vpop.f32.mrf.mxu0  ;;  %v7616_v33 = vunpack.c.l.b16 %v3434_v45 }
 0x3d9   : > { %v3239_v30 = vrot.slane %v3205_v10, 6  ;;  %v3338_v27 = vrot.slane %v3205_v10, 2  ;;  %v3467_v35 = vpack.c.bf16 %v3205_v10, %v3205_v10  ;;  %8160 = vst [vmem:[#allocation4_spill] sm:$0xff] %v7616_v33 }
 0x3da   : > { %v3067_v17 = vpop.f32.mrf.mxu3 }
 0x3db   : > { %v3068_v37 = vadd.f32 %v3067_v17, %v2979_v53  ;;  %v3659_v21 = vunpack.c.l.b16 %v3467_v35  ;;  %v3364_v11 = vsel %vm3351_vm5, %v3337_v29, %v3338_v27  ;;  %v3265_v49 = vsel %vm3252_vm4, %v3238_v7, %v3239_v30 }
 0x3dc   : > { %v3435_v52 = vpack.c.bf16 %v3265_v49, %v3265_v49  ;;  %v2981_v29 = vadd.f32 %v7215_v55, %v7420_v61 }
 0x3dd   : > { %v3157_v36 = vadd.f32 %v3156_v34, %v3068_v37  ;;  %v3681_v10 = vpack.c.b16 %v3659_v21, %v3658_v51  ;;  %v3498_v51 = vpack.c.bf16 %v3364_v11, %v3364_v11 }
 0x3de   : > { %v7618_v48 = vunpack.c.l.b16 %v3435_v52 }
 0x3df   : > { %v3206_v40 = vmax.f32 %v3157_v36, 0.0  ;;  %4135 = vmatmul.bf16.gmra.mxu2 %v3681_v10  ;;  %v3163_v52 = vpop.f32.mrf.mxu0  ;;  %v7630_v10 = vpop.f32.mrf.mxu2 }
 0x3e0   : > { %8161 = vst [vmem:[#allocation7_spill] sm:$0xff] %v7618_v48 }
 0x3e1   : > { %v3240_v53 = vrot.slane %v3206_v40, 6  ;;  %v3339_v7 = vrot.slane %v3206_v40, 2  ;;  %v3468_v36 = vpack.c.bf16 %v3206_v40, %v3206_v40 }
 0x3e2   : > { %v3069_v35 = vpop.f32.mrf.mxu3 }
 0x3e3   : > { %v3070_v17 = vadd.f32 %v3069_v35, %v2981_v29  ;;  %v3363_v34 = vsel %vm3351_vm5, %v3338_v27, %v3339_v7  ;;  %v3264_v45 = vsel %vm3252_vm4, %v3239_v30, %v3240_v53  ;;  %v8162_v29 = vpack.c.b16 %v7400_v54, %v7398_v15 }
 0x3e4   : > { %v3403_v37 = vsel %vm3318_vm6, %v3363_v34, 0.0  ;;  %v7635_v35 = vunpack.c.l.b16 %v3498_v51  ;;  %v3305_v30 = vsel %vm3218_vm7, %v3264_v45, 0.0  ;;  %v5669_v34 = vld [vmem:[%s8057_s1 + $0x248] sm:$0xff]  ;;  %v3660_v51 = vunpack.c.l.b16 %v3468_v36 }
 0x3e5   : > { %v3159_v21 = vadd.f32 %v3158_v12, %v3070_v17  ;;  %v3499_v49 = vpack.c.bf16 %v3403_v37, %v3403_v37  ;;  %v2984_v12 = vadd.f32 %v7215_v55, %v7446_v13  ;;  %v3436_v37 = vpack.c.bf16 %v3305_v30, %v3305_v30  ;;  %3999 = vmatpush.bf16.msra.mxu1 %v5669_v34 }
 0x3e7   : > { %v3207_v61 = vmax.f32 %v3159_v21, 0.0  ;;  %4194 = vmatmul.bf16.gmra.mxu3 %v8162_v29  ;;  %v7637_v27 = vunpack.c.l.b16 %v3499_v49  ;;  %v7652_v33 = vunpack.c.l.b16 %v3436_v37  ;;  %v3166_v36 = vpop.f32.mrf.mxu0 }
 0x3e9   : > { %v3241_v11 = vrot.slane %v3207_v61, 6  ;;  %v3340_v17 = vrot.slane %v3207_v61, 2  ;;  %v3469_v40 = vpack.c.bf16 %v3207_v61, %v3207_v61  ;;  %8163 = vst [vmem:[#allocation6_spill] sm:$0xff] %v7652_v33 }
 0x3ea   : > { %v3072_v54 = vpop.f32.mrf.mxu3 }
 0x3eb   : > { %v3073_v21 = vadd.f32 %v3072_v54, %v2984_v12  ;;  %v3661_v49 = vunpack.c.l.b16 %v3469_v40  ;;  %v3362_v45 = vsel %vm3351_vm5, %v3339_v7, %v3340_v17  ;;  %v3263_v13 = vsel %vm3252_vm4, %v3240_v53, %v3241_v11  ;;  %v7660_v7 = vpop.f32.mrf.mxu2 }
 0x3ec   : > { %v3437_v61 = vpack.c.bf16 %v3263_v13, %v3263_v13  ;;  %v2986_v12 = vadd.f32 %v7215_v55, %v7473_v58 }
 0x3ed   : > { %v3162_v29 = vadd.f32 %v3161_v5, %v3073_v21  ;;  %v3682_v25 = vpack.c.b16 %v3661_v49, %v3660_v51  ;;  %v3500_v51 = vpack.c.bf16 %v3362_v45, %v3362_v45 }
 0x3ee   : > { %v7654_v48 = vunpack.c.l.b16 %v3437_v61  ;;  %v8164_v61 = vpack.c.b16 %v7450_v16, %v7448_v44 }
 0x3ef   : > { %v3208_v15 = vmax.f32 %v3162_v29, 0.0  ;;  %4140 = vmatmul.bf16.gmra.mxu2 %v3682_v25  ;;  %v7671_v29 = vunpack.c.l.b16 %v3500_v51  ;;  %v3168_v44 = vpop.f32.mrf.mxu0 }
 0x3f1   : > { %v3242_v40 = vrot.slane %v3208_v15, 6  ;;  %v3341_v53 = vrot.slane %v3208_v15, 2  ;;  %v3470_v13 = vpack.c.bf16 %v3208_v15, %v3208_v15 }
 0x3f2   : > { %v3074_v34 = vpop.f32.mrf.mxu3 }
 0x3f3   : > { %v3075_v5 = vadd.f32 %v3074_v34, %v2986_v12  ;;  %v3361_v54 = vsel %vm3351_vm5, %v3340_v17, %v3341_v53  ;;  %v3262_v25 = vsel %vm3252_vm4, %v3241_v11, %v3242_v40  ;;  %v2989_v11 = vadd.f32 %v7215_v55, %v7497_v23  ;;  %v7679_v45 = vpop.f32.mrf.mxu2 }
 0x3f4   : > { %v3405_v37 = vsel %vm3318_vm6, %v3361_v54, 0.0  ;;  %v3307_v17 = vsel %vm3218_vm7, %v3262_v25, 0.0  ;;  %v3662_v54 = vunpack.c.l.b16 %v3470_v13  ;;  %v8167_v13 = vpack.c.b16 %v7484_v14, %v7482_v3 }
 0x3f5   : > { %v3164_v21 = vadd.f32 %v3163_v52, %v3075_v5  ;;  %v3501_v49 = vpack.c.bf16 %v3405_v37, %v3405_v37  ;;  %v3438_v51 = vpack.c.bf16 %v3307_v17, %v3307_v17  ;;  %v7696_v17 = vld [vmem:[%s8058_s2 + $0x3] ss:$0 sm:$0xff] }
 0x3f7   : > { %v3209_v58 = vmax.f32 %v3164_v21, 0.0  ;;  %4199 = vmatmul.bf16.gmra.mxu3 %v8164_v61  ;;  %v7673_v12 = vunpack.c.l.b16 %v3501_v49  ;;  %v7687_v30 = vunpack.c.l.b16 %v3438_v51 }
 0x3f9   : > { %v3243_v52 = vrot.slane %v3209_v58, 6  ;;  %v3342_v34 = vrot.slane %v3209_v58, 2  ;;  %v3471_v15 = vpack.c.bf16 %v3209_v58, %v3209_v58  ;;  %8165 = vst [vmem:[#allocation9_spill] sm:$0xff] %v7687_v30 }
 0x3fa   : > { %v3077_v16 = vpop.f32.mrf.mxu3 }
 0x3fb   : > { %v3078_v37 = vadd.f32 %v3077_v16, %v2989_v11  ;;  %v3663_v21 = vunpack.c.l.b16 %v3471_v15  ;;  %v3360_v25 = vsel %vm3351_vm5, %v3341_v53, %v3342_v34  ;;  %v3261_v55 = vsel %vm3252_vm4, %v3242_v40, %v3243_v52  ;;  %v7700_v15 = vpop.f32.mrf.mxu2 }
 0x3fc   : > { %v3439_v23 = vpack.c.bf16 %v3261_v55, %v3261_v55  ;;  %v2991_v40 = vadd.f32 %v7696_v17, %v7520_v26  ;;  %v3502_v51 = vpack.c.bf16 %v3360_v25, %v3360_v25 }
 0x3fd   : > { %v3167_v49 = vadd.f32 %v3166_v36, %v3078_v37  ;;  %v3683_v61 = vpack.c.b16 %v3663_v21, %v3662_v54  ;;  %v3171_v21 = vpop.f32.mrf.mxu0 }
 0x3fe   : > { %v7689_v58 = vunpack.c.l.b16 %v3439_v23 }
 0x3ff   : > { %v3210_v5 = vmax.f32 %v3167_v49, 0.0  ;;  %4145 = vmatmul.bf16.gmra.mxu2 %v3683_v61 }
 0x400   : > { %8166 = vst [vmem:[#allocation8_spill] sm:$0xff] %v7689_v58 }
 0x401   : > { %v3244_v53 = vrot.slane %v3210_v5, 6  ;;  %v3343_v36 = vrot.slane %v3210_v5, 2  ;;  %v3472_v26 = vpack.c.bf16 %v3210_v5, %v3210_v5  ;;  %v5668_v5 = vld [vmem:[%s8057_s1 + $0x240] sm:$0xff] }
 0x402   : > { %v3079_v11 = vpop.f32.mrf.mxu3  ;;  %4000 = vmatpush.bf16.msra.mxu1 %v5668_v5 }
 0x403   : > { %v3080_v16 = vadd.f32 %v3079_v11, %v2991_v40  ;;  %v3359_v54 = vsel %vm3351_vm5, %v3342_v34, %v3343_v36  ;;  %v3260_v37 = vsel %vm3252_vm4, %v3243_v52, %v3244_v53  ;;  %v7711_v40 = vunpack.c.l.b16 %v3502_v51 }
 0x404   : > { %v3407_v55 = vsel %vm3318_vm6, %v3359_v54, 0.0  ;;  %v3309_v34 = vsel %vm3218_vm7, %v3260_v37, 0.0  ;;  %v2994_v52 = vadd.f32 %v7696_v17, %v7545_v46 }
 0x405   : > { %v3169_v23 = vadd.f32 %v3168_v44, %v3080_v16  ;;  %v3503_v49 = vpack.c.bf16 %v3407_v55, %v3407_v55  ;;  %v3440_v16 = vpack.c.bf16 %v3309_v34, %v3309_v34  ;;  %v3173_v58 = vpop.f32.mrf.mxu0 }
 0x407   : > { %v3211_v61 = vmax.f32 %v3169_v23, 0.0  ;;  %4204 = vmatmul.bf16.gmra.mxu3 %v8167_v13  ;;  %v7713_v11 = vunpack.c.l.b16 %v3503_v49  ;;  %v3664_v13 = vunpack.c.l.b16 %v3472_v26  ;;  %v7728_v49 = vpop.f32.mrf.mxu2  ;;  %v7730_v33 = vunpack.c.l.b16 %v3440_v16 }
 0x409   : > { %v3245_v25 = vrot.slane %v3211_v61, 6  ;;  %v3344_v54 = vrot.slane %v3211_v61, 2  ;;  %v3473_v44 = vpack.c.bf16 %v3211_v61, %v3211_v61  ;;  %8168 = vst [vmem:[#allocation11_spill] sm:$0xff] %v7730_v33 }
 0x40a   : > { %v3082_v14 = vpop.f32.mrf.mxu3 }
 0x40b   : > { %v3083_v51 = vadd.f32 %v3082_v14, %v2994_v52  ;;  %v3665_v55 = vunpack.c.l.b16 %v3473_v44  ;;  %v3358_v37 = vsel %vm3351_vm5, %v3343_v36, %v3344_v54  ;;  %v3259_v46 = vsel %vm3252_vm4, %v3244_v53, %v3245_v25 }
 0x40c   : > { %v3441_v23 = vpack.c.bf16 %v3259_v46, %v3259_v46  ;;  %v2996_v36 = vadd.f32 %v7696_v17, %v7569_v60  ;;  %v3504_v14 = vpack.c.bf16 %v3358_v37, %v3358_v37 }
 0x40d   : > { %v3172_v61 = vadd.f32 %v3171_v21, %v3083_v51  ;;  %v3684_v30 = vpack.c.b16 %v3665_v55, %v3664_v13  ;;  %v3176_v55 = vpop.f32.mrf.mxu0 }
 0x40e   : > { %v7732_v3 = vunpack.c.l.b16 %v3441_v23 }
 0x40f   : > { %v3212_v26 = vmax.f32 %v3172_v61, 0.0  ;;  %4150 = vmatmul.bf16.gmra.mxu2 %v3684_v30  ;;  %v7744_v23 = vpop.f32.mrf.mxu2  ;;  %v8169_v61 = vpack.c.b16 %v7528_v28, %v7526_v50 }
 0x411   : > { %v3246_v52 = vrot.slane %v3212_v26, 6  ;;  %v3345_v53 = vrot.slane %v3212_v26, 2  ;;  %v3474_v46 = vpack.c.bf16 %v3212_v26, %v3212_v26 }
 0x412   : > { %v3084_v44 = vpop.f32.mrf.mxu3 }
 0x413   : > { %v3085_v5 = vadd.f32 %v3084_v44, %v2996_v36  ;;  %v3357_v21 = vsel %vm3351_vm5, %v3344_v54, %v3345_v53  ;;  %v3258_v13 = vsel %vm3252_vm4, %v3245_v25, %v3246_v52  ;;  %v7749_v36 = vunpack.c.l.b16 %v3504_v14 }
 0x414   : > { %v3409_v30 = vsel %vm3318_vm6, %v3357_v21, 0.0  ;;  %v3311_v25 = vsel %vm3218_vm7, %v3258_v13, 0.0 }
 0x415   : > { %v3174_v16 = vadd.f32 %v3173_v58, %v3085_v5  ;;  %v3505_v51 = vpack.c.bf16 %v3409_v30, %v3409_v30  ;;  %v2999_v58 = vadd.f32 %v7696_v17, %v7589_v63  ;;  %v3666_v30 = vunpack.c.l.b16 %v3474_v46  ;;  %v3178_v5 = vpop.f32.mrf.mxu0 }
 0x416   : > { %v3442_v50 = vpack.c.bf16 %v3311_v25, %v3311_v25  ;;  %v3001_v25 = vadd.f32 %v7696_v17, %v7614_v0 }
 0x417   : > { %v3213_v60 = vmax.f32 %v3174_v16, 0.0  ;;  %4209 = vmatmul.bf16.gmra.mxu3 %v8169_v61  ;;  %v7751_v54 = vunpack.c.l.b16 %v3505_v51 }
 0x418   : > { %v7763_v34 = vunpack.c.l.b16 %v3442_v50 }
 0x419   : > { %v3247_v37 = vrot.slane %v3213_v60, 6  ;;  %v3346_v44 = vrot.slane %v3213_v60, 2  ;;  %v3475_v26 = vpack.c.bf16 %v3213_v60, %v3213_v60 }
 0x41a   : > { %v3087_v21 = vpop.f32.mrf.mxu3  ;;  %8170 = vst [vmem:[#allocation10_spill] sm:$0xff] %v7763_v34 }
 0x41b   : > { %v3088_v28 = vadd.f32 %v3087_v21, %v2999_v58  ;;  %v3667_v14 = vunpack.c.l.b16 %v3475_v26  ;;  %v3356_v16 = vsel %vm3351_vm5, %v3345_v53, %v3346_v44  ;;  %v3257_v13 = vsel %vm3252_vm4, %v3246_v52, %v3247_v37  ;;  %v7771_v53 = vpop.f32.mrf.mxu2 }
 0x41c   : > { %v3443_v51 = vpack.c.bf16 %v3257_v13, %v3257_v13 }
 0x41d   : > { %v3177_v61 = vadd.f32 %v3176_v55, %v3088_v28  ;;  %v3685_v63 = vpack.c.b16 %v3667_v14, %v3666_v30  ;;  %v3506_v30 = vpack.c.bf16 %v3356_v16, %v3356_v16 }
 0x41e   : > { %v7765_v60 = vunpack.c.l.b16 %v3443_v51 }
 0x41f   : > { %v3214_v33 = vmax.f32 %v3177_v61, 0.0  ;;  %4155 = vmatmul.bf16.gmra.mxu2 %v3685_v63  ;;  %v8171_v61 = vpack.c.b16 %v7563_v56, %v7561_v42  ;;  %v7782_v63 = vunpack.c.l.b16 %v3506_v30 }
 0x421   : > { %v3248_v58 = vrot.slane %v3214_v33, 6  ;;  %v3347_v52 = vrot.slane %v3214_v33, 2  ;;  %v3476_v51 = vpack.c.bf16 %v3214_v33, %v3214_v33 }
 0x422   : > { %v3089_v26 = vpop.f32.mrf.mxu3 }
 0x423   : > { %v3090_v55 = vadd.f32 %v3089_v26, %v3001_v25  ;;  %v3355_v21 = vsel %vm3351_vm5, %v3346_v44, %v3347_v52  ;;  %v3256_v50 = vsel %vm3252_vm4, %v3247_v37, %v3248_v58  ;;  %v3004_v37 = vadd.f32 %v7696_v17, %v7630_v10  ;;  %v7792_v30 = vpop.f32.mrf.mxu2 }
 0x424   : > { %v3411_v28 = vsel %vm3318_vm6, %v3355_v21, 0.0  ;;  %v3313_v44 = vsel %vm3218_vm7, %v3256_v50, 0.0  ;;  %v3668_v42 = vunpack.c.l.b16 %v3476_v51 }
 0x425   : > { %v3179_v14 = vadd.f32 %v3178_v5, %v3090_v55  ;;  %v3507_v13 = vpack.c.bf16 %v3411_v28, %v3411_v28  ;;  %v3181_v55 = vpop.f32.mrf.mxu0  ;;  %v3444_v56 = vpack.c.bf16 %v3313_v44, %v3313_v44  ;;  %v3006_v44 = vadd.f32 %v7696_v17, %v7660_v7 }
 0x427   : > { %v3215_v0 = vmax.f32 %v3179_v14, 0.0  ;;  %4214 = vmatmul.bf16.gmra.mxu3 %v8171_v61  ;;  %v7784_v25 = vunpack.c.l.b16 %v3507_v13  ;;  %v7798_v46 = vunpack.c.l.b16 %v3444_v56 }
 0x429   : > { %v3249_v16 = vrot.slane %v3215_v0, 6  ;;  %v3348_v26 = vrot.slane %v3215_v0, 2  ;;  %v3477_v5 = vpack.c.bf16 %v3215_v0, %v3215_v0 }
 0x42a   : > { %v3092_v21 = vpop.f32.mrf.mxu3 }
 0x42b   : > { %v3093_v28 = vadd.f32 %v3092_v21, %v3004_v37  ;;  %v3669_v14 = vunpack.c.l.b16 %v3477_v5  ;;  %v3354_v50 = vsel %vm3351_vm5, %v3347_v52, %v3348_v26  ;;  %v3255_v10 = vsel %vm3252_vm4, %v3248_v58, %v3249_v16 }
 0x42c   : > { %v3445_v13 = vpack.c.bf16 %v3255_v10, %v3255_v10 }
 0x42d   : > { %v3182_v61 = vadd.f32 %v3181_v55, %v3093_v28  ;;  %v3686_v0 = vpack.c.b16 %v3669_v14, %v3668_v42  ;;  %v3508_v55 = vpack.c.bf16 %v3354_v50, %v3354_v50  ;;  %v3183_v56 = vpop.f32.mrf.mxu0  ;;  %v7812_v14 = vpop.f32.mrf.mxu2 }
 0x42e   : > { %v7800_v33 = vunpack.c.l.b16 %v3445_v13 }
 0x42f   : > { %v3216_v34 = vmax.f32 %v3182_v61, 0.0  ;;  %4160 = vmatmul.bf16.gmra.mxu2 %v3686_v0  ;;  %v8172_v61 = vpack.c.b16 %v7602_v20, %v7600_v43  ;;  %v3764_v0 = vunpack.c.l.b16 %v3508_v55 }
 0x431   : > { %v3250_v37 = vrot.slane %v3216_v34, 6  ;;  %v3349_v52 = vrot.slane %v3216_v34, 2  ;;  %v3478_v7 = vpack.c.bf16 %v3216_v34, %v3216_v34  ;;  %v8173_v34 = vrot.slane %v7232_v32, 6 }
 0x432   : > { %v3094_v5 = vpop.f32.mrf.mxu3 }
 0x433   : > { %v3095_v21 = vadd.f32 %v3094_v5, %v3006_v44  ;;  %v3353_v58 = vsel %vm3351_vm5, %v3348_v26, %v3349_v52  ;;  %v3254_v42 = vsel %vm3252_vm4, %v3249_v16, %v3250_v37 }
 0x434   : > { %v3413_v28 = vsel %vm3318_vm6, %v3353_v58, 0.0  ;;  %v3315_v50 = vsel %vm3218_vm7, %v3254_v42, 0.0  ;;  %v3417_v58 = vpack.c.bf16 %v7252_v1, %v7252_v1  ;;  %v8174_v42 = vrot.slane %v7232_v32, 2 }
 0x435   : > { %v3184_v10 = vadd.f32 %v3183_v56, %v3095_v21  ;;  %v3509_v13 = vpack.c.bf16 %v3413_v28, %v3413_v28  ;;  %v3670_v21 = vunpack.c.l.b16 %v3478_v7  ;;  %v3446_v56 = vpack.c.bf16 %v3315_v50, %v3315_v50  ;;  %v7837_v32 = vpop.f32.mrf.mxu2 }
 0x437   : > { %v3217_v17 = vmax.f32 %v3184_v10, 0.0  ;;  %4219 = vmatmul.bf16.gmra.mxu3 %v8172_v61  ;;  %v3765_v26 = vunpack.c.l.b16 %v3509_v13 }
 0x439   : > { %v3251_v16 = vrot.slane %v3217_v17, 6  ;;  %v3350_v44 = vrot.slane %v3217_v17, 2  ;;  %v3479_v5 = vpack.c.bf16 %v3217_v17, %v3217_v17  ;;  %v3782_v51 = vpack.c.b16 %v3765_v26, %v3764_v0 }
 0x43b   : > { %v3284_v43 = vsel %vm3252_vm4, %v3251_v16, %v8173_v34  ;;  %v3671_v20 = vunpack.c.l.b16 %v3479_v5  ;;  %v3352_v55 = vsel %vm3351_vm5, %v3349_v52, %v3350_v44  ;;  %v3383_v28 = vsel %vm3351_vm5, %v3350_v44, %v8174_v42 }
 0x43c   : > { %v3285_v10 = vsel %vm3218_vm7, %v3284_v43, 0.0  ;;  %v3415_v1 = vsel %vm3318_vm6, %v3383_v28, 0.0  ;;  %v3510_v13 = vpack.c.bf16 %v3352_v55, %v3352_v55  ;;  %v3253_v7 = vsel %vm3252_vm4, %v3250_v37, %v3251_v16 }
 0x43d   : > { %v3687_v17 = vpack.c.b16 %v3671_v20, %v3670_v21  ;;  %v3416_v61 = vpack.c.bf16 %v3285_v10, %v3285_v10  ;;  %v3511_v0 = vpack.c.bf16 %v3415_v1, %v3415_v1  ;;  %v3447_v26 = vpack.c.bf16 %v3253_v7, %v3253_v7  ;;  %v4180_v21 = vpop.f32.mrf.mxu3 }
 0x43e   : > { %v3545_v52 = vunpack.c.l.b16 %v3417_v58  ;;  %v3766_v50 = vunpack.c.l.b16 %v3510_v13  ;;  %v7839_v34 = vunpack.c.l.b16 %v3446_v56  ;;  %v8175_v37 = vpack.c.b16 %v7637_v27, %v7635_v35 }
 0x43f   : > { %4165 = vmatmul.bf16.gmra.mxu2 %v3687_v17  ;;  %v3544_v44 = vunpack.c.l.b16 %v3416_v61  ;;  %v3767_v5 = vunpack.c.l.b16 %v3511_v0  ;;  %v7841_v43 = vunpack.c.l.b16 %v3447_v26  ;;  %v8176_v16 = vpack.c.b16 %v7297_v38, %v7295_v62  ;;  %v7908_v0 = vpop.f32.mrf.mxu2 }
 0x440   : > { %v8177_v58 = vpack.c.b16 %v7673_v12, %v7671_v29  ;;  %v8178_v56 = vpack.c.b16 %v7339_v24, %v7337_v47  ;;  %v8179_v20 = vpack.c.b16 %v7713_v11, %v7711_v40  ;;  %v8180_v35 = vpack.c.b16 %v7375_v2, %v7373_v19 }
 0x441   : > { %v3576_v41 = vpack.c.b16 %v3545_v52, %v3544_v44  ;;  %v3783_v55 = vpack.c.b16 %v3767_v5, %v3766_v50  ;;  %v3591_v18 = vpack.c.b16 %v7841_v43, %v7839_v34  ;;  %v8181_v38 = vpack.c.b16 %v7751_v54, %v7749_v36  ;;  %v8189_v50 = vld [vmem:[#allocation7_spill] sm:$0xff]  ;;  %v8190_v44 = vld [vmem:[#allocation4_spill] sm:$0xff] }
 0x442   : > { %v8182_v29 = vpack.c.b16 %v7425_v6, %v7423_v4  ;;  %v8183_v47 = vpack.c.b16 %v7784_v25, %v7782_v63  ;;  %v8184_v19 = vpack.c.b16 %v7465_v57, %v7463_v22  ;;  %v8185_v40 = vpack.c.b16 %v7506_v8, %v7504_v59  ;;  %v8186_v6 = vld [vmem:[#allocation5_spill] sm:$0xff]  ;;  %v7891_v22 = vld [vmem:[%s8058_s2 + $0x4] ss:$0 sm:$0xff]  ;;  %v7900_v57 = vld [vmem:[%s8058_s2 + $0x5] ss:$0 sm:$0xff] }
 0x443   : > { %4001 = vmatmul.bf16.vlgmr.msra.gmra.mxu1 %v3576_v41  ;;  %v8187_v11 = vpack.c.b16 %v7543_v39, %v8186_v6  ;;  %v8188_v8 = vpack.c.b16 %v7583_v31, %v7581_v9  ;;  %v5773_v39 = vld [vmem:[%s6047_s6] sm:$0xff]   ;;  %v8191_v5 = vpack.c.b16 %v8189_v50, %v8190_v44  ;;  %v8195_v50 = vld [vmem:[#allocation9_spill] sm:$0xff] }
 0x444   : > { %v5774_v28 = vunpack.c.l.bf16 %v5773_v39  ;;  %v5775_v31 = vunpack.c.h.bf16 %v5773_v39 }
 0x445   : > { %v4182_v42 = vpop.f32.mrf.mxu3 }
 0x447   : > { %4224 = vmatmul.bf16.gmra.mxu3 %v8175_v37  ;;  %v5931_v37 = vld [vmem:[%s6047_s6 + $0x8] sm:$0xff]  }
 0x44d   : > { %v4185_v62 = vpop.f32.mrf.mxu3 }
 0x453   : > { %4006 = vmatmul.bf16.gmra.mxu1 %v8176_v16 }
 0x455   : > { %v4187_v27 = vpop.f32.mrf.mxu3 }
 0x457   : > { %4229 = vmatmul.bf16.gmra.mxu3 %v8177_v58 }
 0x45d   : > { %v4190_v24 = vpop.f32.mrf.mxu3 }
 0x463   : > { %4011 = vmatmul.bf16.gmra.mxu1 %v8178_v56  ;;  %v5778_v56 = vunpack.c.l.bf16 %v5931_v37 }
 0x465   : > { %v7872_v12 = vpop.f32.mrf.mxu3 }
 0x467   : > { %4234 = vmatmul.bf16.gmra.mxu3 %v8179_v20 }
 0x46d   : > { %v7877_v2 = vpop.f32.mrf.mxu3 }
 0x473   : > { %4016 = vmatmul.bf16.gmra.mxu1 %v8180_v35 }
 0x475   : > { %v7882_v4 = vpop.f32.mrf.mxu3 }
 0x477   : > { %4239 = vmatmul.bf16.gmra.mxu3 %v8181_v38 }
 0x47d   : > { %v7913_v41 = vpop.f32.mrf.mxu3 }
 0x483   : > { %4021 = vmatmul.bf16.gmra.mxu1 %v8182_v29 }
 0x485   : > { %v7930_v38 = vpop.f32.mrf.mxu3 }
 0x487   : > { %4244 = vmatmul.bf16.gmra.mxu3 %v8183_v47 }
 0x48d   : > { %v7941_v39 = vpop.f32.mrf.mxu3 }
 0x493   : > { %4026 = vmatmul.bf16.gmra.mxu1 %v8184_v19 }
 0x497   : > { %4249 = vmatmul.bf16.gmra.mxu3 %v3782_v51 }
 0x4a3   : > { %4031 = vmatmul.bf16.gmra.mxu1 %v8185_v40 }
 0x4a7   : > { %4254 = vmatmul.bf16.gmra.mxu3 %v3783_v55 }
 0x4b3   : > { %4036 = vmatmul.bf16.gmra.mxu1 %v8187_v11 }
 0x4c0   : > { %v4002_v36 = vpop.f32.mrf.mxu1 }
 0x4c1   : > { %v4092_v54 = vadd.f32 %v7679_v45, %v4002_v36 }
 0x4c3   : > { %v4181_v63 = vadd.f32 %v4180_v21, %v4092_v54  ;;  %4041 = vmatmul.bf16.gmra.mxu1 %v8188_v8 }
 0x4c5   : > { %v4262_v59 = vmul.f32 %v7891_v22, %v4181_v63 }
 0x4c7   : > { %v4296_v51 = vadd.f32 %v7900_v57, %v4262_v59 }
 0x4c8   : > { %v4004_v25 = vpop.f32.mrf.mxu1 }
 0x4c9   : > { %v4094_v45 = vadd.f32 %v7700_v15, %v4004_v25  ;;  %v4392_v9 = vadd.f32 %v5774_v28, %v4296_v51  ;;  %v5932_v25 = vld [vmem:[%s6047_s6 + $0x10] sm:$0xff]  }
 0x4ca   : > { %v5782_v28 = vunpack.c.l.bf16 %v5932_v25 }
 0x4cb   : > { %v4183_v10 = vadd.f32 %v4182_v42, %v4094_v45  ;;  %v4424_v26 = vmax.f32 %v4392_v9, 0.0  ;;  %v7927_v42 = vpop.f32.mrf.mxu2 }
 0x4cd   : > { %v4263_v1 = vmul.f32 %v7891_v22, %v4183_v10  ;;  %v5783_v10 = vunpack.c.h.bf16 %v5932_v25 }
 0x4cf   : > { %v4297_v13 = vadd.f32 %v7900_v57, %v4263_v1 }
 0x4d0   : > { %v4007_v7 = vpop.f32.mrf.mxu1 }
 0x4d1   : > { %v4393_v17 = vadd.f32 %v5775_v31, %v4297_v13  ;;  %v4097_v61 = vadd.f32 %v7728_v49, %v4007_v7 }
 0x4d3   : > { %v4425_v15 = vmax.f32 %v4393_v17, 0.0  ;;  %v4186_v52 = vadd.f32 %v4185_v62, %v4097_v61  ;;  %4046 = vmatmul.bf16.gmra.mxu1 %v8191_v5  ;;  %v5779_v62 = vunpack.c.h.bf16 %v5931_v37  ;;  %v7937_v8 = vpop.f32.mrf.mxu2  ;;  %v4207_v61 = vpop.f32.mrf.mxu3 }
 0x4d5   : > { %v5839_v55 = vpack.c.bf16 %v4425_v15, %v4424_v26  ;;  %v4264_v49 = vmul.f32 %v7891_v22, %v4186_v52  ;;  %v8194_v52 = vld [vmem:[#allocation8_spill] sm:$0xff] }
 0x4d7   : > { %5840 = vst [vmem:[%s7920_s19] sm:$0xff] %v5839_v55   ;;  %v4298_v21 = vadd.f32 %v7900_v57, %v4264_v49  ;;  %v5933_v55 = vld [vmem:[%s6047_s6 + $0x18] sm:$0xff]  }
 0x4d8   : > { %v4009_v16 = vpop.f32.mrf.mxu1 }
 0x4d9   : > { %v4099_v58 = vadd.f32 %v7744_v23, %v4009_v16  ;;  %v4394_v29 = vadd.f32 %v5778_v56, %v4298_v21 }
 0x4db   : > { %v4188_v20 = vadd.f32 %v4187_v27, %v4099_v58  ;;  %v4426_v6 = vmax.f32 %v4394_v29, 0.0  ;;  %v8192_v27 = vld [vmem:[#allocation6_spill] sm:$0xff]  ;;  %v4118_v9 = vpop.f32.mrf.mxu2  ;;  %v5786_v58 = vunpack.c.l.bf16 %v5933_v55 }
 0x4dc   : > { %v8193_v54 = vpack.c.b16 %v7654_v48, %v8192_v27 }
 0x4dd   : > { %v4265_v35 = vmul.f32 %v7891_v22, %v4188_v20  ;;  %v5787_v20 = vunpack.c.h.bf16 %v5933_v55 }
 0x4df   : > { %v4299_v47 = vadd.f32 %v7900_v57, %v4265_v35 }
 0x4e0   : > { %v4012_v19 = vpop.f32.mrf.mxu1 }
 0x4e1   : > { %v4395_v40 = vadd.f32 %v5779_v62, %v4299_v47  ;;  %v4102_v23 = vadd.f32 %v7771_v53, %v4012_v19 }
 0x4e3   : > { %v4427_v11 = vmax.f32 %v4395_v40, 0.0  ;;  %v4191_v36 = vadd.f32 %v4190_v24, %v4102_v23  ;;  %4051 = vmatmul.bf16.gmra.mxu1 %v8193_v54  ;;  %v4121_v16 = vpop.f32.mrf.mxu2 }
 0x4e5   : > { %v5844_v63 = vpack.c.bf16 %v4427_v11, %v4426_v6  ;;  %v4266_v59 = vmul.f32 %v7891_v22, %v4191_v36  ;;  %v8197_v6 = vld [vmem:[#allocation11_spill] sm:$0xff] }
 0x4e7   : > { %5946 = vst [vmem:[%s7920_s19 + $0x8] sm:$0xff] %v5844_v63   ;;  %v4300_v53 = vadd.f32 %v7900_v57, %v4266_v59  ;;  %v5934_v63 = vld [vmem:[%s6047_s6 + $0x20] sm:$0xff]  }
 0x4e8   : > { %v4014_v45 = vpop.f32.mrf.mxu1 }
 0x4e9   : > { %v4104_v51 = vadd.f32 %v7792_v30, %v4014_v45  ;;  %v4396_v1 = vadd.f32 %v5782_v28, %v4300_v53  ;;  %v5790_v45 = vunpack.c.l.bf16 %v5934_v63 }
 0x4eb   : > { %v4193_v24 = vadd.f32 %v7872_v12, %v4104_v51  ;;  %v4428_v30 = vmax.f32 %v4396_v1, 0.0  ;;  %v8196_v12 = vpack.c.b16 %v8194_v52, %v8195_v50  ;;  %v4123_v11 = vpop.f32.mrf.mxu2  ;;  %v5935_v52 = vld [vmem:[%s6047_s6 + $0x28] sm:$0xff]  }
 0x4ed   : > { %v4267_v48 = vmul.f32 %v7891_v22, %v4193_v24 }
 0x4ef   : > { %v4301_v31 = vadd.f32 %v7900_v57, %v4267_v48 }
 0x4f0   : > { %v4017_v13 = vpop.f32.mrf.mxu1 }
 0x4f1   : > { %v4397_v7 = vadd.f32 %v5783_v10, %v4301_v31  ;;  %v4107_v17 = vadd.f32 %v7812_v14, %v4017_v13 }
 0x4f3   : > { %v4429_v26 = vmax.f32 %v4397_v7, 0.0  ;;  %v4196_v15 = vadd.f32 %v7877_v2, %v4107_v17  ;;  %4056 = vmatmul.bf16.gmra.mxu1 %v8196_v12  ;;  %v4210_v2 = vpop.f32.mrf.mxu3  ;;  %v4126_v53 = vpop.f32.mrf.mxu2  ;;  %v8199_v17 = vld [vmem:[#allocation10_spill] sm:$0xff] }
 0x4f5   : > { %v5849_v44 = vpack.c.bf16 %v4429_v26, %v4428_v30  ;;  %v4268_v5 = vmul.f32 %v7891_v22, %v4196_v15 }
 0x4f7   : > { %5947 = vst [vmem:[%s7920_s19 + $0x10] sm:$0xff] %v5849_v44   ;;  %v4302_v14 = vadd.f32 %v7900_v57, %v4268_v5 }
 0x4f8   : > { %v4019_v49 = vpop.f32.mrf.mxu1 }
 0x4f9   : > { %v4109_v37 = vadd.f32 %v7837_v32, %v4019_v49  ;;  %v4398_v35 = vadd.f32 %v5786_v58, %v4302_v14  ;;  %v5795_v49 = vunpack.c.h.bf16 %v5935_v52 }
 0x4fb   : > { %v4198_v21 = vadd.f32 %v7882_v4, %v4109_v37  ;;  %v4430_v32 = vmax.f32 %v4398_v35, 0.0  ;;  %v8198_v4 = vpack.c.b16 %v7732_v3, %v8197_v6  ;;  %v4212_v27 = vpop.f32.mrf.mxu3  ;;  %v5791_v3 = vunpack.c.h.bf16 %v5934_v63  ;;  %v4128_v15 = vpop.f32.mrf.mxu2 }
 0x4fd   : > { %v4269_v56 = vmul.f32 %v7891_v22, %v4198_v21 }
 0x4ff   : > { %v4303_v62 = vadd.f32 %v7900_v57, %v4269_v56 }
 0x500   : > { %v4022_v29 = vpop.f32.mrf.mxu1 }
 0x501   : > { %v4399_v47 = vadd.f32 %v5787_v20, %v4303_v62  ;;  %v4112_v19 = vadd.f32 %v7908_v0, %v4022_v29  ;;  %v8201_v62 = vpack.c.b16 %v7800_v33, %v7798_v46 }
 0x503   : > { %v4431_v40 = vmax.f32 %v4399_v47, 0.0  ;;  %v4201_v23 = vadd.f32 %v7913_v41, %v4112_v19  ;;  %4061 = vmatmul.bf16.gmra.mxu1 %v8198_v4  ;;  %v4215_v48 = vpop.f32.mrf.mxu3  ;;  %v4131_v56 = vpop.f32.mrf.mxu2  ;;  %v5936_v19 = vld [vmem:[%s6047_s6 + $0x30] sm:$0xff]  }
 0x504   : > { %v5798_v6 = vunpack.c.l.bf16 %v5936_v19 }
 0x505   : > { %v5854_v36 = vpack.c.bf16 %v4431_v40, %v4430_v32  ;;  %v4270_v54 = vmul.f32 %v7891_v22, %v4201_v23 }
 0x507   : > { %5948 = vst [vmem:[%s7920_s19 + $0x18] sm:$0xff] %v5854_v36   ;;  %v4304_v0 = vadd.f32 %v7900_v57, %v4270_v54  ;;  %v5799_v36 = vunpack.c.h.bf16 %v5936_v19 }
 0x508   : > { %v4024_v59 = vpop.f32.mrf.mxu1 }
 0x509   : > { %v4114_v25 = vadd.f32 %v7927_v42, %v4024_v59  ;;  %v4400_v28 = vadd.f32 %v5790_v45, %v4304_v0 }
 0x50b   : > { %v4203_v41 = vadd.f32 %v7930_v38, %v4114_v25  ;;  %v4432_v42 = vmax.f32 %v4400_v28, 0.0  ;;  %v8200_v38 = vpack.c.b16 %v7765_v60, %v8199_v17  ;;  %v4217_v44 = vpop.f32.mrf.mxu3  ;;  %v4133_v4 = vpop.f32.mrf.mxu2  ;;  %v5937_v28 = vld [vmem:[%s6047_s6 + $0x38] sm:$0xff]  }
 0x50d   : > { %v4271_v51 = vmul.f32 %v7891_v22, %v4203_v41 }
 0x50f   : > { %v4305_v24 = vadd.f32 %v7900_v57, %v4271_v51 }
 0x510   : > { %v4027_v10 = vpop.f32.mrf.mxu1 }
 0x511   : > { %v4401_v1 = vadd.f32 %v5791_v3, %v4305_v24  ;;  %v4117_v31 = vadd.f32 %v7937_v8, %v4027_v10  ;;  %v5794_v8 = vunpack.c.l.bf16 %v5935_v52 }
 0x513   : > { %v4433_v13 = vmax.f32 %v4401_v1, 0.0  ;;  %v4206_v7 = vadd.f32 %v7941_v39, %v4117_v31  ;;  %4066 = vmatmul.bf16.gmra.mxu1 %v8200_v38  ;;  %v4220_v29 = vpop.f32.mrf.mxu3  ;;  %v4136_v41 = vpop.f32.mrf.mxu2 }
 0x515   : > { %v5859_v30 = vpack.c.bf16 %v4433_v13, %v4432_v42  ;;  %v4272_v26 = vmul.f32 %v7891_v22, %v4206_v7  ;;  %v5803_v42 = vunpack.c.h.bf16 %v5937_v28 }
 0x517   : > { %5949 = vst [vmem:[%s7920_s19 + $0x20] sm:$0xff] %v5859_v30   ;;  %v4306_v5 = vadd.f32 %v7900_v57, %v4272_v26 }
 0x518   : > { %v4029_v50 = vpop.f32.mrf.mxu1 }
 0x519   : > { %v4119_v12 = vadd.f32 %v4118_v9, %v4029_v50  ;;  %v4402_v60 = vadd.f32 %v5794_v8, %v4306_v5 }
 0x51b   : > { %v4208_v55 = vadd.f32 %v4207_v61, %v4119_v12  ;;  %v4434_v20 = vmax.f32 %v4402_v60, 0.0  ;;  %v4222_v46 = vpop.f32.mrf.mxu3  ;;  %v5938_v12 = vld [vmem:[%s6047_s6 + $0x40] sm:$0xff]  }
 0x51d   : > { %v4273_v39 = vmul.f32 %v7891_v22, %v4208_v55 }
 0x51f   : > { %v4307_v37 = vadd.f32 %v7900_v57, %v4273_v39  ;;  %v5806_v39 = vunpack.c.l.bf16 %v5938_v12 }
 0x520   : > { %v4032_v14 = vpop.f32.mrf.mxu1 }
 0x521   : > { %v4403_v58 = vadd.f32 %v5795_v49, %v4307_v37  ;;  %v4122_v21 = vadd.f32 %v4121_v16, %v4032_v14  ;;  %v5807_v14 = vunpack.c.h.bf16 %v5938_v12 }
 0x523   : > { %v4435_v35 = vmax.f32 %v4403_v58, 0.0  ;;  %v4211_v9 = vadd.f32 %v4210_v2, %v4122_v21  ;;  %4071 = vmatmul.bf16.gmra.mxu1 %v8201_v62  ;;  %v4225_v3 = vpop.f32.mrf.mxu3 }
 0x525   : > { %v5864_v61 = vpack.c.bf16 %v4435_v35, %v4434_v20  ;;  %v4274_v47 = vmul.f32 %v7891_v22, %v4211_v9 }
 0x527   : > { %5950 = vst [vmem:[%s7920_s19 + $0x28] sm:$0xff] %v5864_v61   ;;  %v4308_v23 = vadd.f32 %v7900_v57, %v4274_v47 }
 0x528   : > { %v4034_v32 = vpop.f32.mrf.mxu1 }
 0x529   : > { %v4124_v40 = vadd.f32 %v4123_v11, %v4034_v32  ;;  %v4404_v33 = vadd.f32 %v5798_v6, %v4308_v23 }
 0x52b   : > { %v4213_v16 = vadd.f32 %v4212_v27, %v4124_v40  ;;  %v4436_v0 = vmax.f32 %v4404_v33, 0.0  ;;  %v4227_v38 = vpop.f32.mrf.mxu3  ;;  %v5939_v40 = vld [vmem:[%s6047_s6 + $0x48] sm:$0xff]  }
 0x52d   : > { %v4275_v2 = vmul.f32 %v7891_v22, %v4213_v16 }
 0x52f   : > { %v4309_v54 = vadd.f32 %v7900_v57, %v4275_v2 }
 0x530   : > { %v4037_v63 = vpop.f32.mrf.mxu1 }
 0x531   : > { %v4405_v59 = vadd.f32 %v5799_v36, %v4309_v54  ;;  %v4127_v25 = vadd.f32 %v4126_v53, %v4037_v63  ;;  %v5802_v53 = vunpack.c.l.bf16 %v5937_v28 }
 0x533   : > { %v4437_v45 = vmax.f32 %v4405_v59, 0.0  ;;  %v4216_v11 = vadd.f32 %v4215_v48, %v4127_v25  ;;  %4076 = vmatmul.bf16.gmra.mxu1 %v3591_v18  ;;  %v4138_v18 = vpop.f32.mrf.mxu2  ;;  %v4230_v60 = vpop.f32.mrf.mxu3 }
 0x535   : > { %v5869_v27 = vpack.c.bf16 %v4437_v45, %v4436_v0  ;;  %v4276_v51 = vmul.f32 %v7891_v22, %v4216_v11 }
 0x537   : > { %5951 = vst [vmem:[%s7920_s19 + $0x30] sm:$0xff] %v5869_v27   ;;  %v4310_v1 = vadd.f32 %v7900_v57, %v4276_v51 }
 0x538   : > { %v4039_v24 = vpop.f32.mrf.mxu1 }
 0x539   : > { %v4129_v10 = vadd.f32 %v4128_v15, %v4039_v24  ;;  %v4406_v34 = vadd.f32 %v5802_v53, %v4310_v1  ;;  %v5940_v24 = vld [vmem:[%s6047_s6 + $0x50] sm:$0xff]  }
 0x53b   : > { %v4218_v31 = vadd.f32 %v4217_v44, %v4129_v10  ;;  %v4438_v30 = vmax.f32 %v4406_v34, 0.0  ;;  %v4141_v8 = vpop.f32.mrf.mxu2  ;;  %v4232_v19 = vpop.f32.mrf.mxu3 }
 0x53d   : > { %v4277_v48 = vmul.f32 %v7891_v22, %v4218_v31 }
 0x53f   : > { %v4311_v43 = vadd.f32 %v7900_v57, %v4277_v48  ;;  %v5814_v48 = vunpack.c.l.bf16 %v5940_v24 }
 0x540   : > { %v4042_v13 = vpop.f32.mrf.mxu1 }
 0x541   : > { %v4407_v7 = vadd.f32 %v5803_v42, %v4311_v43  ;;  %v4132_v17 = vadd.f32 %v4131_v56, %v4042_v13  ;;  %v5815_v43 = vunpack.c.h.bf16 %v5940_v24 }
 0x543   : > { %v4439_v26 = vmax.f32 %v4407_v7, 0.0  ;;  %v4221_v15 = vadd.f32 %v4220_v29, %v4132_v17  ;;  %v4143_v61 = vpop.f32.mrf.mxu2  ;;  %v4235_v59 = vpop.f32.mrf.mxu3 }
 0x545   : > { %v5874_v52 = vpack.c.bf16 %v4439_v26, %v4438_v30  ;;  %v4278_v50 = vmul.f32 %v7891_v22, %v4221_v15 }
 0x547   : > { %5952 = vst [vmem:[%s7920_s19 + $0x38] sm:$0xff] %v5874_v52   ;;  %v4312_v55 = vadd.f32 %v7900_v57, %v4278_v50 }
 0x548   : > { %v4044_v44 = vpop.f32.mrf.mxu1 }
 0x549   : > { %v4134_v5 = vadd.f32 %v4133_v4, %v4044_v44  ;;  %v4408_v58 = vadd.f32 %v5806_v39, %v4312_v55  ;;  %v5810_v4 = vunpack.c.l.bf16 %v5939_v40 }
 0x54b   : > { %v4223_v49 = vadd.f32 %v4222_v46, %v4134_v5  ;;  %v4440_v9 = vmax.f32 %v4408_v58, 0.0  ;;  %v5811_v46 = vunpack.c.h.bf16 %v5939_v40  ;;  %v4146_v33 = vpop.f32.mrf.mxu2  ;;  %v4237_v53 = vpop.f32.mrf.mxu3  ;;  %v5941_v5 = vld [vmem:[%s6047_s6 + $0x58] sm:$0xff]  }
 0x54c   : > { %v5819_v58 = vunpack.c.h.bf16 %v5941_v5 }
 0x54d   : > { %v4279_v37 = vmul.f32 %v7891_v22, %v4223_v49  ;;  %v5818_v49 = vunpack.c.l.bf16 %v5941_v5 }
 0x54f   : > { %v4313_v21 = vadd.f32 %v7900_v57, %v4279_v37 }
 0x550   : > { %v4047_v56 = vpop.f32.mrf.mxu1 }
 0x551   : > { %v4409_v20 = vadd.f32 %v5807_v14, %v4313_v21  ;;  %v4137_v35 = vadd.f32 %v4136_v41, %v4047_v56 }
 0x553   : > { %v4441_v62 = vmax.f32 %v4409_v20, 0.0  ;;  %v4226_v29 = vadd.f32 %v4225_v3, %v4137_v35  ;;  %v4148_v28 = vpop.f32.mrf.mxu2  ;;  %v4240_v50 = vpop.f32.mrf.mxu3 }
 0x555   : > { %v5879_v47 = vpack.c.bf16 %v4441_v62, %v4440_v9  ;;  %v4280_v32 = vmul.f32 %v7891_v22, %v4226_v29 }
 0x557   : > { %5953 = vst [vmem:[%s7920_s19 + $0x40] sm:$0xff] %v5879_v47   ;;  %v4314_v16 = vadd.f32 %v7900_v57, %v4280_v32 }
 0x558   : > { %v4049_v23 = vpop.f32.mrf.mxu1 }
 0x559   : > { %v4139_v6 = vadd.f32 %v4138_v18, %v4049_v23  ;;  %v4410_v54 = vadd.f32 %v5810_v4, %v4314_v16 }
 0x55b   : > { %v4228_v2 = vadd.f32 %v4227_v38, %v4139_v6  ;;  %v4442_v11 = vmax.f32 %v4410_v54, 0.0  ;;  %v4151_v30 = vpop.f32.mrf.mxu2  ;;  %v4242_v21 = vpop.f32.mrf.mxu3  ;;  %v5942_v6 = vld [vmem:[%s6047_s6 + $0x60] sm:$0xff]  }
 0x55c   : > { %v5823_v54 = vunpack.c.h.bf16 %v5942_v6 }
 0x55d   : > { %v4281_v36 = vmul.f32 %v7891_v22, %v4228_v2 }
 0x55f   : > { %v4315_v63 = vadd.f32 %v7900_v57, %v4281_v36  ;;  %v5822_v36 = vunpack.c.l.bf16 %v5942_v6 }
 0x560   : > { %v4052_v25 = vpop.f32.mrf.mxu1 }
 0x561   : > { %v4411_v0 = vadd.f32 %v5811_v46, %v4315_v63  ;;  %v4142_v45 = vadd.f32 %v4141_v8, %v4052_v25 }
 0x563   : > { %v4443_v27 = vmax.f32 %v4411_v0, 0.0  ;;  %v4231_v41 = vadd.f32 %v4230_v60, %v4142_v45  ;;  %v4153_v37 = vpop.f32.mrf.mxu2  ;;  %v4245_v23 = vpop.f32.mrf.mxu3 }
 0x565   : > { %v5884_v51 = vpack.c.bf16 %v4443_v27, %v4442_v11  ;;  %v4282_v3 = vmul.f32 %v7891_v22, %v4231_v41 }
 0x567   : > { %5954 = vst [vmem:[%s7920_s19 + $0x48] sm:$0xff] %v5884_v51   ;;  %v4316_v31 = vadd.f32 %v7900_v57, %v4282_v3 }
 0x568   : > { %v4054_v10 = vpop.f32.mrf.mxu1 }
 0x569   : > { %v4144_v1 = vadd.f32 %v4143_v61, %v4054_v10  ;;  %v4412_v18 = vadd.f32 %v5814_v48, %v4316_v31  ;;  %v5943_v10 = vld [vmem:[%s6047_s6 + $0x68] sm:$0xff]  }
 0x56b   : > { %v4233_v42 = vadd.f32 %v4232_v19, %v4144_v1  ;;  %v4444_v26 = vmax.f32 %v4412_v18, 0.0  ;;  %v4156_v32 = vpop.f32.mrf.mxu2  ;;  %v4247_v27 = vpop.f32.mrf.mxu3 }
 0x56d   : > { %v4283_v34 = vmul.f32 %v7891_v22, %v4233_v42  ;;  %v5826_v42 = vunpack.c.l.bf16 %v5943_v10 }
 0x56f   : > { %v4317_v13 = vadd.f32 %v7900_v57, %v4283_v34 }
 0x570   : > { %v4057_v7 = vpop.f32.mrf.mxu1 }
 0x571   : > { %v4413_v17 = vadd.f32 %v5815_v43, %v4317_v13  ;;  %v4147_v38 = vadd.f32 %v4146_v33, %v4057_v7  ;;  %v5827_v13 = vunpack.c.h.bf16 %v5943_v10 }
 0x573   : > { %v4445_v15 = vmax.f32 %v4413_v17, 0.0  ;;  %v4236_v52 = vadd.f32 %v4235_v59, %v4147_v38  ;;  %v4158_v25 = vpop.f32.mrf.mxu2  ;;  %v4250_v43 = vpop.f32.mrf.mxu3 }
 0x575   : > { %v5889_v12 = vpack.c.bf16 %v4445_v15, %v4444_v26  ;;  %v4284_v44 = vmul.f32 %v7891_v22, %v4236_v52 }
 0x577   : > { %5955 = vst [vmem:[%s7920_s19 + $0x50] sm:$0xff] %v5889_v12   ;;  %v4318_v39 = vadd.f32 %v7900_v57, %v4284_v44 }
 0x578   : > { %v4059_v8 = vpop.f32.mrf.mxu1 }
 0x579   : > { %v4149_v55 = vadd.f32 %v4148_v28, %v4059_v8  ;;  %v4414_v56 = vadd.f32 %v5818_v49, %v4318_v39 }
 0x57b   : > { %v4238_v60 = vadd.f32 %v4237_v53, %v4149_v55  ;;  %v4446_v29 = vmax.f32 %v4414_v56, 0.0  ;;  %v4161_v31 = vpop.f32.mrf.mxu2  ;;  %v4252_v5 = vpop.f32.mrf.mxu3  ;;  %v5944_v55 = vld [vmem:[%s6047_s6 + $0x70] sm:$0xff]  }
 0x57d   : > { %v4285_v14 = vmul.f32 %v7891_v22, %v4238_v60 }
 0x57f   : > { %v4319_v20 = vadd.f32 %v7900_v57, %v4285_v14 }
 0x580   : > { %v4062_v35 = vpop.f32.mrf.mxu1 }
 0x581   : > { %v4415_v9 = vadd.f32 %v5819_v58, %v4319_v20  ;;  %v4152_v62 = vadd.f32 %v4151_v30, %v4062_v35 }
 0x583   : > { %v4447_v61 = vmax.f32 %v4415_v9, 0.0  ;;  %v4241_v47 = vadd.f32 %v4240_v50, %v4152_v62  ;;  %v4163_v12 = vpop.f32.mrf.mxu2  ;;  %v4255_v9 = vpop.f32.mrf.mxu3 }
 0x585   : > { %v5894_v19 = vpack.c.bf16 %v4447_v61, %v4446_v29  ;;  %v4286_v40 = vmul.f32 %v7891_v22, %v4241_v47 }
 0x587   : > { %5956 = vst [vmem:[%s7920_s19 + $0x58] sm:$0xff] %v5894_v19   ;;  %v4320_v2 = vadd.f32 %v7900_v57, %v4286_v40 }
 0x588   : > { %v4064_v16 = vpop.f32.mrf.mxu1 }
 0x589   : > { %v4154_v4 = vadd.f32 %v4153_v37, %v4064_v16  ;;  %v4416_v63 = vadd.f32 %v5822_v36, %v4320_v2  ;;  %v5830_v37 = vunpack.c.l.bf16 %v5944_v55  ;;  %v5945_v16 = vld [vmem:[%s6047_s6 + $0x78] sm:$0xff]  }
 0x58b   : > { %v4243_v46 = vadd.f32 %v4242_v21, %v4154_v4  ;;  %v4448_v41 = vmax.f32 %v4416_v63, 0.0  ;;  %v5831_v21 = vunpack.c.h.bf16 %v5944_v55  ;;  %v4166_v56 = vpop.f32.mrf.mxu2  ;;  %v4257_v36 = vpop.f32.mrf.mxu3 }
 0x58d   : > { %v4287_v33 = vmul.f32 %v7891_v22, %v4243_v46 }
 0x58f   : > { %v4321_v59 = vadd.f32 %v7900_v57, %v4287_v33  ;;  %v5834_v33 = vunpack.c.l.bf16 %v5945_v16 }
 0x590   : > { %v4067_v0 = vpop.f32.mrf.mxu1 }
 0x591   : > { %v4417_v45 = vadd.f32 %v5823_v54, %v4321_v59  ;;  %v4157_v11 = vadd.f32 %v4156_v32, %v4067_v0  ;;  %v5835_v59 = vunpack.c.h.bf16 %v5945_v16 }
 0x593   : > { %v4449_v51 = vmax.f32 %v4417_v45, 0.0  ;;  %v4246_v3 = vadd.f32 %v4245_v23, %v4157_v11  ;;  %v4168_v6 = vpop.f32.mrf.mxu2 }
 0x595   : > { %v5899_v28 = vpack.c.bf16 %v4449_v51, %v4448_v41  ;;  %v4288_v24 = vmul.f32 %v7891_v22, %v4246_v3 }
 0x597   : > { %5957 = vst [vmem:[%s7920_s19 + $0x60] sm:$0xff] %v5899_v28   ;;  %v4322_v48 = vadd.f32 %v7900_v57, %v4288_v24 }
 0x598   : > { %v4069_v1 = vpop.f32.mrf.mxu1 }
 0x599   : > { %v4159_v53 = vadd.f32 %v4158_v25, %v4069_v1  ;;  %v4418_v7 = vadd.f32 %v5826_v42, %v4322_v48 }
 0x59b   : > { %v4248_v34 = vadd.f32 %v4247_v27, %v4159_v53  ;;  %v4450_v15 = vmax.f32 %v4418_v7, 0.0 }
 0x59d   : > { %v4289_v18 = vmul.f32 %v7891_v22, %v4248_v34 }
 0x59f   : > { %v4323_v17 = vadd.f32 %v7900_v57, %v4289_v18 }
 0x5a0   : > { %v4072_v38 = vpop.f32.mrf.mxu1 }
 0x5a1   : > { %v4419_v30 = vadd.f32 %v5827_v13, %v4323_v17  ;;  %v4162_v26 = vadd.f32 %v4161_v31, %v4072_v38 }
 0x5a3   : > { %v4451_v52 = vmax.f32 %v4419_v30, 0.0  ;;  %v4251_v50 = vadd.f32 %v4250_v43, %v4162_v26 }
 0x5a5   : > { %v5904_v44 = vpack.c.bf16 %v4451_v52, %v4450_v15  ;;  %v4290_v8 = vmul.f32 %v7891_v22, %v4251_v50 }
 0x5a7   : > { %5958 = vst [vmem:[%s7920_s19 + $0x68] sm:$0xff] %v5904_v44   ;;  %v4324_v60 = vadd.f32 %v7900_v57, %v4290_v8 }
 0x5a8   : > { %v4074_v39 = vpop.f32.mrf.mxu1 }
 0x5a9   : > { %v4164_v49 = vadd.f32 %v4163_v12, %v4074_v39  ;;  %v4420_v20 = vadd.f32 %v5830_v37, %v4324_v60 }
 0x5ab   : > { %v4253_v14 = vadd.f32 %v4252_v5, %v4164_v49  ;;  %v4452_v47 = vmax.f32 %v4420_v20, 0.0 }
 0x5ad   : > { %v4291_v58 = vmul.f32 %v7891_v22, %v4253_v14 }
 0x5af   : > { %v4325_v35 = vadd.f32 %v7900_v57, %v4291_v58 }
 0x5b0   : > { %v4077_v62 = vpop.f32.mrf.mxu1 }
 0x5b1   : > { %v4421_v29 = vadd.f32 %v5831_v21, %v4325_v35  ;;  %v4167_v61 = vadd.f32 %v4166_v56, %v4077_v62 }
 0x5b3   : > { %v4453_v19 = vmax.f32 %v4421_v29, 0.0  ;;  %v4256_v32 = vadd.f32 %v4255_v9, %v4167_v61 }
 0x5b5   : > { %v5909_v40 = vpack.c.bf16 %v4453_v19, %v4452_v47  ;;  %v4292_v23 = vmul.f32 %v7891_v22, %v4256_v32 }
 0x5b7   : > { %5959 = vst [vmem:[%s7920_s19 + $0x70] sm:$0xff] %v5909_v40   ;;  %v4326_v46 = vadd.f32 %v7900_v57, %v4292_v23 }
 0x5b8   : > { %v4079_v4 = vpop.f32.mrf.mxu1 }
 0x5b9   : > { %v4169_v2 = vadd.f32 %v4168_v6, %v4079_v4  ;;  %v4422_v25 = vadd.f32 %v5834_v33, %v4326_v46 }
 0x5bb   : > { %v4258_v54 = vadd.f32 %v4257_v36, %v4169_v2  ;;  %v4454_v11 = vmax.f32 %v4422_v25, 0.0 }
 0x5bd   : > { %v4293_v63 = vmul.f32 %v7891_v22, %v4258_v54 }
 0x5bf   : > { %v4327_v0 = vadd.f32 %v7900_v57, %v4293_v63 }
 0x5c1   : > { %v4423_v45 = vadd.f32 %v5835_v59, %v4327_v0 }
 0x5c3   : > { %v4455_v27 = vmax.f32 %v4423_v45, 0.0 }
 0x5c5   : > { %v5914_v41 = vpack.c.bf16 %v4455_v27, %v4454_v11 }
 0x5c7   : > { %5960 = vst [vmem:[%s7920_s19 + $0x78] sm:$0xff] %v5914_v41  }
 0x5c8 PF: > { %s13_s12 = sadd.s32 1, %s5984_s12  }
 0x5c9   : > { %p10_p4 = scmp.ge.s32.totalorder %s13_s12, 4  }
 0x5cb   :  { %12 = sbr.rel (!%p10_p4) target bundleno = 1 (0x1), region = 71 }

</bundles_post_ra>
